<compile_context>
chip_gen: v6e
topology: v6e:2x2x1
jax: 0.10.0
libtpu: 0.0.40
codegen_flags: <defaults>
</compile_context>

<pallas_src>
import math

import jax
import jax.numpy as jnp
from jax import lax
from jax.experimental import pallas as pl
from jax.experimental.pallas import tpu as pltpu


# --------------------------------------------------------------------------
# Fused AFF kernel (one batch element per grid step, NHWC layout)
# --------------------------------------------------------------------------
def _aff_kernel(x1_ref, x2_ref, x4_ref, x6_ref, w1_ref, b1_ref, w2_ref, b2_ref,
                o_ref, pad_ref):
    """concat(C) -> 1x1 conv + bias + ReLU -> 3x3 'same' conv + bias.

    x*_ref : (1, H, W, Ci)     per-branch input tile (f32)
    w1_ref : (sum(Ci), Cmid)   1x1 conv weight (bf16)
    b1_ref : (1, Cmid)         1x1 conv bias   (f32)
    w2_ref : (9*Cmid, Cout)    3x3 conv weight, (kh, kw, cin) flattened (bf16)
    b2_ref : (1, Cout)         3x3 conv bias   (f32)
    o_ref  : (1, H, W, Cout)   output tile (f32)
    pad_ref: (H+2, W+2, Cmid)  VMEM scratch: zero-padded intermediate (bf16)
    """
    H, W = o_ref.shape[1], o_ref.shape[2]
    Cmid = w1_ref.shape[1]
    Cout = w2_ref.shape[1]

    # ---- fused channel concat + 1x1 conv: one MXU matmul, K = sum(Ci) -----
    taps = []
    for x_ref in (x1_ref, x2_ref, x4_ref, x6_ref):
        ci = x_ref.shape[3]
        taps.append(x_ref[0].reshape(H * W, ci).astype(jnp.bfloat16))
    xcat = jnp.concatenate(taps, axis=1)                     # (HW, Cin_total)
    mid = jnp.dot(xcat, w1_ref[...], preferred_element_type=jnp.float32)
    mid = jnp.maximum(mid + b1_ref[...], 0.0)                # bias + ReLU in f32

    # ---- zero-padded intermediate kept in VMEM (no HBM pad round trip) ----
    pad_ref[...] = jnp.zeros_like(pad_ref)
    pad_ref[pl.ds(1, H), pl.ds(1, W), :] = (
        mid.reshape(H, W, Cmid).astype(jnp.bfloat16))

    # ---- 3x3 'same' conv as a single im2col matmul, K = 9*Cmid ------------
    patches = []
    for kh in range(3):
        for kw in range(3):
            patches.append(
                pad_ref[pl.ds(kh, H), pl.ds(kw, W), :].reshape(H * W, Cmid))
    patch = jnp.concatenate(patches, axis=1)                 # (HW, 9*Cmid)
    out = jnp.dot(patch, w2_ref[...], preferred_element_type=jnp.float32)
    out = out + b2_ref[...]                                  # bias in f32, no ReLU
    o_ref[0] = out.reshape(H, W, Cout).astype(o_ref.dtype)


# --------------------------------------------------------------------------
# pallas_call wrapper (NHWC)
# --------------------------------------------------------------------------
def aff_forward_nhwc(x1, x2, x4, x6, params):
    N, H, W, _ = x1.shape
    cs = tuple(int(a.shape[-1]) for a in (x1, x2, x4, x6))
    cin_total = sum(cs)

    w1, b1, w2, b2 = params["w1"], params["b1"], params["w2"], params["b2"]
    Cmid = w1.shape[1]
    Cout = w2.shape[3]
    assert w1.shape[0] == cin_total and w2.shape[2] == Cmid

    # MXU operands in bf16; accumulation stays f32 inside the kernel.
    w1_bf16 = w1.astype(jnp.bfloat16)                          # (Cin_total, Cmid)
    w2_flat = w2.reshape(9 * Cmid, Cout).astype(jnp.bfloat16)  # (kh,kw,cin) major

    in_specs = [
        pl.BlockSpec((1, H, W, cs[0]), lambda n: (n, 0, 0, 0)),
        pl.BlockSpec((1, H, W, cs[1]), lambda n: (n, 0, 0, 0)),
        pl.BlockSpec((1, H, W, cs[2]), lambda n: (n, 0, 0, 0)),
        pl.BlockSpec((1, H, W, cs[3]), lambda n: (n, 0, 0, 0)),
        pl.BlockSpec((cin_total, Cmid), lambda n: (0, 0)),
        pl.BlockSpec((1, Cmid), lambda n: (0, 0)),
        pl.BlockSpec((9 * Cmid, Cout), lambda n: (0, 0)),
        pl.BlockSpec((1, Cout), lambda n: (0, 0)),
    ]

    return pl.pallas_call(
        _aff_kernel,
        out_shape=jax.ShapeDtypeStruct((N, H, W, Cout), x1.dtype),
        grid=(N,),
        in_specs=in_specs,
        out_specs=pl.BlockSpec((1, H, W, Cout), lambda n: (n, 0, 0, 0)),
        scratch_shapes=[pltpu.VMEM((H + 2, W + 2, Cmid), jnp.bfloat16)],
        compiler_params=pltpu.CompilerParams(
            dimension_semantics=("parallel",)),
    )(x1, x2, x4, x6, w1_bf16, b1, w2_flat, b2)


def aff_forward(x1, x2, x4, x6, params):
    """Public entry point: NCHW in / NCHW out (PyTorch convention)."""
    xs = [jnp.transpose(a, (0, 2, 3, 1)) for a in (x1, x2, x4, x6)]
    y = aff_forward_nhwc(*xs, params)
    return jnp.transpose(y, (0, 3, 1, 2))


# --------------------------------------------------------------------------
# Deterministic parameter init (shapes follow the PyTorch module)
# --------------------------------------------------------------------------
def _uniform(key, shape, fan_in):
    bound = 1.0 / math.sqrt(fan_in)
    return jax.random.uniform(key, shape, jnp.float32, -bound, bound)


def init_aff_params(key, in_channel, out_channel):
    k = jax.random.split(key, 4)
    w1 = _uniform(k[0], (in_channel, out_channel), in_channel)              # 1x1
    b1 = _uniform(k[1], (1, out_channel), in_channel)
    w2 = _uniform(k[2], (3, 3, out_channel, out_channel), 9 * out_channel)  # HWIO
    b2 = _uniform(k[3], (1, out_channel), 9 * out_channel)
    return {"w1": w1, "b1": b1, "w2": w2, "b2": b2}


# --------------------------------------------------------------------------
# Pure-JAX reference (fp32, for correctness check)
# --------------------------------------------------------------------------
def aff_forward_ref(x1, x2, x4, x6, params):
    xs = [jnp.transpose(a, (0, 2, 3, 1)) for a in (x1, x2, x4, x6)]
    x = jnp.concatenate(xs, axis=-1)
    y = jnp.einsum("nhwc,cd->nhwd", x, params["w1"],
                   precision=lax.Precision.HIGHEST)
    y = jax.nn.relu(y + params["b1"].reshape(1, 1, 1, -1))
    o = lax.conv_general_dilated(
        y, params["w2"], (1, 1), "SAME",
        dimension_numbers=("NHWC", "HWIO", "NHWC"),
        precision=lax.Precision.HIGHEST)
    o = o + params["b2"].reshape(1, 1, 1, -1)
    return jnp.transpose(o, (0, 3, 1, 2))


# --------------------------------------------------------------------------
if __name__ == "__main__":
    N, H, W = 2, 16, 16
    c_each = 32                       # channels per branch
    in_channel = 4 * c_each           # 128 after concat
    out_channel = 32

    key = jax.random.PRNGKey(0)
    k1, k2, k4, k6, kp = jax.random.split(key, 5)
    x1 = jax.random.normal(k1, (N, c_each, H, W), jnp.float32)   # NCHW
    x2 = jax.random.normal(k2, (N, c_each, H, W), jnp.float32)
    x4 = jax.random.normal(k4, (N, c_each, H, W), jnp.float32)
    x6 = jax.random.normal(k6, (N, c_each, H, W), jnp.float32)
    params = init_aff_params(kp, in_channel, out_channel)

    out = aff_forward(x1, x2, x4, x6, params)
    out = jax.block_until_ready(out)
    assert out.shape == (N, out_channel, H, W) and out.dtype == jnp.float32

    ref = aff_forward_ref(x1, x2, x4, x6, params)
    max_err = float(jnp.max(jnp.abs(out - ref)))
    # bf16 MXU operands with f32 accumulation -> loose tolerance vs fp32 ref.
    assert jnp.allclose(out, ref, rtol=3e-2, atol=3e-2), f"max_err={max_err}"

    print("KERNEL_OK")
</pallas_src>

<mosaic_0001>
module attributes {stable_mosaic.version = 11 : i64} {
  func.func @_aff_kernel(%arg0: i32, %arg1: memref<1x16x16x32xf32, #tpu.memory_space<vmem>>, %arg2: memref<1x16x16x32xf32, #tpu.memory_space<vmem>>, %arg3: memref<1x16x16x32xf32, #tpu.memory_space<vmem>>, %arg4: memref<1x16x16x32xf32, #tpu.memory_space<vmem>>, %arg5: memref<128x32xbf16, #tpu.memory_space<vmem>>, %arg6: memref<1x32xf32, #tpu.memory_space<vmem>>, %arg7: memref<288x32xbf16, #tpu.memory_space<vmem>>, %arg8: memref<1x32xf32, #tpu.memory_space<vmem>>, %arg9: memref<1x16x16x32xf32, #tpu.memory_space<vmem>>, %arg10: memref<18x18x32xbf16, #tpu.memory_space<vmem>>) attributes {dimension_semantics = [#tpu.dimension_semantics<parallel>], iteration_bounds = array<i64: 2>, scalar_prefetch = 0 : i64, scratch_operands = 1 : i64, tpu.core_type = #tpu.core_type<tc>, window_params = [{transform_indices = @transform_0, window_bounds = array<i64: 1, 16, 16, 32>}, {transform_indices = @transform_1, window_bounds = array<i64: 1, 16, 16, 32>}, {transform_indices = @transform_2, window_bounds = array<i64: 1, 16, 16, 32>}, {transform_indices = @transform_3, window_bounds = array<i64: 1, 16, 16, 32>}, {pipeline_mode = #tpu.pipeline_mode<synchronous>, transform_indices = @transform_4, window_bounds = array<i64: 128, 32>}, {pipeline_mode = #tpu.pipeline_mode<synchronous>, transform_indices = @transform_5, window_bounds = array<i64: 1, 32>}, {pipeline_mode = #tpu.pipeline_mode<synchronous>, transform_indices = @transform_6, window_bounds = array<i64: 288, 32>}, {pipeline_mode = #tpu.pipeline_mode<synchronous>, transform_indices = @transform_7, window_bounds = array<i64: 1, 32>}, {transform_indices = @transform_8, window_bounds = array<i64: 1, 16, 16, 32>}]} {
    %c0 = arith.constant 0 : index
    %c0_0 = arith.constant 0 : index
    %c0_1 = arith.constant 0 : index
    %c0_2 = arith.constant 0 : index
    %0 = vector.load %arg1[%c0, %c0_0, %c0_1, %c0_2] : memref<1x16x16x32xf32, #tpu.memory_space<vmem>>, vector<1x16x16x32xf32>
    %1 = vector.shape_cast %0 : vector<1x16x16x32xf32> to vector<16x16x32xf32>
    %2 = vector.shape_cast %1 : vector<16x16x32xf32> to vector<256x32xf32>
    %3 = arith.truncf %2 : vector<256x32xf32> to vector<256x32xbf16>
    %c0_3 = arith.constant 0 : index
    %c0_4 = arith.constant 0 : index
    %c0_5 = arith.constant 0 : index
    %c0_6 = arith.constant 0 : index
    %4 = vector.load %arg2[%c0_3, %c0_4, %c0_5, %c0_6] : memref<1x16x16x32xf32, #tpu.memory_space<vmem>>, vector<1x16x16x32xf32>
    %5 = vector.shape_cast %4 : vector<1x16x16x32xf32> to vector<16x16x32xf32>
    %6 = vector.shape_cast %5 : vector<16x16x32xf32> to vector<256x32xf32>
    %7 = arith.truncf %6 : vector<256x32xf32> to vector<256x32xbf16>
    %c0_7 = arith.constant 0 : index
    %c0_8 = arith.constant 0 : index
    %c0_9 = arith.constant 0 : index
    %c0_10 = arith.constant 0 : index
    %8 = vector.load %arg3[%c0_7, %c0_8, %c0_9, %c0_10] : memref<1x16x16x32xf32, #tpu.memory_space<vmem>>, vector<1x16x16x32xf32>
    %9 = vector.shape_cast %8 : vector<1x16x16x32xf32> to vector<16x16x32xf32>
    %10 = vector.shape_cast %9 : vector<16x16x32xf32> to vector<256x32xf32>
    %11 = arith.truncf %10 : vector<256x32xf32> to vector<256x32xbf16>
    %c0_11 = arith.constant 0 : index
    %c0_12 = arith.constant 0 : index
    %c0_13 = arith.constant 0 : index
    %c0_14 = arith.constant 0 : index
    %12 = vector.load %arg4[%c0_11, %c0_12, %c0_13, %c0_14] : memref<1x16x16x32xf32, #tpu.memory_space<vmem>>, vector<1x16x16x32xf32>
    %13 = vector.shape_cast %12 : vector<1x16x16x32xf32> to vector<16x16x32xf32>
    %14 = vector.shape_cast %13 : vector<16x16x32xf32> to vector<256x32xf32>
    %15 = arith.truncf %14 : vector<256x32xf32> to vector<256x32xbf16>
    %16 = tpu.concatenate %3, %7, %11, %15 in 1 : vector<256x32xbf16>, vector<256x32xbf16>, vector<256x32xbf16>, vector<256x32xbf16> -> vector<256x128xbf16>
    %c0_15 = arith.constant 0 : index
    %c0_16 = arith.constant 0 : index
    %17 = vector.load %arg5[%c0_15, %c0_16] : memref<128x32xbf16, #tpu.memory_space<vmem>>, vector<128x32xbf16>
    %cst = arith.constant dense<0.000000e+00> : vector<256x32xf32>
    %18 = tpu.matmul %16, %17, %cst {dimension_numbers = #tpu.dot_dimension_numbers<[1], [0], [0], [1], [0, 0, 1, 1], [], []>} : vector<256x128xbf16>, vector<128x32xbf16>, vector<256x32xf32> -> vector<256x32xf32>
    %c0_17 = arith.constant 0 : index
    %c0_18 = arith.constant 0 : index
    %19 = vector.load %arg6[%c0_17, %c0_18] : memref<1x32xf32, #tpu.memory_space<vmem>>, vector<1x32xf32>
    %20 = vector.broadcast %19 : vector<1x32xf32> to vector<256x32xf32>
    %21 = arith.addf %18, %20 : vector<256x32xf32>
    %cst_19 = arith.constant 0.000000e+00 : f32
    %22 = vector.broadcast %cst_19 : f32 to vector<256x32xf32>
    %23 = arith.maximumf %21, %22 : vector<256x32xf32>
    %cst_20 = arith.constant 0.000000e+00 : bf16
    %24 = vector.broadcast %cst_20 : bf16 to vector<18x18x32xbf16>
    %c0_21 = arith.constant 0 : index
    %c0_22 = arith.constant 0 : index
    %c0_23 = arith.constant 0 : index
    %25 = vector.load %arg10[%c0_21, %c0_22, %c0_23] : memref<18x18x32xbf16, #tpu.memory_space<vmem>>, vector<18x18x32xbf16>
    tpu.vector_store %arg10[%c0_21, %c0_22, %c0_23], %24 {strides = array<i32>} : memref<18x18x32xbf16, #tpu.memory_space<vmem>>, vector<18x18x32xbf16>,
    %26 = vector.shape_cast %23 : vector<256x32xf32> to vector<16x16x32xf32>
    %27 = arith.truncf %26 : vector<16x16x32xf32> to vector<16x16x32xbf16>
    %c1 = arith.constant 1 : index
    %c1_24 = arith.constant 1 : index
    %c0_25 = arith.constant 0 : index
    %28 = vector.load %arg10[%c1, %c1_24, %c0_25] : memref<18x18x32xbf16, #tpu.memory_space<vmem>>, vector<16x16x32xbf16>
    tpu.vector_store %arg10[%c1, %c1_24, %c0_25], %27 {strides = array<i32>} : memref<18x18x32xbf16, #tpu.memory_space<vmem>>, vector<16x16x32xbf16>,
    %c0_26 = arith.constant 0 : index
    %c0_27 = arith.constant 0 : index
    %c0_28 = arith.constant 0 : index
    %29 = vector.load %arg10[%c0_26, %c0_27, %c0_28] : memref<18x18x32xbf16, #tpu.memory_space<vmem>>, vector<16x16x32xbf16>
    %30 = vector.shape_cast %29 : vector<16x16x32xbf16> to vector<256x32xbf16>
    %c0_29 = arith.constant 0 : index
    %c1_30 = arith.constant 1 : index
    %c0_31 = arith.constant 0 : index
    %31 = vector.load %arg10[%c0_29, %c1_30, %c0_31] : memref<18x18x32xbf16, #tpu.memory_space<vmem>>, vector<16x16x32xbf16>
    %32 = vector.shape_cast %31 : vector<16x16x32xbf16> to vector<256x32xbf16>
    %c0_32 = arith.constant 0 : index
    %c2 = arith.constant 2 : index
    %c0_33 = arith.constant 0 : index
    %33 = vector.load %arg10[%c0_32, %c2, %c0_33] : memref<18x18x32xbf16, #tpu.memory_space<vmem>>, vector<16x16x32xbf16>
    %34 = vector.shape_cast %33 : vector<16x16x32xbf16> to vector<256x32xbf16>
    %c1_34 = arith.constant 1 : index
    %c0_35 = arith.constant 0 : index
    %c0_36 = arith.constant 0 : index
    %35 = vector.load %arg10[%c1_34, %c0_35, %c0_36] : memref<18x18x32xbf16, #tpu.memory_space<vmem>>, vector<16x16x32xbf16>
    %36 = vector.shape_cast %35 : vector<16x16x32xbf16> to vector<256x32xbf16>
    %c1_37 = arith.constant 1 : index
    %c1_38 = arith.constant 1 : index
    %c0_39 = arith.constant 0 : index
    %37 = vector.load %arg10[%c1_37, %c1_38, %c0_39] : memref<18x18x32xbf16, #tpu.memory_space<vmem>>, vector<16x16x32xbf16>
    %38 = vector.shape_cast %37 : vector<16x16x32xbf16> to vector<256x32xbf16>
    %c1_40 = arith.constant 1 : index
    %c2_41 = arith.constant 2 : index
    %c0_42 = arith.constant 0 : index
    %39 = vector.load %arg10[%c1_40, %c2_41, %c0_42] : memref<18x18x32xbf16, #tpu.memory_space<vmem>>, vector<16x16x32xbf16>
    %40 = vector.shape_cast %39 : vector<16x16x32xbf16> to vector<256x32xbf16>
    %c2_43 = arith.constant 2 : index
    %c0_44 = arith.constant 0 : index
    %c0_45 = arith.constant 0 : index
    %41 = vector.load %arg10[%c2_43, %c0_44, %c0_45] : memref<18x18x32xbf16, #tpu.memory_space<vmem>>, vector<16x16x32xbf16>
    %42 = vector.shape_cast %41 : vector<16x16x32xbf16> to vector<256x32xbf16>
    %c2_46 = arith.constant 2 : index
    %c1_47 = arith.constant 1 : index
    %c0_48 = arith.constant 0 : index
    %43 = vector.load %arg10[%c2_46, %c1_47, %c0_48] : memref<18x18x32xbf16, #tpu.memory_space<vmem>>, vector<16x16x32xbf16>
    %44 = vector.shape_cast %43 : vector<16x16x32xbf16> to vector<256x32xbf16>
    %c2_49 = arith.constant 2 : index
    %c2_50 = arith.constant 2 : index
    %c0_51 = arith.constant 0 : index
    %45 = vector.load %arg10[%c2_49, %c2_50, %c0_51] : memref<18x18x32xbf16, #tpu.memory_space<vmem>>, vector<16x16x32xbf16>
    %46 = vector.shape_cast %45 : vector<16x16x32xbf16> to vector<256x32xbf16>
    %47 = tpu.concatenate %30, %32, %34, %36, %38, %40, %42, %44, %46 in 1 : vector<256x32xbf16>, vector<256x32xbf16>, vector<256x32xbf16>, vector<256x32xbf16>, vector<256x32xbf16>, vector<256x32xbf16>, vector<256x32xbf16>, vector<256x32xbf16>, vector<256x32xbf16> -> vector<256x288xbf16>
    %c0_52 = arith.constant 0 : index
    %c0_53 = arith.constant 0 : index
    %48 = vector.load %arg7[%c0_52, %c0_53] : memref<288x32xbf16, #tpu.memory_space<vmem>>, vector<288x32xbf16>
    %cst_54 = arith.constant dense<0.000000e+00> : vector<256x32xf32>
    %49 = tpu.matmul %47, %48, %cst_54 {dimension_numbers = #tpu.dot_dimension_numbers<[1], [0], [0], [1], [0, 0, 1, 1], [], []>} : vector<256x288xbf16>, vector<288x32xbf16>, vector<256x32xf32> -> vector<256x32xf32>
    %c0_55 = arith.constant 0 : index
    %c0_56 = arith.constant 0 : index
    %50 = vector.load %arg8[%c0_55, %c0_56] : memref<1x32xf32, #tpu.memory_space<vmem>>, vector<1x32xf32>
    %51 = vector.broadcast %50 : vector<1x32xf32> to vector<256x32xf32>
    %52 = arith.addf %49, %51 : vector<256x32xf32>
    %53 = vector.shape_cast %52 : vector<256x32xf32> to vector<16x16x32xf32>
    %c0_57 = arith.constant 0 : index
    %c0_58 = arith.constant 0 : index
    %c0_59 = arith.constant 0 : index
    %c0_60 = arith.constant 0 : index
    %54 = vector.load %arg9[%c0_57, %c0_58, %c0_59, %c0_60] : memref<1x16x16x32xf32, #tpu.memory_space<vmem>>, vector<1x16x16x32xf32>
    %55 = vector.shape_cast %54 : vector<1x16x16x32xf32> to vector<16x16x32xf32>
    %56 = vector.shape_cast %53 : vector<16x16x32xf32> to vector<1x16x16x32xf32>
    tpu.vector_store %arg9[%c0_57, %c0_58, %c0_59, %c0_60], %56 {strides = array<i32>} : memref<1x16x16x32xf32, #tpu.memory_space<vmem>>, vector<1x16x16x32xf32>,
    return
  }
  func.func @transform_0(%arg0: i32) -> (i32, i32, i32, i32) {
    %c0_i32 = arith.constant 0 : i32
    %c0_i32_0 = arith.constant 0 : i32
    %c0_i32_1 = arith.constant 0 : i32
    %c0_i32_2 = arith.constant 0 : i32
    return %arg0, %c0_i32, %c0_i32_0, %c0_i32_1 : i32, i32, i32, i32
  }
  func.func @transform_1(%arg0: i32) -> (i32, i32, i32, i32) {
    %c0_i32 = arith.constant 0 : i32
    %c0_i32_0 = arith.constant 0 : i32
    %c0_i32_1 = arith.constant 0 : i32
    %c0_i32_2 = arith.constant 0 : i32
    return %arg0, %c0_i32, %c0_i32_0, %c0_i32_1 : i32, i32, i32, i32
  }
  func.func @transform_2(%arg0: i32) -> (i32, i32, i32, i32) {
    %c0_i32 = arith.constant 0 : i32
    %c0_i32_0 = arith.constant 0 : i32
    %c0_i32_1 = arith.constant 0 : i32
    %c0_i32_2 = arith.constant 0 : i32
    return %arg0, %c0_i32, %c0_i32_0, %c0_i32_1 : i32, i32, i32, i32
  }
  func.func @transform_3(%arg0: i32) -> (i32, i32, i32, i32) {
    %c0_i32 = arith.constant 0 : i32
    %c0_i32_0 = arith.constant 0 : i32
    %c0_i32_1 = arith.constant 0 : i32
    %c0_i32_2 = arith.constant 0 : i32
    return %arg0, %c0_i32, %c0_i32_0, %c0_i32_1 : i32, i32, i32, i32
  }
  func.func @transform_4(%arg0: i32) -> (i32, i32) {
    %c0_i32 = arith.constant 0 : i32
    %c0_i32_0 = arith.constant 0 : i32
    %c0_i32_1 = arith.constant 0 : i32
    return %c0_i32, %c0_i32_0 : i32, i32
  }
  func.func @transform_5(%arg0: i32) -> (i32, i32) {
    %c0_i32 = arith.constant 0 : i32
    %c0_i32_0 = arith.constant 0 : i32
    %c0_i32_1 = arith.constant 0 : i32
    return %c0_i32, %c0_i32_0 : i32, i32
  }
  func.func @transform_6(%arg0: i32) -> (i32, i32) {
    %c0_i32 = arith.constant 0 : i32
    %c0_i32_0 = arith.constant 0 : i32
    %c0_i32_1 = arith.constant 0 : i32
    return %c0_i32, %c0_i32_0 : i32, i32
  }
  func.func @transform_7(%arg0: i32) -> (i32, i32) {
    %c0_i32 = arith.constant 0 : i32
    %c0_i32_0 = arith.constant 0 : i32
    %c0_i32_1 = arith.constant 0 : i32
    return %c0_i32, %c0_i32_0 : i32, i32
  }
  func.func @transform_8(%arg0: i32) -> (i32, i32, i32, i32) {
    %c0_i32 = arith.constant 0 : i32
    %c0_i32_0 = arith.constant 0 : i32
    %c0_i32_1 = arith.constant 0 : i32
    %c0_i32_2 = arith.constant 0 : i32
    return %arg0, %c0_i32, %c0_i32_0, %c0_i32_1 : i32, i32, i32, i32
  }
}

</mosaic_0001>

<bundles_post_ra>
// kernel: tpu_custom_call.1
= control target key start
LH: loop header
LB: loop body
LE: loop exit
PB: predicated region body
PF: predicated region fallthrough
CT: control target
= control target key end

     0   :  { %s8826_s0 = inlined_call_operand.hbm [shape: f32[2,16,16,32], index: 0, kind: input, shape index: {}]   ;;  %s8827_s1 = inlined_call_operand.hbm [shape: f32[2,16,16,32], index: 1, kind: input, shape index: {}]   ;;  %s8828_s2 = inlined_call_operand.hbm [shape: f32[2,16,16,32], index: 2, kind: input, shape index: {}]   ;;  %s8829_s3 = inlined_call_operand.hbm [shape: f32[2,16,16,32], index: 3, kind: input, shape index: {}]   ;;  %s8830_s4 = inlined_call_operand.vmem [shape: bf16[128,32], index: 4, kind: input, shape index: {}]   ;;  %s8831_s5 = inlined_call_operand.vmem [shape: f32[1,32], index: 5, kind: input, shape index: {}]   ;;  %s8832_s6 = inlined_call_operand.vmem [shape: bf16[288,32], index: 6, kind: input, shape index: {}]   ;;  %s8833_s7 = inlined_call_operand.vmem [shape: f32[1,32], index: 7, kind: input, shape index: {}]   ;;  %s8834_s8 = inlined_call_operand.hbm [shape: f32[2,16,16,32], index: 8, kind: output, shape index: {}]  }
   0x1   :  { %8865 = sst [smem:[#allocation54_spill]] %s8826_s0 }
   0x2   :  { %8866 = sst [smem:[#allocation55_spill]] %s8827_s1 }
   0x3   :  { %8867 = sst [smem:[#allocation56_spill]] %s8834_s8 }
   0x4   :  { %13 = vsyncpa [#allocation4], 0 }
   0x5   :  { %15 = vsyncpa [#allocation4 + $0x1], 0 }
   0x6   :  { %16 = vsyncpa [#allocation7], 0 }
   0x7   :  { %18 = vsyncpa [#allocation7 + $0x1], 0 }
   0x8   :  { %19 = vsyncpa [#allocation10], 0 }
   0x9   :  { %21 = vsyncpa [#allocation10 + $0x1], 0 }
   0xa   :  { %22 = vsyncpa [#allocation5], 0 }
   0xb   :  { %24 = vsyncpa [#allocation5 + $0x1], 0  ;;  %s6221_s27 = smov 0   ;;  %s6223_s28 = smov 0  }
   0xc   :  { %s6225_s29 = smov 0   ;;  %s6227_s30 = smov 0  }
   0xd LB: > { %8868 = sst [smem:[#allocation16_spill]] %s6149_s27  ;;  %s6242_s9 = sadd.s32 4294967295, %s6161_s30   ;;  %s6161_s30 = sphi %s6227_s30, %s9017_s30   ;;  %s6157_s29 = sphi %s6225_s29, %s9019_s29   ;;  %s6153_s28 = sphi %s6223_s28, %s9021_s28   ;;  %s6149_s27 = sphi %s6221_s27, %s9020_s27  }
   0xe   : > { %8869 = sst [smem:[#allocation17_spill]] %s6157_s29  ;;  %s5231_s10 = sadd.s32 4294967294, %s6161_s30  }
   0xf   : > { %8870 = sst [smem:[#allocation18_spill]] %s6161_s30  ;;  %s6246_s11 = sadd.s32 1, %s6161_s30  }
  0x10   : > { %8871 = sst [smem:[#allocation19_spill]] %s6246_s11  ;;  %s37_s12 = sadd.s32 1, %s6157_s29 }
  0x11   : > { %s34_s13 = ssub.s32 %s6161_s30, %s6246_s11  ;;  %p44_p0 = scmp.ne.s32.totalorder %s6157_s29, %s6153_s28 }
  0x12   : > { %p35_p1 = scmp.eq.s32.totalorder %s34_s13, 0  ;;  %p45_p2 = scmp.eq.s32.totalorder %s6161_s30, 0 }
  0x13   : > { %p50_p3 = scmp.ne.s32.totalorder %s6153_s28, %s6149_s27  ;;  %p51_p4 = scmp.eq.s32.totalorder %s6242_s9, 0 }
  0x14   : > { %s6258_s14 = scalar_select %p35_p1, %s6157_s29, %s37_s12  }
  0x15   : > { %p46_p5 = por %p45_p2, %p44_p0  ;;  %p6260_p6 = por %p51_p4, %p50_p3 }
  0x16   : > { %8872 = sst [smem:[#allocation20_spill]] %s6258_s14  ;;  %p236_p7 = scmp.eq.s32.totalorder %s6242_s9, 1 }
  0x17   : > { %s8873_s15 = scalar_select %p6260_p6, 1, 0 }
  0x18   : > { %p242_p8 = scmp.eq.s32.totalorder %s5231_s10, 1  ;;  %p5827_p10 = scmp.lt.s32.totalorder %s6161_s30, 2 }
  0x19   : > { %p6267_p11 = por %p236_p7, %p44_p0  ;;  %s6276_s18 = sand.u32 1, %s6157_s29  }
  0x1a   : > { %p6271_p12 = por %p242_p8, %p50_p3  ;;  %s6279_s19 = sshll.u32 %s6161_s30, 12 }
  0x1b   : > { %s8874_s16 = scalar_select %p6267_p11, 1, 0 }
  0x1c   : > { %s8875_s17 = scalar_select %p6271_p12, 1, 0 }
  0x1d   : > { %s6282_s20 = sshll.u32 %s6276_s18, 8  ;;  %p6284_p13 = pnand %p5827_p10, %p46_p5 }
  0x1e   : > { %8876 = sst [smem:[#allocation21_spill]] %s8875_s17  ;;  %s295_s22 = sand.u32 1, %s6161_s30  }
  0x1f   : > { %s8878_s1 = sld [smem:[#allocation55_spill]]  ;;  %s299_s26 = scalar_lea.vmem [#allocation6], %s6282_s20 }
  0x20   : > { %s306_s10 = sshll.u32 %s299_s26, 4  ;;  %s6299_s12 = scalar_lea.sflag [#allocation7], %s295_s22  ;;  %s6296_s10 = int_to_ptr.vmem [resolvable:$true] %s306_s10 }
  0x21   : > { %p6305_p2 = pneg %p6284_p13 }
  0x25   : > { %s6293_s25 = scalar_lea.hbm %s8878_s1, %s6279_s19  ;;  %s5982_s26 = scalar_lea.hbm %s8878_s1, 8192 }
  0x26   : > { %s5977_s13 = scalar_lea.hbm %s6293_s25, 4096  ;;  %p5983_p5 = scmp.lt.s32.totalorder %s6293_s25, %s8878_s1 }
  0x27   : > { %p5978_p1 = scmp.ne.s32.totalorder %s6293_s25, %s5977_s13  ;;  %p5984_p7 = scmp.lt.s32.totalorder %s5982_s26, %s5977_s13 }
  0x29   : > { %p5980_p3 = pnand %p6305_p2, %p5978_p1  ;;  %p5985_p8 = por %p5984_p7, %p5983_p5 }
  0x2b   : > { %p5981_p4 = pneg %p5980_p3 }
  0x2d   : > { %p5986_p10 = pnand %p5985_p8, %p5981_p4 }
  0x2f   : > { %5989 = shalt.err (!%p5986_p10)
}
  0x30   : > { %s5990_s22 = scalar_lea.vmem %s6296_s10, 4096  ;;  %s6163_s17 = smov [#allocation6]  }
  0x31   : > { %p5991_p9 = scmp.ne.s32.totalorder %s6296_s10, %s5990_s22  ;;  %s5995_s23 = sshll.u32 %s6163_s17, 4  ;;  %s5996_s23 = int_to_ptr.vmem [resolvable:$false] %s5995_s23 }
  0x32   : > { %s5997_s24 = scalar_lea.vmem %s5996_s23, 8192  ;;  %p5998_p0 = scmp.lt.s32.totalorder %s6296_s10, %s5996_s23 }
  0x33   : > { %p5993_p1 = pnand %p5991_p9, %p6305_p2  ;;  %p5999_p12 = scmp.lt.s32.totalorder %s5997_s24, %s5990_s22 }
  0x35   : > { %p5994_p3 = pneg %p5993_p1  ;;  %p6000_p11 = por %p5999_p12, %p5998_p0 }
  0x37   : > { %p6001_p6 = pnand %p6000_p11, %p5994_p3 }
  0x39   : > { %6004 = shalt.err (!%p6001_p6)
}
  0x3a   : > { %s8841_s29 = smov 128   ;;  %s8843_s11 = smov 8  }
  0x3b   : > { %5816 = dma.hbm_to_vmem [thread:$0]  (!%p6284_p13), %s6293_s25, 4096, %s6296_s10, %s6299_s12, %s8841_s29, %s8841_s29, %s8843_s11  }
  0x3c   : > { %p356_p9 = scmp.lt.s32.totalorder %s6161_s30, 3  ;;  %s8880_s0 = sld [smem:[#allocation54_spill]] }
  0x3d   : > { %p8881_p6 = scmp.ge.s32.totalorder %s6161_s30, 1  ;;  %s278_s23 = scalar_lea.vmem [#allocation3], %s6282_s20 }
  0x3e   : > { %s285_s24 = sshll.u32 %s278_s23, 4  ;;  %s275_s1 = scalar_lea.sflag [#allocation4], %s6276_s18  ;;  %s6345_s24 = int_to_ptr.vmem [resolvable:$true] %s285_s24 }
  0x3f   : > { %p6340_p11 = pnand %p8881_p6, %p356_p9 }
  0x41   : > { %s8882_s22 = scalar_select %p6340_p11, 1, 0 }
  0x42   : > { %s6336_s26 = scalar_lea.hbm %s8880_s0, %s6279_s19  ;;  %s6010_s13 = scalar_lea.hbm %s8880_s0, 8192 }
  0x43   : > { %s6005_s25 = scalar_lea.hbm %s6336_s26, 4096  ;;  %p6011_p5 = scmp.lt.s32.totalorder %s6336_s26, %s8880_s0 }
  0x44   : > { %p6006_p12 = scmp.ne.s32.totalorder %s6336_s26, %s6005_s25  ;;  %p6012_p7 = scmp.lt.s32.totalorder %s6010_s13, %s6005_s25 }
  0x46   : > { %p6008_p0 = pnand %p6006_p12, %p6305_p2  ;;  %p6013_p8 = por %p6012_p7, %p6011_p5 }
  0x48   : > { %p6009_p4 = pneg %p6008_p0 }
  0x4a   : > { %p6014_p10 = pnand %p6013_p8, %p6009_p4 }
  0x4c   : > { %6017 = shalt.err (!%p6014_p10)
}
  0x4d   : > { %s6018_s23 = scalar_lea.vmem %s6345_s24, 4096  ;;  %s6166_s30 = smov [#allocation3]  }
  0x4e   : > { %p6019_p1 = scmp.ne.s32.totalorder %s6345_s24, %s6018_s23  ;;  %s6023_s10 = sshll.u32 %s6166_s30, 4  ;;  %s6024_s10 = int_to_ptr.vmem [resolvable:$false] %s6023_s10 }
  0x4f   : > { %s6025_s17 = scalar_lea.vmem %s6024_s10, 8192  ;;  %p6026_p6 = scmp.lt.s32.totalorder %s6345_s24, %s6024_s10 }
  0x50   : > { %p6021_p3 = pnand %p6019_p1, %p6305_p2  ;;  %p6027_p12 = scmp.lt.s32.totalorder %s6025_s17, %s6018_s23 }
  0x52   : > { %p6022_p9 = pneg %p6021_p3  ;;  %p6028_p0 = por %p6027_p12, %p6026_p6 }
  0x54   : > { %p6029_p11 = pnand %p6028_p0, %p6022_p9 }
  0x56   : > { %6032 = shalt.err (!%p6029_p11)
}
  0x57   : > { %s8883_s29 = smov 8   ;;  %s8884_s11 = smov 128  }
  0x58   : > { %5813 = dma.hbm_to_vmem [thread:$0]  (!%p6284_p13), %s6336_s26, 4096, %s6345_s24, %s275_s1, %s8884_s11, %s8884_s11, %s8883_s29  }
  0x59   : > { %s6375_s13 = scalar_lea.hbm %s8828_s2, %s6279_s19  ;;  %s320_s23 = scalar_lea.vmem [#allocation8], %s6282_s20 }
  0x5a   : > { %s327_s10 = sshll.u32 %s320_s23, 4  ;;  %s6033_s17 = scalar_lea.hbm %s6375_s13, 4096  ;;  %s328_s10 = int_to_ptr.vmem [resolvable:$true] %s327_s10 }
  0x5b   : > { %p6034_p11 = scmp.ne.s32.totalorder %s6375_s13, %s6033_s17  ;;  %s6038_s1 = scalar_lea.hbm %s8828_s2, 8192 }
  0x5c   : > { %p6039_p7 = scmp.lt.s32.totalorder %s6375_s13, %s8828_s2  ;;  %p6040_p8 = scmp.lt.s32.totalorder %s6038_s1, %s6033_s17 }
  0x5d   : > { %p6036_p4 = pnand %p6034_p11, %p6305_p2 }
  0x5e   : > { %p6041_p10 = por %p6040_p8, %p6039_p7 }
  0x5f   : > { %p6037_p5 = pneg %p6036_p4 }
  0x61   : > { %p6042_p1 = pnand %p6041_p10, %p6037_p5 }
  0x63   : > { %6045 = shalt.err (!%p6042_p1)
}
  0x64   : > { %s6046_s25 = scalar_lea.vmem %s328_s10, 4096  ;;  %s6167_s30 = smov [#allocation8]  }
  0x65   : > { %p6047_p3 = scmp.ne.s32.totalorder %s328_s10, %s6046_s25  ;;  %s6051_s23 = sshll.u32 %s6167_s30, 4  ;;  %s6052_s23 = int_to_ptr.vmem [resolvable:$false] %s6051_s23 }
  0x66   : > { %s6053_s8 = scalar_lea.vmem %s6052_s23, 8192  ;;  %p6054_p12 = scmp.lt.s32.totalorder %s328_s10, %s6052_s23 }
  0x67   : > { %p6049_p9 = pnand %p6047_p3, %p6305_p2  ;;  %p6055_p0 = scmp.lt.s32.totalorder %s6053_s8, %s6046_s25 }
  0x69   : > { %p6050_p6 = pneg %p6049_p9  ;;  %p6056_p11 = por %p6055_p0, %p6054_p12 }
  0x6b   : > { %p6057_p4 = pnand %p6056_p11, %p6050_p6 }
  0x6d   : > { %6060 = shalt.err (!%p6057_p4)
}
  0x6e   : > { %5819 = dma.hbm_to_vmem [thread:$0]  (!%p6284_p13), %s6375_s13, 4096, %s328_s10, %s6299_s12, %s8884_s11, %s8884_s11, %s8883_s29  }
  0x6f   : > { %s6402_s17 = scalar_lea.hbm %s8829_s3, %s6279_s19  ;;  %s341_s8 = scalar_lea.vmem [#allocation9], %s6282_s20 }
  0x70   : > { %s348_s1 = sshll.u32 %s341_s8, 4  ;;  %s338_s26 = scalar_lea.sflag [#allocation10], %s6276_s18  ;;  %s6405_s1 = int_to_ptr.vmem [resolvable:$true] %s348_s1 }
  0x71   : > { %s6061_s24 = scalar_lea.hbm %s6402_s17, 4096  ;;  %s6066_s13 = scalar_lea.hbm %s8829_s3, 8192 }
  0x72   : > { %p6062_p5 = scmp.ne.s32.totalorder %s6402_s17, %s6061_s24  ;;  %p6067_p10 = scmp.lt.s32.totalorder %s6402_s17, %s8829_s3 }
  0x73   : > { %p6068_p1 = scmp.lt.s32.totalorder %s6066_s13, %s6061_s24 }
  0x74   : > { %p6064_p7 = pnand %p6062_p5, %p6305_p2 }
  0x75   : > { %p6069_p3 = por %p6068_p1, %p6067_p10 }
  0x76   : > { %p6065_p8 = pneg %p6064_p7 }
  0x78   : > { %p6070_p9 = pnand %p6069_p3, %p6065_p8 }
  0x7a   : > { %6073 = shalt.err (!%p6070_p9)
}
  0x7b   : > { %s6074_s18 = scalar_lea.vmem %s6405_s1, 4096  ;;  %s6168_s20 = smov [#allocation9]  }
  0x7c   : > { %p6075_p6 = scmp.ne.s32.totalorder %s6405_s1, %s6074_s18  ;;  %s6079_s30 = sshll.u32 %s6168_s20, 4  ;;  %s6080_s30 = int_to_ptr.vmem [resolvable:$false] %s6079_s30 }
  0x7d   : > { %s6081_s23 = scalar_lea.vmem %s6080_s30, 8192  ;;  %p6082_p11 = scmp.lt.s32.totalorder %s6405_s1, %s6080_s30 }
  0x7e   : > { %p6077_p12 = pnand %p6075_p6, %p6305_p2  ;;  %p6083_p4 = scmp.lt.s32.totalorder %s6081_s23, %s6074_s18 }
  0x80   : > { %p6078_p0 = pneg %p6077_p12  ;;  %p6084_p5 = por %p6083_p4, %p6082_p11 }
  0x82   : > { %p6085_p7 = pnand %p6084_p5, %p6078_p0 }
  0x84   : > { %6088 = shalt.err (!%p6085_p7)
}
  0x85   : > { %5822 = dma.hbm_to_vmem [thread:$0]  (!%p6284_p13), %s6402_s17, 4096, %s6405_s1, %s338_s26, %s8884_s11, %s8884_s11, %s8883_s29  }
  0x86   : > { %p8885_p2 = scmp.ne.s32.totalorder %s8882_s22, 0 }
  0x88   : > { %360 = sbr.rel (%p8885_p2) target bundleno = 1164 (0x48c), region = 52 }
  0x8d   : > { %s6434_s14 = sand.u32 1, %s6153_s28   ;;  %p8886_p8 = scmp.ne.s32.totalorder %s8873_s15, 0 }
  0x8e   : > { %s6437_s0 = sshll.u32 %s6434_s14, 8  ;;  %s363_s27 = scalar_lea.sflag [#allocation4], %s6434_s14 }
  0x8f   : > { %s6441_s21 = scalar_lea.vmem [#allocation3], %s6437_s0 }
  0x90   : > { %6132 = dma.done.wait (%p8886_p8), %s363_s27, 4096  }
  0x91   : > { %6134 = vsyncadd (%p8886_p8), %s363_s27, 4294963200  ;;  %s371_s22 = sand.u32 1, %s6242_s9   ;;  %s6449_s11 = scalar_lea.vmem [#allocation6], %s6437_s0 }
  0x92   : > { %s372_s29 = scalar_lea.sflag [#allocation7], %s371_s22 }
  0x93   : > { %6136 = dma.done.wait (%p8886_p8), %s372_s29, 8192  }
  0x94   : > { %6138 = vsyncadd (%p8886_p8), %s372_s29, 4294959104  ;;  %s6456_s17 = scalar_lea.vmem [#allocation8], %s6437_s0  ;;  %s390_s8 = scalar_lea.sflag [#allocation10], %s6434_s14 }
  0x95   : > { %s6460_s1 = scalar_lea.vmem [#allocation9], %s6437_s0 }
  0x96   : > { %6140 = dma.done.wait (%p8886_p8), %s390_s8, 4096  }
  0x97   : > { %6142 = vsyncadd (%p8886_p8), %s390_s8, 4294963200  ;;  %v538_v0 = vld [vmem:[%s6456_s17] sm:$0xff]  ;;  %v539_v1 = vld [vmem:[%s6456_s17 + $0x8] sm:$0xff]  ;;  %s6169_s15 = smov 64   ;;  %s6170_s26 = smov 32   ;;  %vm778_vm0 = vcmask 261120  }
  0x98   : > { %v490_v2 = vld [vmem:[%s6449_s11] sm:$0xff]  ;;  %v570_v3 = vpack.c.bf16 %v539_v1, %v538_v0  ;;  %v491_v4 = vld [vmem:[%s6449_s11 + $0x8] sm:$0xff]  ;;  %v540_v5 = vld [vmem:[%s6456_s17 + $0x10] sm:$0xff]  ;;  %s6171_s24 = smov 96   ;;  %vm827_vm1 = vcmask 523264   ;;  %vm860_vm2 = vcmask 785408  }
  0x99   : > { %v541_v6 = vld [vmem:[%s6456_s17 + $0x18] sm:$0xff]  ;;  %v522_v7 = vpack.c.bf16 %v491_v4, %v490_v2  ;;  %v492_v8 = vld [vmem:[%s6449_s11 + $0x10] sm:$0xff]  ;;  %v586_v14 = vld [vmem:[%s6460_s1] sm:$0xff]  ;;  %vm1173_vm3 = vcmask 257024   ;;  %vm1176_vm4 = vcmask 253952   ;;  %vm2265_vm8 = vcmask 1042432  }
  0x9a   : > { %v493_v9 = vld [vmem:[%s6449_s11 + $0x18] sm:$0xff]  ;;  %698 = vrot.lane.b32.xlu1 %v570_v3, %s6169_s15  ;;  %v571_v10 = vpack.c.bf16 %v541_v6, %v540_v5  ;;  %v588_v12 = vld [vmem:[%s6460_s1 + $0x10] sm:$0xff]  ;;  %v587_v15 = vld [vmem:[%s6460_s1 + $0x8] sm:$0xff]  ;;  %vm1814_vm5 = vsmask.f32 3328  ;;  %vm2266_vm9 = vcmask 1046532  }
  0x9b   : > { %650 = vrot.lane.b32.xlu0 %v522_v7, %s6170_s26  ;;  %v523_v11 = vpack.c.bf16 %v493_v9, %v492_v8  ;;  %v589_v13 = vld [vmem:[%s6460_s1 + $0x18] sm:$0xff]  ;;  %v618_v17 = vpack.c.bf16 %v587_v15, %v586_v14  ;;  %v496_v18 = vld [vmem:[%s6449_s11 + $0x30] sm:$0xff]  ;;  %v494_v20 = vld [vmem:[%s6449_s11 + $0x20] sm:$0xff]  ;;  %vm1815_vm6 = vsmask.f32 7440  ;;  %s9010_s22 = sld [smem:[#allocation56_spill]] }
  0x9c   : > { %v619_v16 = vpack.c.bf16 %v589_v13, %v588_v12  ;;  %v497_v19 = vld [vmem:[%s6449_s11 + $0x38] sm:$0xff]  ;;  %v495_v21 = vld [vmem:[%s6449_s11 + $0x28] sm:$0xff]  ;;  %v544_v24 = vld [vmem:[%s6456_s17 + $0x30] sm:$0xff]  ;;  %vm1650_vm11 = vsmask.f32 7938  ;;  %s5079_s8 = scalar_lea.sflag [#allocation5], %s6434_s14 }
  0x9d   : > { %v525_v22 = vpack.c.bf16 %v497_v19, %v496_v18  ;;  %v524_v23 = vpack.c.bf16 %v495_v21, %v494_v20  ;;  %v545_v25 = vld [vmem:[%s6456_s17 + $0x38] sm:$0xff]  ;;  %v542_v26 = vld [vmem:[%s6456_s17 + $0x20] sm:$0xff]  ;;  %v543_v27 = vld [vmem:[%s6456_s17 + $0x28] sm:$0xff]  ;;  %vm1325_vm13 = vsmask.f32 256  ;;  %p9011_p10 = scmp.ne.s32.totalorder %s8874_s16, 0 }
  0x9e   : > { %700 = vrot.lane.b32.xlu1 %v571_v10, %s6169_s15  ;;  %v573_v28 = vpack.c.bf16 %v545_v25, %v544_v24  ;;  %v572_v29 = vpack.c.bf16 %v543_v27, %v542_v26  ;;  %v592_v30 = vld [vmem:[%s6460_s1 + $0x30] sm:$0xff]  ;;  %v593_v31 = vld [vmem:[%s6460_s1 + $0x38] sm:$0xff]  ;;  %v590_v32 = vld [vmem:[%s6460_s1 + $0x20] sm:$0xff]  ;;  %vm1326_vm14 = vsmask.f32 4368  ;;  %s6173_s25 = smov [#allocation11]  }
  0x9f   : > { %652 = vrot.lane.b32.xlu0 %v523_v11, %s6170_s26  ;;  %v591_v33 = vld [vmem:[%s6460_s1 + $0x28] sm:$0xff]  ;;  %v621_v34 = vpack.c.bf16 %v593_v31, %v592_v30  ;;  %v500_v36 = vld [vmem:[%s6449_s11 + $0x50] sm:$0xff]  ;;  %v501_v37 = vld [vmem:[%s6449_s11 + $0x58] sm:$0xff]  ;;  %s6093_s12 = sshll.u32 %s6173_s25, 4  ;;  %s6094_s12 = int_to_ptr.vmem [resolvable:$false] %s6093_s12 }
  0xa0   : > { %v620_v35 = vpack.c.bf16 %v591_v33, %v590_v32  ;;  %v498_v38 = vld [vmem:[%s6449_s11 + $0x40] sm:$0xff]  ;;  %v499_v39 = vld [vmem:[%s6449_s11 + $0x48] sm:$0xff]  ;;  %v527_v40 = vpack.c.bf16 %v501_v37, %v500_v36  ;;  %v548_v43 = vld [vmem:[%s6456_s17 + $0x50] sm:$0xff]  ;;  %s6095_s13 = scalar_lea.vmem %s6094_s12, 8192 }
  0xa1   : > { %v546_v41 = vld [vmem:[%s6456_s17 + $0x40] sm:$0xff]  ;;  %v547_v42 = vld [vmem:[%s6456_s17 + $0x48] sm:$0xff]  ;;  %v549_v44 = vld [vmem:[%s6456_s17 + $0x58] sm:$0xff]  ;;  %v526_v45 = vpack.c.bf16 %v499_v39, %v498_v38 }
  0xa2   : > { %748 = vrot.lane.b32.xlu1 %v619_v16, %s6171_s24  ;;  %v5869_v46 = vld [vmem:[%s8830_s4 + $0x38] sm:$0xff]   ;;  %v5870_v47 = vld [vmem:[%s8830_s4 + $0x30] sm:$0xff]   ;;  %v575_v48 = vpack.c.bf16 %v549_v44, %v548_v43  ;;  %v574_v50 = vpack.c.bf16 %v547_v42, %v546_v41  ;;  %v596_v51 = vld [vmem:[%s6460_s1 + $0x50] sm:$0xff] }
  0xa3   : > { %746 = vrot.lane.b32.xlu0 %v618_v17, %s6171_s24  ;;  %5716 = vmatprep.subr.bf16.mxu0 %v5869_v46  ;;  %v594_v49 = vld [vmem:[%s6460_s1 + $0x40] sm:$0xff]  ;;  %v597_v52 = vld [vmem:[%s6460_s1 + $0x58] sm:$0xff]  ;;  %v5871_v53 = vld [vmem:[%s8830_s4 + $0x28] sm:$0xff]  }
  0xa4   : > { %5717 = vmatpush3.bf16.msra.mxu0 %v5869_v46  ;;  %v595_v54 = vld [vmem:[%s6460_s1 + $0x48] sm:$0xff]  ;;  %v623_v55 = vpack.c.bf16 %v597_v52, %v596_v51  ;;  %v504_v56 = vld [vmem:[%s6449_s11 + $0x70] sm:$0xff]  ;;  %v505_v58 = vld [vmem:[%s6449_s11 + $0x78] sm:$0xff] }
  0xa5   : > { %5718 = vmatprep.subr.bf16.mxu0 %v5870_v47  ;;  %v622_v57 = vpack.c.bf16 %v595_v54, %v594_v49  ;;  %v5872_v59 = vld [vmem:[%s8830_s4 + $0x20] sm:$0xff]   ;;  %v502_v60 = vld [vmem:[%s6449_s11 + $0x60] sm:$0xff]  ;;  %v529_v62 = vpack.c.bf16 %v505_v58, %v504_v56  ;;  %v552_v63 = vld [vmem:[%s6456_s17 + $0x70] sm:$0xff] }
  0xa6   : > { %656 = vrot.lane.b32.xlu1 %v525_v22, %s6170_s26  ;;  %v503_v61 = vld [vmem:[%s6449_s11 + $0x68] sm:$0xff]  ;;  %v553_v0 = vld [vmem:[%s6456_s17 + $0x78] sm:$0xff]  ;;  %v5873_v2 = vld [vmem:[%s8830_s4 + $0x18] sm:$0xff]  }
  0xa7   : > { %654 = vrot.lane.b32.xlu0 %v524_v23, %s6170_s26  ;;  %v528_v1 = vpack.c.bf16 %v503_v61, %v502_v60  ;;  %v550_v3 = vld [vmem:[%s6456_s17 + $0x60] sm:$0xff]  ;;  %v551_v4 = vld [vmem:[%s6456_s17 + $0x68] sm:$0xff]  ;;  %v577_v5 = vpack.c.bf16 %v553_v0, %v552_v63  ;;  %v600_v7 = vld [vmem:[%s6460_s1 + $0x70] sm:$0xff] }
  0xa8   : > { %5719 = vmatpush3.bf16.msra.mxu0 %v5870_v47  ;;  %v576_v6 = vpack.c.bf16 %v551_v4, %v550_v3  ;;  %v601_v8 = vld [vmem:[%s6460_s1 + $0x78] sm:$0xff]  ;;  %v598_v10 = vld [vmem:[%s6460_s1 + $0x60] sm:$0xff]  ;;  %v599_v11 = vld [vmem:[%s6460_s1 + $0x68] sm:$0xff] }
  0xa9   : > { %5720 = vmatprep.subr.bf16.mxu0 %v5871_v53  ;;  %v5874_v9 = vld [vmem:[%s8830_s4 + $0x10] sm:$0xff]   ;;  %v625_v12 = vpack.c.bf16 %v601_v8, %v600_v7  ;;  %v624_v13 = vpack.c.bf16 %v599_v11, %v598_v10  ;;  %v508_v14 = vld [vmem:[%s6449_s11 + $0x90] sm:$0xff]  ;;  %v506_v17 = vld [vmem:[%s6449_s11 + $0x80] sm:$0xff] }
  0xaa   : > { %704 = vrot.lane.b32.xlu1 %v573_v28, %s6169_s15  ;;  %v509_v15 = vld [vmem:[%s6449_s11 + $0x98] sm:$0xff]  ;;  %v5875_v16 = vld [vmem:[%s8830_s4 + $0x8] sm:$0xff]   ;;  %v507_v18 = vld [vmem:[%s6449_s11 + $0x88] sm:$0xff] }
  0xab   : > { %702 = vrot.lane.b32.xlu0 %v572_v29, %s6169_s15  ;;  %v556_v19 = vld [vmem:[%s6456_s17 + $0x90] sm:$0xff]  ;;  %v557_v20 = vld [vmem:[%s6456_s17 + $0x98] sm:$0xff]  ;;  %v5876_v21 = vld [vmem:[%s8830_s4] sm:$0xff]   ;;  %v531_v22 = vpack.c.bf16 %v509_v15, %v508_v14  ;;  %v530_v25 = vpack.c.bf16 %v507_v18, %v506_v17 }
  0xac   : > { %5721 = vmatpush3.bf16.msra.mxu0 %v5871_v53  ;;  %v554_v23 = vld [vmem:[%s6456_s17 + $0x80] sm:$0xff]  ;;  %v555_v24 = vld [vmem:[%s6456_s17 + $0x88] sm:$0xff]  ;;  %v579_v26 = vpack.c.bf16 %v557_v20, %v556_v19  ;;  %v604_v29 = vld [vmem:[%s6460_s1 + $0x90] sm:$0xff] }
  0xad   : > { %5722 = vmatprep.subr.bf16.mxu0 %v5872_v59  ;;  %v602_v27 = vld [vmem:[%s6460_s1 + $0x80] sm:$0xff]  ;;  %v603_v28 = vld [vmem:[%s6460_s1 + $0x88] sm:$0xff]  ;;  %v605_v30 = vld [vmem:[%s6460_s1 + $0x98] sm:$0xff]  ;;  %v578_v31 = vpack.c.bf16 %v555_v24, %v554_v23 }
  0xae   : > { %752 = vrot.lane.b32.xlu1 %v621_v34, %s6171_s24  ;;  %v512_v32 = vld [vmem:[%s6449_s11 + $0xb0] sm:$0xff]  ;;  %v513_v33 = vld [vmem:[%s6449_s11 + $0xb8] sm:$0xff]  ;;  %v627_v34 = vpack.c.bf16 %v605_v30, %v604_v29  ;;  %v511_v36 = vld [vmem:[%s6449_s11 + $0xa8] sm:$0xff]  ;;  %v626_v37 = vpack.c.bf16 %v603_v28, %v602_v27 }
  0xaf   : > { %750 = vrot.lane.b32.xlu0 %v620_v35, %s6171_s24  ;;  %v510_v35 = vld [vmem:[%s6449_s11 + $0xa0] sm:$0xff]  ;;  %v533_v38 = vpack.c.bf16 %v513_v33, %v512_v32  ;;  %v561_v41 = vld [vmem:[%s6456_s17 + $0xb8] sm:$0xff]  ;;  %v559_v43 = vld [vmem:[%s6456_s17 + $0xa8] sm:$0xff] }
  0xb0   : > { %5723 = vmatpush3.bf16.msra.mxu0 %v5872_v59  ;;  %v532_v39 = vpack.c.bf16 %v511_v36, %v510_v35  ;;  %v558_v42 = vld [vmem:[%s6456_s17 + $0xa0] sm:$0xff]  ;;  %v608_v46 = vld [vmem:[%s6460_s1 + $0xb0] sm:$0xff]  ;;  %v609_v47 = vld [vmem:[%s6460_s1 + $0xb8] sm:$0xff] }
  0xb1   : > { %5724 = vmatprep.subr.bf16.mxu0 %v5873_v2  ;;  %v607_v49 = vld [vmem:[%s6460_s1 + $0xa8] sm:$0xff]  ;;  %v516_v52 = vld [vmem:[%s6449_s11 + $0xd0] sm:$0xff]  ;;  %v517_v53 = vld [vmem:[%s6449_s11 + $0xd8] sm:$0xff] }
  0xb2   : > { %660 = vrot.lane.b32.xlu1 %v527_v40, %s6170_s26  ;;  %v560_v40 = vld [vmem:[%s6456_s17 + $0xb0] sm:$0xff]  ;;  %v514_v54 = vld [vmem:[%s6449_s11 + $0xc0] sm:$0xff]  ;;  %v535_v56 = vpack.c.bf16 %v517_v53, %v516_v52  ;;  %v565_v59 = vld [vmem:[%s6456_s17 + $0xd8] sm:$0xff] }
  0xb3   : > { %658 = vrot.lane.b32.xlu0 %v526_v45, %s6170_s26  ;;  %v581_v44 = vpack.c.bf16 %v561_v41, %v560_v40  ;;  %v580_v45 = vpack.c.bf16 %v559_v43, %v558_v42  ;;  %v564_v58 = vld [vmem:[%s6456_s17 + $0xd0] sm:$0xff]  ;;  %v562_v60 = vld [vmem:[%s6456_s17 + $0xc0] sm:$0xff]  ;;  %v563_v61 = vld [vmem:[%s6456_s17 + $0xc8] sm:$0xff] }
  0xb4   : > { %5725 = vmatpush3.bf16.msra.mxu0 %v5873_v2  ;;  %v582_v63 = vpack.c.bf16 %v563_v61, %v562_v60  ;;  %v612_v0 = vld [vmem:[%s6460_s1 + $0xd0] sm:$0xff]  ;;  %v610_v2 = vld [vmem:[%s6460_s1 + $0xc0] sm:$0xff]  ;;  %v611_v3 = vld [vmem:[%s6460_s1 + $0xc8] sm:$0xff] }
  0xb5   : > { %5726 = vmatprep.subr.bf16.mxu0 %v5874_v9  ;;  %v521_v7 = vld [vmem:[%s6449_s11 + $0xf8] sm:$0xff]  ;;  %v518_v8 = vld [vmem:[%s6449_s11 + $0xe0] sm:$0xff]  ;;  %v567_v15 = vld [vmem:[%s6456_s17 + $0xe8] sm:$0xff] }
  0xb6   : > { %708 = vrot.lane.b32.xlu1 %v575_v48, %s6169_s15  ;;  %v606_v48 = vld [vmem:[%s6460_s1 + $0xa0] sm:$0xff]  ;;  %v616_v18 = vld [vmem:[%s6460_s1 + $0xf0] sm:$0xff]  ;;  %v617_v19 = vld [vmem:[%s6460_s1 + $0xf8] sm:$0xff] }
  0xb7   : > { %706 = vrot.lane.b32.xlu0 %v574_v50, %s6169_s15  ;;  %v629_v50 = vpack.c.bf16 %v609_v47, %v608_v46  ;;  %v628_v51 = vpack.c.bf16 %v607_v49, %v606_v48  ;;  %v566_v14 = vld [vmem:[%s6456_s17 + $0xe0] sm:$0xff]  ;;  %v445_v27 = vld [vmem:[%s6441_s21 + $0x18] sm:$0xff]  ;;  %v448_v42 = vld [vmem:[%s6441_s21 + $0x30] sm:$0xff] }
  0xb8   : > { %5727 = vmatpush3.bf16.msra.mxu0 %v5874_v9  ;;  %v519_v9 = vld [vmem:[%s6449_s11 + $0xe8] sm:$0xff]  ;;  %v584_v17 = vpack.c.bf16 %v567_v15, %v566_v14  ;;  %v614_v20 = vld [vmem:[%s6460_s1 + $0xe0] sm:$0xff]  ;;  %v449_v43 = vld [vmem:[%s6441_s21 + $0x38] sm:$0xff] }
  0xb9   : > { %5728 = vmatprep.subr.bf16.mxu0 %v5875_v16  ;;  %v536_v11 = vpack.c.bf16 %v519_v9, %v518_v8  ;;  %v442_v24 = vld [vmem:[%s6441_s21] sm:$0xff]  ;;  %v447_v48 = vld [vmem:[%s6441_s21 + $0x28] sm:$0xff]  ;;  %vm6822_vm7 = vmor %vm1814_vm5, %vm1815_vm6 }
  0xba   : > { %756 = vrot.lane.b32.xlu1 %v623_v55, %s6171_s24  ;;  %v515_v55 = vld [vmem:[%s6449_s11 + $0xc8] sm:$0xff]  ;;  %v446_v47 = vld [vmem:[%s6441_s21 + $0x20] sm:$0xff]  ;;  %vm6830_vm10 = vmor %vm2265_vm8, %vm2266_vm9 }
  0xbb   : > { %754 = vrot.lane.b32.xlu0 %v622_v57, %s6171_s24  ;;  %v534_v57 = vpack.c.bf16 %v515_v55, %v514_v54  ;;  %v476_v49 = vpack.c.bf16 %v447_v48, %v446_v47  ;;  %v450_v61 = vld [vmem:[%s6441_s21 + $0x40] sm:$0xff]  ;;  %v464_v47 = vld [vmem:[%s6441_s21 + $0xb0] sm:$0xff]  ;;  %v465_v48 = vld [vmem:[%s6441_s21 + $0xb8] sm:$0xff] }
  0xbc   : > { %5729 = vmatpush3.bf16.msra.mxu0 %v5875_v16  ;;  %v454_v15 = vld [vmem:[%s6441_s21 + $0x60] sm:$0xff]  ;;  %vm6856_vm12 = vmand %vm1173_vm3, %vm1650_vm11 }
  0xbd   : > { %5730 = vmatprep.subr.bf16.mxu0 %v5876_v21  ;;  %vm6863_vm15 = vmor %vm1325_vm13, %vm1326_vm14 }
  0xbe   : > { %664 = vrot.lane.b32.xlu1 %v529_v62, %s6170_s26  ;;  %v583_v62 = vpack.c.bf16 %v565_v59, %v564_v58  ;;  %vm6869_vm5 = vmand %vm1176_vm4, %vm1325_vm13 }
  0xbf   : > { %662 = vrot.lane.b32.xlu0 %v528_v1, %s6170_s26  ;;  %v613_v1 = vld [vmem:[%s6460_s1 + $0xd8] sm:$0xff] }
  0xc0   : > { %5731 = vmatpush3.bf16.msra.mxu0 %v5876_v21  ;;  %v631_v4 = vpack.c.bf16 %v613_v1, %v612_v0  ;;  %v615_v21 = vld [vmem:[%s6460_s1 + $0xe8] sm:$0xff] }
  0xc1   : > { %v632_v23 = vpack.c.bf16 %v615_v21, %v614_v20 }
  0xc2   : > { %712 = vrot.lane.b32.xlu1 %v577_v5, %s6169_s15  ;;  %v630_v5 = vpack.c.bf16 %v611_v3, %v610_v2 }
  0xc3   : > { %710 = vrot.lane.b32.xlu0 %v576_v6, %s6169_s15  ;;  %v520_v6 = vld [vmem:[%s6449_s11 + $0xf0] sm:$0xff] }
  0xc4   : > { %v537_v10 = vpack.c.bf16 %v521_v7, %v520_v6 }
  0xc6   : > { %760 = vrot.lane.b32.xlu1 %v625_v12, %s6171_s24  ;;  %v568_v12 = vld [vmem:[%s6456_s17 + $0xf0] sm:$0xff] }
  0xc7   : > { %758 = vrot.lane.b32.xlu0 %v624_v13, %s6171_s24  ;;  %v569_v13 = vld [vmem:[%s6456_s17 + $0xf8] sm:$0xff] }
  0xc8   : > { %v585_v16 = vpack.c.bf16 %v569_v13, %v568_v12  ;;  %v457_v12 = vld [vmem:[%s6441_s21 + $0x78] sm:$0xff] }
  0xca   : > { %668 = vrot.lane.b32.xlu1 %v531_v22, %s6170_s26  ;;  %v633_v22 = vpack.c.bf16 %v617_v19, %v616_v18 }
  0xcb   : > { %666 = vrot.lane.b32.xlu0 %v530_v25, %s6170_s26  ;;  %v443_v25 = vld [vmem:[%s6441_s21 + $0x8] sm:$0xff] }
  0xcc   : > { %v474_v30 = vpack.c.bf16 %v443_v25, %v442_v24 }
  0xce   : > { %716 = vrot.lane.b32.xlu1 %v579_v26, %s6169_s15  ;;  %v444_v26 = vld [vmem:[%s6441_s21 + $0x10] sm:$0xff] }
  0xcf   : > { %714 = vrot.lane.b32.xlu0 %v578_v31, %s6169_s15  ;;  %v475_v31 = vpack.c.bf16 %v445_v27, %v444_v26 }
  0xd2   : > { %764 = vrot.lane.b32.xlu1 %v627_v34, %s6171_s24 }
  0xd3   : > { %762 = vrot.lane.b32.xlu0 %v626_v37, %s6171_s24 }
  0xd6   : > { %672 = vrot.lane.b32.xlu1 %v533_v38, %s6170_s26 }
  0xd7   : > { %670 = vrot.lane.b32.xlu0 %v532_v39, %s6170_s26 }
  0xda   : > { %720 = vrot.lane.b32.xlu1 %v581_v44, %s6169_s15 }
  0xdb   : > { %718 = vrot.lane.b32.xlu0 %v580_v45, %s6169_s15  ;;  %v477_v45 = vpack.c.bf16 %v449_v43, %v448_v42 }
  0xde   : > { %768 = vrot.lane.b32.xlu1 %v629_v50, %s6171_s24 }
  0xdf   : > { %766 = vrot.lane.b32.xlu0 %v628_v51, %s6171_s24 }
  0xe2   : > { %676 = vrot.lane.b32.xlu1 %v535_v56, %s6170_s26  ;;  %v452_v56 = vld [vmem:[%s6441_s21 + $0x50] sm:$0xff] }
  0xe3   : > { %674 = vrot.lane.b32.xlu0 %v534_v57, %s6170_s26  ;;  %v453_v57 = vld [vmem:[%s6441_s21 + $0x58] sm:$0xff] }
  0xe4   : > { %v479_v0 = vpack.c.bf16 %v453_v57, %v452_v56 }
  0xe6   : > { %724 = vrot.lane.b32.xlu1 %v583_v62, %s6169_s15  ;;  %v451_v62 = vld [vmem:[%s6441_s21 + $0x48] sm:$0xff] }
  0xe7   : > { %722 = vrot.lane.b32.xlu0 %v582_v63, %s6169_s15  ;;  %v478_v1 = vpack.c.bf16 %v451_v62, %v450_v61 }
  0xea   : > { %772 = vrot.lane.b32.xlu1 %v631_v4, %s6171_s24 }
  0xeb   : > { %770 = vrot.lane.b32.xlu0 %v630_v5, %s6171_s24 }
  0xee   : > { %680 = vrot.lane.b32.xlu1 %v537_v10, %s6170_s26 }
  0xef   : > { %678 = vrot.lane.b32.xlu0 %v536_v11, %s6170_s26  ;;  %v456_v11 = vld [vmem:[%s6441_s21 + $0x70] sm:$0xff] }
  0xf0   : > { %v481_v18 = vpack.c.bf16 %v457_v12, %v456_v11 }
  0xf2   : > { %728 = vrot.lane.b32.xlu1 %v585_v16, %s6169_s15  ;;  %v455_v16 = vld [vmem:[%s6441_s21 + $0x68] sm:$0xff] }
  0xf3   : > { %726 = vrot.lane.b32.xlu0 %v584_v17, %s6169_s15  ;;  %v480_v19 = vpack.c.bf16 %v455_v16, %v454_v15  ;;  %v6172_v16 = vmov 0  }
  0xf4   : > { %1181 = vst.msk [vmem:[#allocation2 + $0x18] sm:$0xf] %vm1173_vm3, %v6172_v16  ;;  %1174 = vst.msk [vmem:[#allocation2] sm:$0xf] %vm1173_vm3, %v6172_v16 }
  0xf5   : > { %1175 = vst.msk [vmem:[#allocation2 + $0x4] sm:$0xf] %vm1173_vm3, %v6172_v16  ;;  %1178 = vst.msk [vmem:[#allocation2 + $0xc] sm:$0xf] %vm1173_vm3, %v6172_v16 }
  0xf6   : > { %776 = vrot.lane.b32.xlu1 %v633_v22, %s6171_s24  ;;  %1179 = vst.msk [vmem:[#allocation2 + $0x10] sm:$0xf] %vm1173_vm3, %v6172_v16  ;;  %1182 = vst.msk [vmem:[#allocation2 + $0x1c] sm:$0xf] %vm1173_vm3, %v6172_v16 }
  0xf7   : > { %774 = vrot.lane.b32.xlu0 %v632_v23, %s6171_s24  ;;  %1184 = vst.msk [vmem:[#allocation2 + $0x24] sm:$0xf] %vm1173_vm3, %v6172_v16  ;;  %1185 = vst.msk [vmem:[#allocation2 + $0x28] sm:$0xf] %vm1173_vm3, %v6172_v16 }
  0xf8   : > { %1187 = vst.msk [vmem:[#allocation2 + $0x30] sm:$0xf] %vm1173_vm3, %v6172_v16  ;;  %1188 = vst.msk [vmem:[#allocation2 + $0x34] sm:$0xf] %vm1173_vm3, %v6172_v16 }
  0xf9   : > { %1190 = vst.msk [vmem:[#allocation2 + $0x3c] sm:$0xf] %vm1173_vm3, %v6172_v16  ;;  %1191 = vst.msk [vmem:[#allocation2 + $0x40] sm:$0xf] %vm1173_vm3, %v6172_v16 }
  0xfa   : > { %1193 = vst.msk [vmem:[#allocation2 + $0x48] sm:$0xf] %vm1173_vm3, %v6172_v16  ;;  %1194 = vst.msk [vmem:[#allocation2 + $0x4c] sm:$0xf] %vm1173_vm3, %v6172_v16 }
  0xfb   : > { %1196 = vst.msk [vmem:[#allocation2 + $0x54] sm:$0xf] %vm1173_vm3, %v6172_v16  ;;  %1197 = vst.msk [vmem:[#allocation2 + $0x58] sm:$0xf] %vm1173_vm3, %v6172_v16 }
  0xfc   : > { %1199 = vst.msk [vmem:[#allocation2 + $0x60] sm:$0xf] %vm1173_vm3, %v6172_v16  ;;  %1200 = vst.msk [vmem:[#allocation2 + $0x64] sm:$0xf] %vm1173_vm3, %v6172_v16 }
  0xfd   : > { %1202 = vst.msk [vmem:[#allocation2 + $0x6c] sm:$0xf] %vm1173_vm3, %v6172_v16  ;;  %1203 = vst.msk [vmem:[#allocation2 + $0x70] sm:$0xf] %vm1173_vm3, %v6172_v16 }
  0xfe   : > { %1205 = vst.msk [vmem:[#allocation2 + $0x78] sm:$0xf] %vm1173_vm3, %v6172_v16  ;;  %1206 = vst.msk [vmem:[#allocation2 + $0x7c] sm:$0xf] %vm1173_vm3, %v6172_v16 }
  0xff   : > { %1208 = vst.msk [vmem:[#allocation2 + $0x84] sm:$0xf] %vm1173_vm3, %v6172_v16  ;;  %1209 = vst.msk [vmem:[#allocation2 + $0x88] sm:$0xf] %vm1173_vm3, %v6172_v16 }
 0x100   : > { %1211 = vst.msk [vmem:[#allocation2 + $0x90] sm:$0xf] %vm1173_vm3, %v6172_v16  ;;  %1212 = vst.msk [vmem:[#allocation2 + $0x94] sm:$0xf] %vm1173_vm3, %v6172_v16 }
 0x101   : > { %1214 = vst.msk [vmem:[#allocation2 + $0x9c] sm:$0xf] %vm1173_vm3, %v6172_v16  ;;  %1215 = vst.msk [vmem:[#allocation2 + $0xa0] sm:$0xf] %vm1173_vm3, %v6172_v16 }
 0x102   : > { %1217 = vst.msk [vmem:[#allocation2 + $0xa8] sm:$0xf] %vm1173_vm3, %v6172_v16  ;;  %1218 = vst.msk [vmem:[#allocation2 + $0xac] sm:$0xf] %vm1173_vm3, %v6172_v16 }
 0x103   : > { %1220 = vst.msk [vmem:[#allocation2 + $0xb4] sm:$0xf] %vm1173_vm3, %v6172_v16  ;;  %1221 = vst.msk [vmem:[#allocation2 + $0xb8] sm:$0xf] %vm1173_vm3, %v6172_v16 }
 0x104   : > { %1223 = vst.msk [vmem:[#allocation2 + $0xc0] sm:$0xf] %vm1173_vm3, %v6172_v16  ;;  %1224 = vst.msk [vmem:[#allocation2 + $0xc4] sm:$0xf] %vm1173_vm3, %v6172_v16 }
 0x105   : > { %1226 = vst.msk [vmem:[#allocation2 + $0xcc] sm:$0xf] %vm1173_vm3, %v6172_v16  ;;  %1227 = vst.msk [vmem:[#allocation2 + $0xd0] sm:$0xf] %vm1173_vm3, %v6172_v16 }
 0x106   : > { %1183 = vst.msk [vmem:[#allocation2 + $0x20] sm:$0x1] %vm1176_vm4, %v6172_v16  ;;  %1177 = vst.msk [vmem:[#allocation2 + $0x8] sm:$0x1] %vm1176_vm4, %v6172_v16 }
 0x107   : > { %1180 = vst.msk [vmem:[#allocation2 + $0x14] sm:$0x1] %vm1176_vm4, %v6172_v16  ;;  %1186 = vst.msk [vmem:[#allocation2 + $0x2c] sm:$0x1] %vm1176_vm4, %v6172_v16 }
 0x108   : > { %1189 = vst.msk [vmem:[#allocation2 + $0x38] sm:$0x1] %vm1176_vm4, %v6172_v16  ;;  %1192 = vst.msk [vmem:[#allocation2 + $0x44] sm:$0x1] %vm1176_vm4, %v6172_v16 }
 0x109   : > { %1195 = vst.msk [vmem:[#allocation2 + $0x50] sm:$0x1] %vm1176_vm4, %v6172_v16  ;;  %1198 = vst.msk [vmem:[#allocation2 + $0x5c] sm:$0x1] %vm1176_vm4, %v6172_v16 }
 0x10a   : > { %1201 = vst.msk [vmem:[#allocation2 + $0x68] sm:$0x1] %vm1176_vm4, %v6172_v16  ;;  %1204 = vst.msk [vmem:[#allocation2 + $0x74] sm:$0x1] %vm1176_vm4, %v6172_v16 }
 0x10b   : > { %1207 = vst.msk [vmem:[#allocation2 + $0x80] sm:$0x1] %vm1176_vm4, %v6172_v16  ;;  %1210 = vst.msk [vmem:[#allocation2 + $0x8c] sm:$0x1] %vm1176_vm4, %v6172_v16 }
 0x10c   : > { %v699_v28 = vpop.permute.xlu1 %698  ;;  %1213 = vst.msk [vmem:[#allocation2 + $0x98] sm:$0x1] %vm1176_vm4, %v6172_v16  ;;  %1216 = vst.msk [vmem:[#allocation2 + $0xa4] sm:$0x1] %vm1176_vm4, %v6172_v16 }
 0x10d   : > { %v651_v29 = vpop.permute.xlu0 %650  ;;  %1219 = vst.msk [vmem:[#allocation2 + $0xb0] sm:$0x1] %vm1176_vm4, %v6172_v16  ;;  %1222 = vst.msk [vmem:[#allocation2 + $0xbc] sm:$0x1] %vm1176_vm4, %v6172_v16 }
 0x10e   : > { %v781_v34 = vsel %vm778_vm0, %v474_v30, %v651_v29  ;;  %v460_v29 = vld [vmem:[%s6441_s21 + $0x90] sm:$0xff]  ;;  %v461_v30 = vld [vmem:[%s6441_s21 + $0x98] sm:$0xff]  ;;  %1225 = vst.msk [vmem:[#allocation2 + $0xc8] sm:$0x1] %vm1176_vm4, %v6172_v16  ;;  %1228 = vst.msk [vmem:[#allocation2 + $0xd4] sm:$0x1] %vm1176_vm4, %v6172_v16 }
 0x10f   : > { %v829_v39 = vsel %vm827_vm1, %v781_v34, %v699_v28  ;;  %v459_v34 = vld [vmem:[%s6441_s21 + $0x88] sm:$0xff] }
 0x110   : > { %v701_v32 = vpop.permute.xlu1 %700 }
 0x111   : > { %v653_v33 = vpop.permute.xlu0 %652 }
 0x112   : > { %v784_v35 = vsel %vm778_vm0, %v475_v31, %v653_v33  ;;  %v458_v33 = vld [vmem:[%s6441_s21 + $0x80] sm:$0xff] }
 0x113   : > { %v831_v37 = vsel %vm827_vm1, %v784_v35, %v701_v32 }
 0x114   : > { %v749_v36 = vpop.permute.xlu1 %748 }
 0x115   : > { %v747_v38 = vpop.permute.xlu0 %746  ;;  %v865_v40 = vsel %vm860_vm2, %v831_v37, %v749_v36  ;;  %v483_v36 = vpack.c.bf16 %v461_v30, %v460_v29  ;;  %v482_v37 = vpack.c.bf16 %v459_v34, %v458_v33 }
 0x116   : > { %v862_v41 = vsel %vm860_vm2, %v829_v39, %v747_v38 }
 0x117   : > { %5732 = vmatprep.mubr.bf16.mxu0 %v862_v41 }
 0x118   : > { %5733 = vmatmul.mubr.bf16.vlgmr.msra.gmra.mxu0 %v865_v40  ;;  %v657_v44 = vpop.permute.xlu1 %656 }
 0x119   : > { %v655_v46 = vpop.permute.xlu0 %654  ;;  %v790_v51 = vsel %vm778_vm0, %v477_v45, %v657_v44 }
 0x11a   : > { %v787_v53 = vsel %vm778_vm0, %v476_v49, %v655_v46 }
 0x11c   : > { %v705_v50 = vpop.permute.xlu1 %704 }
 0x11d   : > { %v703_v52 = vpop.permute.xlu0 %702  ;;  %v835_v54 = vsel %vm827_vm1, %v790_v51, %v705_v50  ;;  %v462_v51 = vld [vmem:[%s6441_s21 + $0xa0] sm:$0xff] }
 0x11e   : > { %v833_v58 = vsel %vm827_vm1, %v787_v53, %v703_v52  ;;  %v463_v52 = vld [vmem:[%s6441_s21 + $0xa8] sm:$0xff] }
 0x120   : > { %v753_v55 = vpop.permute.xlu1 %752 }
 0x121   : > { %v751_v59 = vpop.permute.xlu0 %750  ;;  %v871_v60 = vsel %vm860_vm2, %v835_v54, %v753_v55  ;;  %v485_v54 = vpack.c.bf16 %v465_v48, %v464_v47  ;;  %v484_v55 = vpack.c.bf16 %v463_v52, %v462_v51 }
 0x122   : > { %v868_v63 = vsel %vm860_vm2, %v833_v58, %v751_v59 }
 0x123   : > { %5736 = vmatprep.mubr.bf16.mxu0 %v868_v63 }
 0x124   : > { %5737 = vmatmul.mubr.bf16.gmra.mxu0 %v871_v60  ;;  %v661_v2 = vpop.permute.xlu1 %660 }
 0x125   : > { %v659_v3 = vpop.permute.xlu0 %658  ;;  %v796_v4 = vsel %vm778_vm0, %v479_v0, %v661_v2  ;;  %v469_v2 = vld [vmem:[%s6441_s21 + $0xd8] sm:$0xff] }
 0x126   : > { %v793_v5 = vsel %vm778_vm0, %v478_v1, %v659_v3  ;;  %v468_v1 = vld [vmem:[%s6441_s21 + $0xd0] sm:$0xff] }
 0x128   : > { %v709_v6 = vpop.permute.xlu1 %708 }
 0x129   : > { %v707_v7 = vpop.permute.xlu0 %706  ;;  %v839_v8 = vsel %vm827_vm1, %v796_v4, %v709_v6  ;;  %v467_v6 = vld [vmem:[%s6441_s21 + $0xc8] sm:$0xff] }
 0x12a   : > { %v837_v9 = vsel %vm827_vm1, %v793_v5, %v707_v7  ;;  %v466_v5 = vld [vmem:[%s6441_s21 + $0xc0] sm:$0xff] }
 0x12c   : > { %v757_v10 = vpop.permute.xlu1 %756 }
 0x12d   : > { %v755_v13 = vpop.permute.xlu0 %754  ;;  %v877_v14 = vsel %vm860_vm2, %v839_v8, %v757_v10  ;;  %v487_v8 = vpack.c.bf16 %v469_v2, %v468_v1 }
 0x12e   : > { %v874_v17 = vsel %vm860_vm2, %v837_v9, %v755_v13  ;;  %v486_v9 = vpack.c.bf16 %v467_v6, %v466_v5 }
 0x12f   : > { %5740 = vmatprep.mubr.bf16.mxu0 %v874_v17 }
 0x130   : > { %5741 = vmatmul.mubr.bf16.gmra.mxu0 %v877_v14  ;;  %v665_v20 = vpop.permute.xlu1 %664 }
 0x131   : > { %v663_v21 = vpop.permute.xlu0 %662  ;;  %v802_v22 = vsel %vm778_vm0, %v481_v18, %v665_v20  ;;  %v472_v20 = vld [vmem:[%s6441_s21 + $0xf0] sm:$0xff] }
 0x132   : > { %v799_v23 = vsel %vm778_vm0, %v480_v19, %v663_v21  ;;  %v473_v21 = vld [vmem:[%s6441_s21 + $0xf8] sm:$0xff] }
 0x134   : > { %v713_v24 = vpop.permute.xlu1 %712 }
 0x135   : > { %v711_v25 = vpop.permute.xlu0 %710  ;;  %v843_v26 = vsel %vm827_vm1, %v802_v22, %v713_v24  ;;  %v470_v24 = vld [vmem:[%s6441_s21 + $0xe0] sm:$0xff] }
 0x136   : > { %v841_v27 = vsel %vm827_vm1, %v799_v23, %v711_v25  ;;  %v471_v25 = vld [vmem:[%s6441_s21 + $0xe8] sm:$0xff] }
 0x138   : > { %v761_v28 = vpop.permute.xlu1 %760 }
 0x139   : > { %v759_v31 = vpop.permute.xlu0 %758  ;;  %v883_v32 = vsel %vm860_vm2, %v843_v26, %v761_v28  ;;  %v488_v28 = vpack.c.bf16 %v471_v25, %v470_v24 }
 0x13a   : > { %v880_v35 = vsel %vm860_vm2, %v841_v27, %v759_v31  ;;  %v489_v27 = vpack.c.bf16 %v473_v21, %v472_v20  ;;  %v1766_v31 = vld [vmem:[#allocation2] sm:$0xf] }
 0x13b   : > { %5744 = vmatprep.mubr.bf16.mxu0 %v880_v35  ;;  %v1818_v33 = vshrl.u32 %v1766_v31, 16  ;;  %v1821_v34 = vshll.u32 %v1766_v31, 16 }
 0x13c   : > { %5745 = vmatmul.mubr.bf16.gmra.mxu0 %v883_v32  ;;  %v669_v38 = vpop.permute.xlu1 %668  ;;  %v1767_v32 = vld [vmem:[#allocation2 + $0x4] sm:$0xf] }
 0x13d   : > { %v667_v39 = vpop.permute.xlu0 %666  ;;  %v808_v40 = vsel %vm778_vm0, %v483_v36, %v669_v38  ;;  %v1827_v35 = vshll.u32 %v1767_v32, 16 }
 0x13e   : > { %v805_v41 = vsel %vm778_vm0, %v482_v37, %v667_v39  ;;  %v1831_v37 = vshrl.u32 %v1767_v32, 16 }
 0x140   : > { %v717_v42 = vpop.permute.xlu1 %716 }
 0x141   : > { %v715_v43 = vpop.permute.xlu0 %714  ;;  %v847_v44 = vsel %vm827_vm1, %v808_v40, %v717_v42  ;;  %v1820_v40 = vrot.slane %v1818_v33, 4  ;;  %v1829_v42 = vrot.slane %v1827_v35, 5  ;;  %v1652_v35 = vld [vmem:[#allocation2 + $0xc] sm:$0xf] }
 0x142   : > { %v845_v45 = vsel %vm827_vm1, %v805_v41, %v715_v43  ;;  %v1823_v41 = vrot.slane %v1821_v34, 5 }
 0x144   : > { %v765_v46 = vpop.permute.xlu1 %764  ;;  %v1824_v47 = vor.u32 %v1823_v41, %v1820_v40 }
 0x145   : > { %v763_v49 = vpop.permute.xlu0 %762  ;;  %v889_v50 = vsel %vm860_vm2, %v847_v44, %v765_v46  ;;  %v1798_v44 = vld [vmem:[#allocation2 + $0x8] sm:$0x1] }
 0x146   : > { %v886_v53 = vsel %vm860_vm2, %v845_v45, %v763_v49  ;;  %v1833_v45 = vrot.slane %v1831_v37, 4  ;;  %v1837_v48 = vshll.u32 %v1798_v44, 16  ;;  %v1825_v52 = vrot.slane %v1824_v47, 4 }
 0x147   : > { %5748 = vmatprep.mubr.bf16.mxu0 %v886_v53 }
 0x148   : > { %5749 = vmatmul.mubr.bf16.gmra.mxu0 %v889_v50  ;;  %v673_v56 = vpop.permute.xlu1 %672  ;;  %v1834_v50 = vor.u32 %v1833_v45, %v1829_v42  ;;  %v1839_v53 = vrot.slane %v1837_v48, 5  ;;  %v1665_v45 = vld [vmem:[#allocation2 + $0x20] sm:$0x1] }
 0x149   : > { %v671_v57 = vpop.permute.xlu0 %670  ;;  %v814_v58 = vsel %vm778_vm0, %v485_v54, %v673_v56 }
 0x14a   : > { %v811_v59 = vsel %vm778_vm0, %v484_v55, %v671_v57  ;;  %v1835_v56 = vrot.slane %v1834_v50, 4 }
 0x14c   : > { %v721_v60 = vpop.permute.xlu1 %720 }
 0x14d   : > { %v719_v61 = vpop.permute.xlu0 %718  ;;  %v851_v62 = vsel %vm827_vm1, %v814_v58, %v721_v60  ;;  %v1830_v60 = vsel %vm6822_vm7, %v1825_v52, %v1829_v42 }
 0x14e   : > { %v849_v63 = vsel %vm827_vm1, %v811_v59, %v719_v61  ;;  %v2270_v59 = vrot.slane %v1767_v32, 5  ;;  %v1840_v61 = vsel %vm6822_vm7, %v1835_v56, %v1839_v53 }
 0x150   : > { %v769_v0 = vpop.permute.xlu1 %768  ;;  %v2272_v2 = vrot.slane %v2270_v59, 4 }
 0x151   : > { %v767_v3 = vpop.permute.xlu0 %766  ;;  %v895_v4 = vsel %vm860_vm2, %v851_v62, %v769_v0  ;;  %v2201_v62 = vld [vmem:[#allocation2] sm:$0xe] }
 0x152   : > { %v892_v7 = vsel %vm860_vm2, %v849_v63, %v767_v3  ;;  %v5357_v63 = vcombine.low %v1830_v60, %v1840_v61  ;;  %v5293_v0 = vrot.slane %v2201_v62, 9  ;;  %v2273_v3 = vrot.slane %v1798_v44, 5  ;;  %v1658_v60 = vld [vmem:[#allocation2 + $0x14] sm:$0x1] }
 0x153   : > { %5752 = vmatprep.mubr.bf16.mxu0 %v892_v7  ;;  %v5880_v7 = vld [vmem:[%s8832_s6 + $0x88] sm:$0xff]  }
 0x154   : > { %5753 = vmatmul.mubr.bf16.gmra.mxu0 %v895_v4  ;;  %v677_v10 = vpop.permute.xlu1 %676  ;;  %3709 = vrot.lane.b32.xlu1 %v5357_v63, %s6170_s26  ;;  %v2271_v4 = vsel %vm6830_vm10, %v5293_v0, %v2270_v59  ;;  %v2274_v5 = vsel %vm6830_vm10, %v2272_v2, %v2273_v3 }
 0x155   : > { %v675_v11 = vpop.permute.xlu0 %674  ;;  %v820_v12 = vsel %vm778_vm0, %v487_v8, %v677_v10  ;;  %v5373_v6 = vcombine.low %v2271_v4, %v2274_v5  ;;  %5764 = vmatprep.subr.bf16.mxu0 %v5880_v7  ;;  %v5882_v8 = vld [vmem:[%s8832_s6 + $0x80] sm:$0xff]  }
 0x156   : > { %v817_v13 = vsel %vm778_vm0, %v486_v9, %v675_v11  ;;  %5765 = vmatpush3.bf16.msra.mxu0 %v5880_v7  ;;  %v6849_v9 = vld [vmem:[%s8831_s5] ss:$0 sm:$0xff] }
 0x157   : > { %5766 = vmatprep.subr.bf16.mxu0 %v5882_v8 }
 0x158   : > { %v725_v14 = vpop.permute.xlu1 %724  ;;  %3789 = vrot.lane.b32.xlu1 %v5373_v6, %s6169_s15 }
 0x159   : > { %v723_v15 = vpop.permute.xlu0 %722  ;;  %v855_v17 = vsel %vm827_vm1, %v820_v12, %v725_v14 }
 0x15a   : > { %v853_v18 = vsel %vm827_vm1, %v817_v13, %v723_v15  ;;  %5767 = vmatpush3.bf16.msra.mxu0 %v5882_v8 }
 0x15c   : > { %v773_v19 = vpop.permute.xlu1 %772 }
 0x15d   : > { %v771_v22 = vpop.permute.xlu0 %770  ;;  %v901_v23 = vsel %vm860_vm2, %v855_v17, %v773_v19 }
 0x15e   : > { %v898_v26 = vsel %vm860_vm2, %v853_v18, %v771_v22 }
 0x15f   : > { %5756 = vmatprep.mubr.bf16.mxu0 %v898_v26  ;;  %v1661_v26 = vld [vmem:[#allocation2 + $0x18] sm:$0xf] }
 0x160   : > { %5757 = vmatmul.mubr.bf16.gmra.mxu0 %v901_v23  ;;  %v681_v29 = vpop.permute.xlu1 %680 }
 0x161   : > { %v679_v30 = vpop.permute.xlu0 %678  ;;  %v826_v36 = vsel %vm778_vm0, %v489_v27, %v681_v29 }
 0x162   : > { %v823_v38 = vsel %vm778_vm0, %v488_v28, %v679_v30 }
 0x164   : > { %v729_v39 = vpop.permute.xlu1 %728 }
 0x165   : > { %v727_v43 = vpop.permute.xlu0 %726  ;;  %v859_v46 = vsel %vm827_vm1, %v826_v36, %v729_v39 }
 0x166   : > { %v857_v49 = vsel %vm827_vm1, %v823_v38, %v727_v43 }
 0x168   : > { %v777_v51 = vpop.permute.xlu1 %776 }
 0x169   : > { %v775_v54 = vpop.permute.xlu0 %774  ;;  %v907_v55 = vsel %vm860_vm2, %v859_v46, %v777_v51 }
 0x16a   : > { %v904_v57 = vsel %vm860_vm2, %v857_v49, %v775_v54 }
 0x16b   : > { %5760 = vmatprep.mubr.bf16.mxu0 %v904_v57 }
 0x16c   : > { %5761 = vmatmul.mubr.bf16.gmra.mxu0 %v907_v55 }
 0x1d8   : > { %v5734_v10 = vpop.f32.mrf.mxu0 }
 0x1d9   : > { %v1023_v11 = vadd.f32 %v5734_v10, %v6849_v9 }
 0x1da   : > { %v1014_v12 = vpop.f32.mrf.mxu0 }
 0x1db   : > { %v1143_v13 = vmax.f32 %v1023_v11, 0.0  ;;  %v1015_v14 = vadd.f32 %v6849_v9, %v1014_v12 }
 0x1dc   : > { %v5735_v15 = vpop.f32.mrf.mxu0 }
 0x1dd   : > { %v5531_v16 = vpack.c.bf16 %v1143_v13, %v1143_v13  ;;  %v1141_v17 = vmax.f32 %v1015_v14, 0.0  ;;  %v1026_v18 = vadd.f32 %v5735_v15, %v6849_v9 }
 0x1de   : > { %v1017_v19 = vpop.f32.mrf.mxu0 }
 0x1df   : > { %v1346_v20 = vshrl.u32 %v5531_v16, 16  ;;  %v5529_v21 = vpack.c.bf16 %v1141_v17, %v1141_v17  ;;  %v1144_v22 = vmax.f32 %v1026_v18, 0.0  ;;  %v1018_v23 = vadd.f32 %v6849_v9, %v1017_v19  ;;  %v1675_v17 = vld [vmem:[#allocation2 + $0x30] sm:$0xf] }
 0x1e0   : > { %v1349_v25 = vshll.u32 %v5531_v16, 16 }
 0x1e1   : > { %v1348_v24 = vrot.slane %v1346_v20, 7  ;;  %v1329_v27 = vshrl.u32 %v5529_v21, 16  ;;  %v5532_v28 = vpack.c.bf16 %v1144_v22, %v1144_v22  ;;  %v1142_v30 = vmax.f32 %v1018_v23, 0.0  ;;  %v1668_v23 = vld [vmem:[#allocation2 + $0x24] sm:$0xf] }
 0x1e2   : > { %v1332_v33 = vshll.u32 %v5529_v21, 16 }
 0x1e3   : > { %v1351_v31 = vor.u32 %v1349_v25, %v1348_v24  ;;  %v1331_v32 = vrot.slane %v1329_v27, 7  ;;  %v1354_v34 = vshrl.u32 %v5532_v28, 16  ;;  %v5530_v36 = vpack.c.bf16 %v1142_v30, %v1142_v30 }
 0x1e4   : > { %v5738_v37 = vpop.f32.mrf.mxu0  ;;  %v1357_v42 = vshll.u32 %v5532_v28, 16  ;;  %v1352_v43 = vrot.slane %v1348_v24, 4 }
 0x1e5   : > { %v1662_v38 = vsel %vm6856_vm12, %v1351_v31, %v1661_v26  ;;  %v1334_v39 = vor.u32 %v1332_v33, %v1331_v32  ;;  %v1356_v41 = vrot.slane %v1354_v34, 7  ;;  %v1337_v46 = vshrl.u32 %v5530_v36, 16  ;;  %v1679_v34 = vld [vmem:[#allocation2 + $0x38] sm:$0x1] }
 0x1e6   : > { %1663 = vst [vmem:[#allocation2 + $0x18] sm:$0xf] %v1662_v38  ;;  %v1039_v47 = vadd.f32 %v5738_v37, %v6849_v9  ;;  %v1030_v48 = vpop.f32.mrf.mxu0  ;;  %v1340_v54 = vshll.u32 %v5530_v36, 16  ;;  %v1335_v63 = vrot.slane %v1331_v32, 4 }
 0x1e7   : > { %v1653_v49 = vsel %vm6856_vm12, %v1334_v39, %v1652_v35  ;;  %v1359_v50 = vor.u32 %v1357_v42, %v1356_v41  ;;  %v1361_v51 = vrot.slane %v1356_v41, 4  ;;  %v1031_v52 = vadd.f32 %v6849_v9, %v1030_v48 }
 0x1e8   : > { %1654 = vst [vmem:[#allocation2 + $0xc] sm:$0xf] %v1653_v49  ;;  %v1339_v53 = vrot.slane %v1337_v46, 7  ;;  %v1147_v55 = vmax.f32 %v1039_v47, 0.0  ;;  %v5739_v56 = vpop.f32.mrf.mxu0  ;;  %v1672_v46 = vld [vmem:[#allocation2 + $0x2c] sm:$0x1] }
 0x1e9   : > { %v1360_v57 = vsel %vm6863_vm15, %v1352_v43, %v1359_v50  ;;  %v1666_v59 = vsel %vm6869_vm5, %v1361_v51, %v1665_v45  ;;  %v1145_v61 = vmax.f32 %v1031_v52, 0.0  ;;  %v1042_v62 = vadd.f32 %v5739_v56, %v6849_v9 }
 0x1ea   : > { %1664 = vst.msk [vmem:[#allocation2 + $0x1c] sm:$0xf] %vm1173_vm3, %v1360_v57  ;;  %1667 = vst [vmem:[#allocation2 + $0x20] sm:$0x1] %v1666_v59  ;;  %v1342_v0 = vor.u32 %v1340_v54, %v1339_v53  ;;  %v1344_v2 = vrot.slane %v1339_v53, 4  ;;  %v5535_v3 = vpack.c.bf16 %v1147_v55, %v1147_v55  ;;  %v1033_v4 = vpop.f32.mrf.mxu0 }
 0x1eb   : > { %v5533_v5 = vpack.c.bf16 %v1145_v61, %v1145_v61  ;;  %v1148_v6 = vmax.f32 %v1042_v62, 0.0  ;;  %v1034_v7 = vadd.f32 %v6849_v9, %v1033_v4 }
 0x1ec   : > { %v1343_v8 = vsel %vm6863_vm15, %v1335_v63, %v1342_v0  ;;  %v1659_v10 = vsel %vm6869_vm5, %v1344_v2, %v1658_v60  ;;  %v1380_v11 = vshrl.u32 %v5535_v3, 16  ;;  %v1383_v16 = vshll.u32 %v5535_v3, 16 }
 0x1ed   : > { %1655 = vst.msk [vmem:[#allocation2 + $0x10] sm:$0xf] %vm1173_vm3, %v1343_v8  ;;  %1660 = vst [vmem:[#allocation2 + $0x14] sm:$0x1] %v1659_v10  ;;  %v1363_v12 = vshrl.u32 %v5533_v5, 16  ;;  %v5536_v13 = vpack.c.bf16 %v1148_v6, %v1148_v6  ;;  %v1146_v14 = vmax.f32 %v1034_v7, 0.0 }
 0x1ee   : > { %v1382_v15 = vrot.slane %v1380_v11, 7  ;;  %v1366_v19 = vshll.u32 %v5533_v5, 16  ;;  %v6889_v26 = vld [vmem:[#allocation2 + $0x18] sm:$0xf]  ;;  %v1689_v10 = vld [vmem:[#allocation2 + $0x48] sm:$0xf] }
 0x1ef   : > { %v1365_v18 = vrot.slane %v1363_v12, 7  ;;  %v1388_v20 = vshrl.u32 %v5536_v13, 16  ;;  %v5534_v21 = vpack.c.bf16 %v1146_v14, %v1146_v14  ;;  %v1391_v24 = vshll.u32 %v5536_v13, 16  ;;  %v6909_v57 = vld [vmem:[#allocation2 + $0x18] sm:$0xf] }
 0x1f0   : > { %v1385_v22 = vor.u32 %v1383_v16, %v1382_v15  ;;  %v5742_v25 = vpop.f32.mrf.mxu0  ;;  %v1386_v27 = vrot.slane %v1382_v15, 4  ;;  %v6923_v15 = vld [vmem:[#allocation2 + $0xc] sm:$0xf]  ;;  %v1682_v16 = vld [vmem:[#allocation2 + $0x3c] sm:$0xf] }
 0x1f1   : > { %v1368_v28 = vor.u32 %v1366_v19, %v1365_v18  ;;  %v1390_v30 = vrot.slane %v1388_v20, 7  ;;  %v1371_v31 = vshrl.u32 %v5534_v21, 16  ;;  %v6891_v32 = vld [vmem:[#allocation2 + $0x1c] sm:$0xf]  ;;  %v1374_v35 = vshll.u32 %v5534_v21, 16 }
 0x1f2   : > { %v1676_v33 = vsel %vm6856_vm12, %v1385_v22, %v1675_v17  ;;  %v1055_v36 = vadd.f32 %v5742_v25, %v6849_v9  ;;  %v1046_v37 = vpop.f32.mrf.mxu0  ;;  %v5437_v38 = vcombine.low %v6889_v26, %v6891_v32  ;;  %v1369_v45 = vrot.slane %v1365_v18, 4  ;;  %v6902_v49 = vld [vmem:[#allocation2 + $0x1c] sm:$0xf]  ;;  %v6931_v25 = vld [vmem:[#allocation2 + $0x20] sm:$0x1] }
 0x1f3   : > { %1677 = vst [vmem:[#allocation2 + $0x30] sm:$0xf] %v1676_v33  ;;  %v1669_v39 = vsel %vm6856_vm12, %v1368_v28, %v1668_v23  ;;  %v1393_v41 = vor.u32 %v1391_v24, %v1390_v30  ;;  %v1395_v42 = vrot.slane %v1390_v30, 4  ;;  %v1373_v43 = vrot.slane %v1371_v31, 7 }
 0x1f4   : > { %1670 = vst [vmem:[#allocation2 + $0x24] sm:$0xf] %v1669_v39  ;;  %v1151_v47 = vmax.f32 %v1055_v36, 0.0  ;;  %v1047_v48 = vadd.f32 %v6849_v9, %v1046_v37  ;;  %4109 = vrot.lane.b32.xlu0 %v5437_v38, %s6169_s15  ;;  %v5743_v50 = vpop.f32.mrf.mxu0  ;;  %v5390_v62 = vcombine.low %v6909_v57, %v6902_v49  ;;  %v6921_v8 = vld [vmem:[#allocation2 + $0x10] sm:$0xf]  ;;  %v3487_v17 = vrot.slane %v6891_v32, 5 }
 0x1f5   : > { %v1394_v51 = vsel %vm6863_vm15, %v1386_v27, %v1393_v41  ;;  %v1680_v52 = vsel %vm6869_vm5, %v1395_v42, %v1679_v34  ;;  %v1376_v53 = vor.u32 %v1374_v35, %v1373_v43  ;;  %v1378_v54 = vrot.slane %v1373_v43, 4  ;;  %v3421_v27 = vld [vmem:[#allocation2 + $0x18] sm:$0xe]  ;;  %v1693_v34 = vld [vmem:[#allocation2 + $0x50] sm:$0x1] }
 0x1f6   : > { %1678 = vst.msk [vmem:[#allocation2 + $0x34] sm:$0xf] %vm1173_vm3, %v1394_v51  ;;  %1681 = vst [vmem:[#allocation2 + $0x38] sm:$0x1] %v1680_v52  ;;  %v5539_v55 = vpack.c.bf16 %v1151_v47, %v1151_v47  ;;  %v1149_v56 = vmax.f32 %v1047_v48, 0.0  ;;  %v1049_v59 = vpop.f32.mrf.mxu0  ;;  %3887 = vrot.lane.b32.xlu1 %v5390_v62, %s6171_s24  ;;  %v1058_v3 = vadd.f32 %v5743_v50, %v6849_v9  ;;  %v3489_v37 = vrot.slane %v3487_v17, 4 }
 0x1f7   : > { %v1377_v60 = vsel %vm6863_vm15, %v1369_v45, %v1376_v53  ;;  %v1673_v61 = vsel %vm6869_vm5, %v1378_v54, %v1672_v46  ;;  %v1050_v4 = vadd.f32 %v6849_v9, %v1049_v59  ;;  %v5389_v20 = vcombine.low %v6923_v15, %v6921_v8  ;;  %v1686_v39 = vld [vmem:[#allocation2 + $0x44] sm:$0x1]  ;;  %v2813_v50 = vld [vmem:[#allocation2 + $0x18] sm:$0xe]  ;;  %v6940_v53 = vld [vmem:[#allocation2 + $0x20] sm:$0x1] }
 0x1f8   : > { %1671 = vst.msk [vmem:[#allocation2 + $0x28] sm:$0xf] %vm1173_vm3, %v1377_v60  ;;  %1674 = vst [vmem:[#allocation2 + $0x2c] sm:$0x1] %v1673_v61  ;;  %v1414_v63 = vshrl.u32 %v5539_v55, 16  ;;  %v1417_v0 = vshll.u32 %v5539_v55, 16  ;;  %v5537_v2 = vpack.c.bf16 %v1149_v56, %v1149_v56 }
 0x1f9   : > { %v1152_v11 = vmax.f32 %v1058_v3, 0.0  ;;  %v1150_v12 = vmax.f32 %v1050_v4, 0.0  ;;  %v5325_v41 = vrot.slane %v3421_v27, 9  ;;  %v3490_v42 = vrot.slane %v6931_v25, 5  ;;  %v6943_v55 = vld [vmem:[#allocation2 + $0x1c] sm:$0xf] }
 0x1fa   : > { %v1416_v5 = vrot.slane %v1414_v63, 7  ;;  %v1397_v6 = vshrl.u32 %v5537_v2, 16  ;;  %v1400_v7 = vshll.u32 %v5537_v2, 16  ;;  %3885 = vrot.lane.b32.xlu1 %v5389_v20, %s6171_s24  ;;  %v2885_v54 = vrot.slane %v6902_v49, 5  ;;  %v6953_v62 = vld [vmem:[#allocation2 + $0x20] sm:$0x1] }
 0x1fb   : > { %v5540_v18 = vpack.c.bf16 %v1152_v11, %v1152_v11  ;;  %v5538_v19 = vpack.c.bf16 %v1150_v12, %v1150_v12  ;;  %v3488_v51 = vsel %vm6830_vm10, %v5325_v41, %v3487_v17  ;;  %v3491_v52 = vsel %vm6830_vm10, %v3489_v37, %v3490_v42  ;;  %v2203_v63 = vld [vmem:[#allocation2 + $0x18] sm:$0xe]  ;;  %v2812_v4 = vld [vmem:[#allocation2 + $0xc] sm:$0xe]  ;;  %v6960_v11 = vld [vmem:[#allocation2 + $0x14] sm:$0x1] }
 0x1fc   : > { %v1419_v13 = vor.u32 %v1417_v0, %v1416_v5  ;;  %v1399_v14 = vrot.slane %v1397_v6, 7  ;;  %v1420_v28 = vrot.slane %v1416_v5, 4  ;;  %v5746_v43 = vpop.f32.mrf.mxu0  ;;  %v5469_v0 = vcombine.low %v3488_v51, %v3491_v52 }
 0x1fd   : > { %v1422_v23 = vshrl.u32 %v5540_v18, 16  ;;  %v1405_v24 = vshrl.u32 %v5538_v19, 16  ;;  %v1425_v31 = vshll.u32 %v5540_v18, 16  ;;  %v1408_v36 = vshll.u32 %v5538_v19, 16 }
 0x1fe   : > { %v1690_v21 = vsel %vm6856_vm12, %v1419_v13, %v1689_v10  ;;  %v1402_v22 = vor.u32 %v1400_v7, %v1399_v14  ;;  %v1403_v38 = vrot.slane %v1399_v14, 4  ;;  %v5310_v2 = vrot.slane %v2813_v50, 9  ;;  %v1062_v5 = vpop.f32.mrf.mxu0  ;;  %5768 = vmatprep.mubr.msk.bf16.mxu0 %vm778_vm0, %v5469_v0 }
 0x1ff   : > { %1691 = vst [vmem:[#allocation2 + $0x48] sm:$0xf] %v1690_v21  ;;  %v1424_v33 = vrot.slane %v1422_v23, 7  ;;  %v1407_v35 = vrot.slane %v1405_v24, 7  ;;  %v2887_v3 = vrot.slane %v2885_v54, 4  ;;  %v2888_v6 = vrot.slane %v6940_v53, 5 }
 0x200   : > { %v1683_v30 = vsel %vm6856_vm12, %v1402_v22, %v1682_v16  ;;  %v1071_v7 = vadd.f32 %v5746_v43, %v6849_v9  ;;  %v2284_v10 = vrot.slane %v6943_v55, 5  ;;  %v2886_v12 = vsel %vm6830_vm10, %v5310_v2, %v2885_v54  ;;  %v6969_v21 = vld [vmem:[#allocation2 + $0x10] sm:$0xf]  ;;  %v6993_v2 = vld [vmem:[#allocation2 + $0x34] sm:$0xf] }
 0x201   : > { %1684 = vst [vmem:[#allocation2 + $0x3c] sm:$0xf] %v1683_v30  ;;  %v1427_v45 = vor.u32 %v1425_v31, %v1424_v33  ;;  %v1429_v46 = vrot.slane %v1424_v33, 4  ;;  %v1410_v47 = vor.u32 %v1408_v36, %v1407_v35  ;;  %v1412_v48 = vrot.slane %v1407_v35, 4  ;;  %v6978_v35 = vld [vmem:[#allocation2 + $0x14] sm:$0x1] }
 0x202   : > { %v5295_v13 = vrot.slane %v2203_v63, 9  ;;  %v2287_v14 = vrot.slane %v6953_v62, 5  ;;  %v2878_v16 = vrot.slane %v6921_v8, 5  ;;  %v2889_v17 = vsel %vm6830_vm10, %v2887_v3, %v2888_v6 }
 0x203   : > { %v1428_v56 = vsel %vm6863_vm15, %v1420_v28, %v1427_v45  ;;  %v1694_v59 = vsel %vm6869_vm5, %v1429_v46, %v1693_v34  ;;  %v1411_v60 = vsel %vm6863_vm15, %v1403_v38, %v1410_v47  ;;  %v1687_v61 = vsel %vm6869_vm5, %v1412_v48, %v1686_v39  ;;  %v5747_v28 = vpop.f32.mrf.mxu0  ;;  %v2202_v39 = vld [vmem:[#allocation2 + $0xc] sm:$0xe] }
 0x204   : > { %1692 = vst.msk [vmem:[#allocation2 + $0x4c] sm:$0xf] %vm1173_vm3, %v1428_v56  ;;  %1695 = vst [vmem:[#allocation2 + $0x50] sm:$0x1] %v1694_v59  ;;  %v1155_v18 = vmax.f32 %v1071_v7, 0.0  ;;  %v2286_v19 = vrot.slane %v2284_v10, 4  ;;  %v5422_v22 = vcombine.low %v2886_v12, %v2889_v17  ;;  %v2285_v23 = vsel %vm6830_vm10, %v5295_v13, %v2284_v10 }
 0x205   : > { %1685 = vst.msk [vmem:[#allocation2 + $0x40] sm:$0xf] %vm1173_vm3, %v1411_v60  ;;  %1688 = vst [vmem:[#allocation2 + $0x44] sm:$0x1] %v1687_v61  ;;  %v5309_v20 = vrot.slane %v2812_v4, 9  ;;  %v2880_v24 = vrot.slane %v2878_v16, 4  ;;  %v1063_v33 = vadd.f32 %v6849_v9, %v1062_v5  ;;  %v1074_v34 = vadd.f32 %v5747_v28, %v6849_v9  ;;  %v1065_v7 = vpop.f32.mrf.mxu0 }
 0x206   : > { %v2881_v27 = vrot.slane %v6960_v11, 5  ;;  %v5543_v30 = vpack.c.bf16 %v1155_v18, %v1155_v18  ;;  %v2288_v31 = vsel %vm6830_vm10, %v2286_v19, %v2287_v14  ;;  %v3038_v36 = vshrl.u32 %v6889_v26, 16  ;;  %4015 = vrot.lane.b32.xlu0 %v5422_v22, %s6170_s26  ;;  %v1703_v61 = vld [vmem:[#allocation2 + $0x60] sm:$0xf]  ;;  %v6998_v14 = vld [vmem:[#allocation2 + $0x30] sm:$0xf] }
 0x207   : > { %v5375_v37 = vcombine.low %v2285_v23, %v2288_v31  ;;  %v2277_v41 = vrot.slane %v6969_v21, 5  ;;  %v2879_v45 = vsel %vm6830_vm10, %v5309_v20, %v2878_v16  ;;  %v1153_v46 = vmax.f32 %v1063_v33, 0.0  ;;  %v1696_v19 = vld [vmem:[#allocation2 + $0x54] sm:$0xf]  ;;  %v1707_v31 = vld [vmem:[#allocation2 + $0x68] sm:$0x1] }
 0x208   : > { %v2882_v38 = vsel %vm6830_vm10, %v2880_v24, %v2881_v27  ;;  %v1448_v42 = vshrl.u32 %v5543_v30, 16  ;;  %v1451_v43 = vshll.u32 %v5543_v30, 16  ;;  %v1156_v48 = vmax.f32 %v1074_v34, 0.0  ;;  %v7009_v28 = vld [vmem:[#allocation2 + $0x34] sm:$0xf] }
 0x209   : > { %3793 = vrot.lane.b32.xlu1 %v5375_v37, %s6169_s15  ;;  %v5421_v47 = vcombine.low %v2879_v45, %v2882_v38  ;;  %v2279_v50 = vrot.slane %v2277_v41, 4  ;;  %v2280_v51 = vrot.slane %v6978_v35, 5  ;;  %v5541_v54 = vpack.c.bf16 %v1153_v46, %v1153_v46  ;;  %v7016_v38 = vld [vmem:[#allocation2 + $0x30] sm:$0xf] }
 0x20a   : > { %v1450_v52 = vrot.slane %v1448_v42, 7  ;;  %v5294_v56 = vrot.slane %v2202_v39, 9  ;;  %v3040_v59 = vrot.slane %v3038_v36, 4  ;;  %v3041_v60 = vshll.u32 %v6889_v26, 16 }
 0x20b   : > { %4013 = vrot.lane.b32.xlu0 %v5421_v47, %s6170_s26  ;;  %v5544_v63 = vpack.c.bf16 %v1156_v48, %v1156_v48  ;;  %v2281_v0 = vsel %vm6830_vm10, %v2279_v50, %v2280_v51  ;;  %v1431_v4 = vshrl.u32 %v5541_v54, 16  ;;  %v1434_v5 = vshll.u32 %v5541_v54, 16  ;;  %v7029_v50 = vld [vmem:[#allocation2 + $0x28] sm:$0xf]  ;;  %v3422_v51 = vld [vmem:[#allocation2 + $0x24] sm:$0xe] }
 0x20c   : > { %v1453_v3 = vor.u32 %v1451_v43, %v1450_v52  ;;  %v2278_v6 = vsel %vm6830_vm10, %v5294_v56, %v2277_v41  ;;  %v2453_v10 = vshrl.u32 %v6909_v57, 16  ;;  %v2456_v16 = vshll.u32 %v6909_v57, 16 }
 0x20d   : > { %v1456_v12 = vshrl.u32 %v5544_v63, 16  ;;  %v1459_v26 = vshll.u32 %v5544_v63, 16  ;;  %v5374_v13 = vcombine.low %v2278_v6, %v2281_v0  ;;  %v7003_v18 = vrot.slane %v1431_v4, 7  ;;  %v7036_v63 = vld [vmem:[#allocation2 + $0x2c] sm:$0x1] }
 0x20e   : > { %v1704_v17 = vsel %vm6856_vm12, %v1453_v3, %v1703_v61  ;;  %v5439_v20 = vcombine.low %v6998_v14, %v6993_v2  ;;  %v3043_v22 = vrot.slane %v3041_v60, 5  ;;  %v1454_v23 = vrot.slane %v1450_v52, 4  ;;  %v3423_v52 = vld [vmem:[#allocation2 + $0x30] sm:$0xe] }
 0x20f   : > { %1705 = vst [vmem:[#allocation2 + $0x60] sm:$0xf] %v1704_v17  ;;  %v1458_v24 = vrot.slane %v1456_v12, 7  ;;  %3791 = vrot.lane.b32.xlu1 %v5374_v13, %s6169_s15  ;;  %v1066_v27 = vadd.f32 %v6849_v9, %v1065_v7  ;;  %v3051_v57 = vshrl.u32 %v6891_v32, 16  ;;  %v1436_v30 = vor.u32 %v1434_v5, %v7003_v18  ;;  %v7040_v12 = vld [vmem:[#allocation2 + $0x38] sm:$0x1] }
 0x210   : > { %4113 = vrot.lane.b32.xlu0 %v5439_v20, %s6169_s15  ;;  %v7014_v33 = vrot.slane %v2453_v10, 4  ;;  %v7018_v39 = vrot.slane %v2456_v16, 5  ;;  %v3501_v42 = vrot.slane %v6993_v2, 5  ;;  %v5392_v43 = vcombine.low %v7016_v38, %v7009_v28  ;;  %v1700_v17 = vld [vmem:[#allocation2 + $0x5c] sm:$0x1] }
 0x211   : > { %v1461_v34 = vor.u32 %v1459_v26, %v1458_v24  ;;  %v1463_v36 = vrot.slane %v1458_v24, 4  ;;  %v1154_v37 = vmax.f32 %v1066_v27, 0.0  ;;  %v1697_v41 = vsel %vm6856_vm12, %v1436_v30, %v1696_v19 }
 0x212   : > { %1698 = vst [vmem:[#allocation2 + $0x54] sm:$0xf] %v1697_v41  ;;  %v3044_v48 = vor.u32 %v3043_v22, %v3040_v59  ;;  %v2466_v54 = vshrl.u32 %v6902_v49, 16  ;;  %v3047_v56 = vshll.u32 %v6891_v32, 16  ;;  %v3053_v60 = vrot.slane %v3051_v57, 4 }
 0x213   : > { %v1462_v45 = vsel %vm6863_vm15, %v1454_v23, %v1461_v34  ;;  %v1708_v46 = vsel %vm6869_vm5, %v1463_v36, %v1707_v31  ;;  %v5542_v47 = vpack.c.bf16 %v1154_v37, %v1154_v37  ;;  %3891 = vrot.lane.b32.xlu1 %v5392_v43, %s6171_s24  ;;  %v3057_v61 = vshll.u32 %v6931_v25, 16  ;;  %v1770_v25 = vld [vmem:[#allocation2 + $0x18] sm:$0xf] }
 0x214   : > { %1706 = vst.msk [vmem:[#allocation2 + $0x64] sm:$0xf] %vm1173_vm3, %v1462_v45  ;;  %1709 = vst [vmem:[#allocation2 + $0x68] sm:$0x1] %v1708_v46  ;;  %v1437_v59 = vrot.slane %v7003_v18, 4  ;;  %v3045_v4 = vrot.slane %v3044_v48, 4 }
 0x215   : > { %v1439_v0 = vshrl.u32 %v5542_v47, 16  ;;  %v1442_v3 = vshll.u32 %v5542_v47, 16  ;;  %v3049_v5 = vrot.slane %v3047_v56, 5  ;;  %v3059_v6 = vrot.slane %v3057_v61, 5 }
 0x216   : > { %v5326_v7 = vrot.slane %v3422_v51, 9  ;;  %v3494_v10 = vrot.slane %v7029_v50, 5  ;;  %v3497_v32 = vrot.slane %v7036_v63, 5  ;;  %v5327_v13 = vrot.slane %v3423_v52, 9 }
 0x217   : > { %v1441_v26 = vrot.slane %v1439_v0, 7  ;;  %v3503_v16 = vrot.slane %v3501_v42, 4  ;;  %v3050_v18 = vsel %vm6822_vm7, %v3045_v4, %v3049_v5  ;;  %v3054_v19 = vor.u32 %v3053_v60, %v3049_v5 }
 0x218   : > { %v3495_v20 = vsel %vm6830_vm10, %v5326_v7, %v3494_v10  ;;  %v3496_v22 = vrot.slane %v3494_v10, 4  ;;  %v3502_v27 = vsel %vm6830_vm10, %v5327_v13, %v3501_v42  ;;  %v3504_v57 = vrot.slane %v7040_v12, 5  ;;  %v7073_v7 = vld [vmem:[#allocation2 + $0x24] sm:$0xf]  ;;  %v1768_v13 = vld [vmem:[#allocation2 + $0xc] sm:$0xf] }
 0x219   : > { %v1444_v23 = vor.u32 %v1442_v3, %v1441_v26  ;;  %v1446_v24 = vrot.slane %v1441_v26, 4  ;;  %v3055_v30 = vrot.slane %v3054_v19, 4  ;;  %v1866_v34 = vshrl.u32 %v1770_v25, 16 }
 0x21a   : > { %v3498_v31 = vsel %vm6830_vm10, %v3496_v22, %v3497_v32  ;;  %v1869_v36 = vshll.u32 %v1770_v25, 16  ;;  %v3505_v45 = vsel %vm6830_vm10, %v3503_v16, %v3504_v57  ;;  %v2459_v51 = vor.u32 %v7018_v39, %v7014_v33  ;;  %v2815_v32 = vld [vmem:[#allocation2 + $0x30] sm:$0xe] }
 0x21b   : > { %v1445_v37 = vsel %vm6863_vm15, %v1437_v59, %v1444_v23  ;;  %v1701_v41 = vsel %vm6869_vm5, %v1446_v24, %v1700_v17  ;;  %v5470_v43 = vcombine.low %v3495_v20, %v3498_v31  ;;  %v3060_v42 = vsel %vm6822_vm7, %v3055_v30, %v3059_v6  ;;  %v7097_v31 = vld [vmem:[#allocation2 + $0x24] sm:$0xf] }
 0x21c   : > { %1699 = vst.msk [vmem:[#allocation2 + $0x58] sm:$0xf] %vm1173_vm3, %v1445_v37  ;;  %1702 = vst [vmem:[#allocation2 + $0x5c] sm:$0x1] %v1701_v41  ;;  %v5471_v46 = vcombine.low %v3502_v27, %v3505_v45  ;;  %v1868_v47 = vrot.slane %v1866_v34, 4  ;;  %v1871_v48 = vrot.slane %v1869_v36, 5  ;;  %v5453_v52 = vcombine.low %v3050_v18, %v3060_v42 }
 0x21d   : > { %5769 = vmatmul.mubr.msk.bf16.vlgmr.msra.gmra.mxu0 %vm778_vm0, %v5470_v43  ;;  %v1875_v56 = vshll.u32 %v6943_v55, 16  ;;  %v1879_v60 = vshrl.u32 %v6943_v55, 16  ;;  %v2442_v61 = vshrl.u32 %v6921_v8, 16  ;;  %v2429_v59 = vshrl.u32 %v6923_v15, 16  ;;  %v7088_v18 = vld [vmem:[#allocation2 + $0x38] sm:$0x1] }
 0x21e   : > { %v2432_v0 = vshll.u32 %v6923_v15, 16  ;;  %5772 = vmatprep.mubr.msk.bf16.mxu0 %vm778_vm0, %v5471_v46  ;;  %v1872_v3 = vor.u32 %v1871_v48, %v1868_v47  ;;  %4189 = vrot.lane.b32.xlu0 %v5453_v52, %s6171_s24  ;;  %v1885_v39 = vshll.u32 %v6953_v62, 16  ;;  %v7075_v55 = vrot.slane %v2466_v54, 4  ;;  %8897 = vst [vmem:[#allocation22_spill] sm:$0xff] %v7088_v18  ;;  %v7099_v34 = vld [vmem:[#allocation2 + $0x28] sm:$0xf] }
 0x21f   : > { %v1877_v4 = vrot.slane %v1875_v56, 5  ;;  %v1881_v33 = vrot.slane %v1879_v60, 4  ;;  %v5438_v15 = vcombine.low %v7073_v7, %v7029_v50  ;;  %v7080_v16 = vrot.slane %v2459_v51, 4  ;;  %8898 = vst [vmem:[#allocation23_spill] sm:$0xff] %v7099_v34  ;;  %v7105_v47 = vld [vmem:[#allocation2 + $0x2c] sm:$0x1] }
 0x220   : > { %v1873_v6 = vrot.slane %v1872_v3, 4  ;;  %v7082_v25 = vrot.slane %v2442_v61, 4  ;;  %v7084_v62 = vrot.slane %v2429_v59, 4  ;;  %v7086_v17 = vrot.slane %v2432_v0, 5  ;;  %8899 = vst [vmem:[#allocation24_spill] sm:$0xff] %v7105_v47 }
 0x221   : > { %v1882_v26 = vor.u32 %v1881_v33, %v1877_v4  ;;  %v1887_v20 = vrot.slane %v1885_v39, 5  ;;  %v2899_v22 = vrot.slane %v7009_v28, 5  ;;  %v5312_v24 = vrot.slane %v2815_v32, 9  ;;  %v2814_v48 = vld [vmem:[#allocation2 + $0x24] sm:$0xe]  ;;  %v5750_v33 = vpop.f32.mrf.mxu0 }
 0x222   : > { %4111 = vrot.lane.b32.xlu0 %v5438_v15, %s6169_s15  ;;  %v1878_v23 = vsel %vm6822_vm7, %v1873_v6, %v1877_v4  ;;  %v1842_v27 = vshrl.u32 %v1768_v13, 16  ;;  %v1845_v57 = vshll.u32 %v1768_v13, 16  ;;  %v2902_v37 = vrot.slane %v7088_v18, 5  ;;  %v7111_v61 = vld [vmem:[#allocation2 + $0x40] sm:$0xf] }
 0x223   : > { %v1883_v19 = vrot.slane %v1882_v26, 4  ;;  %v2901_v36 = vrot.slane %v2899_v22, 4  ;;  %v1851_v41 = vshll.u32 %v6969_v21, 16  ;;  %v2900_v45 = vsel %vm6830_vm10, %v5312_v24, %v2899_v22  ;;  %v3424_v39 = vld [vmem:[#allocation2 + $0x3c] sm:$0xe] }
 0x224   : > { %v1844_v42 = vrot.slane %v1842_v27, 4  ;;  %v1847_v46 = vrot.slane %v1845_v57, 5  ;;  %v1855_v56 = vshrl.u32 %v6969_v21, 16  ;;  %v1861_v60 = vshll.u32 %v6978_v35, 16  ;;  %v7118_v32 = vld [vmem:[#allocation2 + $0x44] sm:$0x1] }
 0x225   : > { %v1888_v30 = vsel %vm6822_vm7, %v1883_v19, %v1887_v20  ;;  %v2903_v51 = vsel %vm6830_vm10, %v2901_v36, %v2902_v37  ;;  %v1853_v52 = vrot.slane %v1851_v41, 5  ;;  %v3086_v59 = vshrl.u32 %v6998_v14, 16  ;;  %v7124_v22 = vld [vmem:[#allocation2 + $0x4c] sm:$0xf] }
 0x226   : > { %v5359_v43 = vcombine.low %v1878_v23, %v1888_v30  ;;  %v5391_v0 = vcombine.low %v7097_v31, %v7099_v34  ;;  %v5424_v3 = vcombine.low %v2900_v45, %v2903_v51  ;;  %v1848_v4 = vor.u32 %v1847_v46, %v1844_v42  ;;  %v3425_v30 = vld [vmem:[#allocation2 + $0x48] sm:$0xe]  ;;  %v7132_v45 = vld [vmem:[#allocation2 + $0x50] sm:$0x1]  ;;  %v1078_v42 = vpop.f32.mrf.mxu0 }
 0x227   : > { %v1857_v6 = vrot.slane %v1855_v56, 4  ;;  %v1863_v26 = vrot.slane %v1861_v60, 5  ;;  %v5311_v15 = vrot.slane %v2814_v48, 9  ;;  %v2892_v21 = vrot.slane %v7099_v34, 5 }
 0x228   : > { %3713 = vrot.lane.b32.xlu1 %v5359_v43, %s6170_s26  ;;  %4019 = vrot.lane.b32.xlu0 %v5424_v3, %s6170_s26  ;;  %v1849_v35 = vrot.slane %v1848_v4, 4  ;;  %v2895_v13 = vrot.slane %v7105_v47, 5  ;;  %v1087_v19 = vadd.f32 %v5750_v33, %v6849_v9  ;;  %v3508_v20 = vrot.slane %v7111_v61, 5  ;;  %v7141_v4 = vld [vmem:[#allocation2 + $0x34] sm:$0xf]  ;;  %v7614_v47 = vpop.permute.xlu1 %3709 }
 0x229   : > { %v1858_v23 = vor.u32 %v1857_v6, %v1853_v52  ;;  %v2893_v24 = vsel %vm6830_vm10, %v5311_v15, %v2892_v21  ;;  %v2894_v27 = vrot.slane %v2892_v21, 4  ;;  %v5328_v57 = vrot.slane %v3424_v39, 9  ;;  %v2205_v21 = vld [vmem:[#allocation2 + $0x30] sm:$0xe] }
 0x22a   : > { %v1854_v36 = vsel %vm6822_vm7, %v1849_v35, %v1853_v52  ;;  %v1159_v37 = vmax.f32 %v1087_v19, 0.0  ;;  %v3510_v41 = vrot.slane %v3508_v20, 4  ;;  %v3511_v43 = vrot.slane %v7118_v32, 5 }
 0x22b   : > { %v1859_v46 = vrot.slane %v1858_v23, 4  ;;  %v2896_v48 = vsel %vm6830_vm10, %v2894_v27, %v2895_v13  ;;  %v3509_v51 = vsel %vm6830_vm10, %v5328_v57, %v3508_v20  ;;  %v3515_v56 = vrot.slane %v7124_v22, 5  ;;  %v7148_v23 = vld [vmem:[#allocation2 + $0x38] sm:$0x1] }
 0x22c   : > { %3889 = vrot.lane.b32.xlu1 %v5391_v0, %s6171_s24  ;;  %v5423_v60 = vcombine.low %v2893_v24, %v2896_v48  ;;  %v5547_v0 = vpack.c.bf16 %v1159_v37, %v1159_v37  ;;  %v3512_v52 = vsel %vm6830_vm10, %v3510_v41, %v3511_v43  ;;  %v5329_v3 = vrot.slane %v3425_v30, 9  ;;  %v5751_v24 = vpop.f32.mrf.mxu0  ;;  %v1717_v27 = vld [vmem:[#allocation2 + $0x78] sm:$0xf]  ;;  %v7162_v48 = vld [vmem:[#allocation2 + $0x48] sm:$0xf] }
 0x22d   : > { %v1864_v33 = vsel %vm6822_vm7, %v1859_v46, %v1863_v26  ;;  %v5472_v39 = vcombine.low %v3509_v51, %v3512_v52  ;;  %v3517_v6 = vrot.slane %v3515_v56, 4  ;;  %v3518_v15 = vrot.slane %v7132_v45, 5  ;;  %v7164_v51 = vld [vmem:[#allocation2 + $0x28] sm:$0xf]  ;;  %v2204_v52 = vld [vmem:[#allocation2 + $0x24] sm:$0xe] }
 0x22e   : > { %v3089_v35 = vshll.u32 %v6998_v14, 16  ;;  %v5358_v13 = vcombine.low %v1854_v36, %v1864_v33  ;;  %4017 = vrot.lane.b32.xlu0 %v5423_v60, %s6170_s26  ;;  %v1482_v19 = vshrl.u32 %v5547_v0, 16  ;;  %v1485_v20 = vshll.u32 %v5547_v0, 16 }
 0x22f   : > { %5773 = vmatmul.mubr.msk.bf16.gmra.mxu0 %vm778_vm0, %v5472_v39  ;;  %v3516_v26 = vsel %vm6830_vm10, %v5329_v3, %v3515_v56  ;;  %v3519_v57 = vsel %vm6830_vm10, %v3517_v6, %v3518_v15  ;;  %v2298_v30 = vrot.slane %v7141_v4, 5  ;;  %v1079_v36 = vadd.f32 %v6849_v9, %v1078_v42  ;;  %v1081_v15 = vpop.f32.mrf.mxu0 }
 0x230   : > { %v2435_v37 = vor.u32 %v7086_v17, %v7084_v62  ;;  %3711 = vrot.lane.b32.xlu1 %v5358_v13, %s6170_s26  ;;  %v7160_v41 = vrot.slane %v1482_v19, 7  ;;  %v5473_v43 = vcombine.low %v3516_v26, %v3519_v57  ;;  %v5297_v46 = vrot.slane %v2205_v21, 9  ;;  %v7254_v17 = vld [vmem:[#allocation2 + $0x3c] sm:$0xf] }
 0x231   : > { %v2300_v56 = vrot.slane %v2298_v30, 4  ;;  %v2301_v60 = vrot.slane %v7148_v23, 5  ;;  %v1157_v0 = vmax.f32 %v1079_v36, 0.0  ;;  %v5441_v42 = vcombine.low %v7162_v48, %v7124_v22 }
 0x232   : > { %v3088_v3 = vrot.slane %v3086_v59, 4  ;;  %v3091_v33 = vrot.slane %v3089_v35, 5  ;;  %v3099_v39 = vshrl.u32 %v6993_v2, 16  ;;  %v1487_v6 = vor.u32 %v1485_v20, %v7160_v41  ;;  %5776 = vmatprep.mubr.msk.bf16.mxu0 %vm778_vm0, %v5473_v43  ;;  %v7180_v59 = vld [vmem:[#allocation2 + $0x2c] sm:$0x1]  ;;  %v5895_v35 = vld [vmem:[%s8832_s6 + $0x78] sm:$0xff]  }
 0x233   : > { %v2299_v21 = vsel %vm6830_vm10, %v5297_v46, %v2298_v30  ;;  %v2302_v13 = vsel %vm6830_vm10, %v2300_v56, %v2301_v60  ;;  %v5545_v19 = vpack.c.bf16 %v1157_v0, %v1157_v0  ;;  %4117 = vrot.lane.b32.xlu0 %v5441_v42, %s6169_s15  ;;  %v1090_v14 = vadd.f32 %v5751_v24, %v6849_v9  ;;  %v5896_v20 = vld [vmem:[%s8832_s6 + $0x38] sm:$0xff]  }
 0x234   : > { %v1718_v26 = vsel %vm6856_vm12, %v1487_v6, %v1717_v27  ;;  %v5377_v57 = vcombine.low %v2299_v21, %v2302_v13  ;;  %v5296_v30 = vrot.slane %v2204_v52, 9  ;;  %v2291_v36 = vrot.slane %v7164_v51, 5  ;;  %5586 = vmatprep.subr.bf16.mxu1 %v5895_v35  ;;  %v5898_v13 = vld [vmem:[%s8832_s6 + $0x70] sm:$0xff]  }
 0x235   : > { %1719 = vst [vmem:[#allocation2 + $0x78] sm:$0xf] %v1718_v26  ;;  %v1465_v43 = vshrl.u32 %v5545_v19, 16  ;;  %v1468_v24 = vshll.u32 %v5545_v19, 16  ;;  %v1160_v46 = vmax.f32 %v1090_v14, 0.0  ;;  %v1082_v56 = vadd.f32 %v6849_v9, %v1081_v15  ;;  %5587 = vmatpush3.bf16.msra.mxu1 %v5896_v20  ;;  %v5899_v9 = vld [vmem:[%s8832_s6 + $0x30] sm:$0xff]  }
 0x236   : > { %3797 = vrot.lane.b32.xlu1 %v5377_v57, %s6169_s15  ;;  %v2293_v60 = vrot.slane %v2291_v36, 4  ;;  %v2294_v0 = vrot.slane %v7180_v59, 5  ;;  %v3092_v42 = vor.u32 %v3091_v33, %v3088_v3  ;;  %v3095_v10 = vshll.u32 %v6993_v2, 16  ;;  %v1710_v19 = vld [vmem:[#allocation2 + $0x6c] sm:$0xf]  ;;  %5588 = vmatprep.subr.bf16.mxu1 %v5898_v13 }
 0x237   : > { %v7195_v27 = vrot.slane %v1465_v43, 7  ;;  %v5548_v52 = vpack.c.bf16 %v1160_v46, %v1160_v46  ;;  %v1158_v6 = vmax.f32 %v1082_v56, 0.0  ;;  %v3101_v21 = vrot.slane %v3099_v39, 4 }
 0x238   : > { %v2501_v15 = vshrl.u32 %v7016_v38, 16  ;;  %v2295_v2 = vsel %vm6830_vm10, %v2293_v60, %v2294_v0  ;;  %v3097_v3 = vrot.slane %v3095_v10, 5  ;;  %v3105_v33 = vshll.u32 %v7040_v12, 16 }
 0x239   : > { %v1470_v14 = vor.u32 %v1468_v24, %v7195_v27  ;;  %v1490_v39 = vshrl.u32 %v5548_v52, 16  ;;  %v1493_v35 = vshll.u32 %v5548_v52, 16  ;;  %v2292_v20 = vsel %vm6830_vm10, %v5296_v30, %v2291_v36  ;;  %5589 = vmatpush3.bf16.msra.mxu1 %v5899_v9  ;;  %v1721_v24 = vld [vmem:[#allocation2 + $0x80] sm:$0x1] }
 0x23a   : > { %v5376_v26 = vcombine.low %v2292_v20, %v2295_v2  ;;  %v5546_v57 = vpack.c.bf16 %v1158_v6, %v1158_v6  ;;  %v3093_v43 = vrot.slane %v3092_v42, 4  ;;  %v3102_v46 = vor.u32 %v3101_v21, %v3097_v3  ;;  %v7215_v6 = vld [vmem:[#allocation2 + $0x4c] sm:$0xf] }
 0x23b   : > { %v2504_v56 = vshll.u32 %v7016_v38, 16  ;;  %v1488_v60 = vrot.slane %v7160_v41, 4  ;;  %v1711_v12 = vsel %vm6856_vm12, %v1470_v14, %v1710_v19  ;;  %v1492_v10 = vrot.slane %v1490_v39, 7  ;;  %8900 = vst [vmem:[#allocation25_spill] sm:$0xff] %v7215_v6  ;;  %v7224_v14 = vld [vmem:[#allocation2 + $0x48] sm:$0xf] }
 0x23c   : > { %1712 = vst [vmem:[#allocation2 + $0x6c] sm:$0xf] %v1711_v12  ;;  %3795 = vrot.lane.b32.xlu1 %v5376_v26, %s6169_s15  ;;  %v1473_v0 = vshrl.u32 %v5546_v57, 16  ;;  %v1476_v30 = vshll.u32 %v5546_v57, 16  ;;  %v3103_v36 = vrot.slane %v3102_v46, 4  ;;  %v3107_v52 = vrot.slane %v3105_v33, 5 }
 0x23d   : > { %v3062_v42 = vshrl.u32 %v7073_v7, 16  ;;  %v3065_v38 = vshll.u32 %v7073_v7, 16  ;;  %v1495_v21 = vor.u32 %v1493_v35, %v1492_v10  ;;  %v1497_v41 = vrot.slane %v1492_v10, 4  ;;  %v3426_v33 = vld [vmem:[#allocation2 + $0x54] sm:$0xe] }
 0x23e   : > { %v1471_v13 = vrot.slane %v7195_v27, 4  ;;  %v1475_v9 = vrot.slane %v1473_v0, 7  ;;  %v3098_v19 = vsel %vm6822_vm7, %v3093_v43, %v3097_v3  ;;  %v3108_v2 = vsel %vm6822_vm7, %v3103_v36, %v3107_v52  ;;  %v1714_v35 = vld [vmem:[#allocation2 + $0x74] sm:$0x1]  ;;  %v7232_v26 = vld [vmem:[#allocation2 + $0x58] sm:$0xf] }
 0x23f   : > { %v1496_v39 = vsel %vm6863_vm15, %v1488_v60, %v1495_v21  ;;  %v1722_v7 = vsel %vm6869_vm5, %v1497_v41, %v1721_v24  ;;  %v5455_v20 = vcombine.low %v3098_v19, %v3108_v2  ;;  %v5394_v27 = vcombine.low %v7224_v14, %v7215_v6  ;;  %v3026_v43 = vld [vmem:[#allocation2 + $0x5c] sm:$0x1]  ;;  %v1774_v46 = vld [vmem:[#allocation2 + $0x30] sm:$0xf]  ;;  %v5900_v60 = vld [vmem:[%s8832_s6 + $0x68] sm:$0xff]  }
 0x240   : > { %1720 = vst.msk [vmem:[#allocation2 + $0x7c] sm:$0xf] %vm1173_vm3, %v1496_v39  ;;  %1723 = vst [vmem:[#allocation2 + $0x80] sm:$0x1] %v1722_v7  ;;  %v1478_v3 = vor.u32 %v1476_v30, %v1475_v9  ;;  %v1480_v57 = vrot.slane %v1475_v9, 4  ;;  %v7241_v12 = vrot.slane %v2435_v37, 4  ;;  %5590 = vmatprep.subr.bf16.mxu1 %v5900_v60 }
 0x241   : > { %v7243_v10 = vrot.slane %v2501_v15, 4  ;;  %v2506_v24 = vrot.slane %v2504_v56, 5  ;;  %4193 = vrot.lane.b32.xlu0 %v5455_v20, %s6171_s24  ;;  %3895 = vrot.lane.b32.xlu1 %v5394_v27, %s6171_s24  ;;  %v5330_v0 = vrot.slane %v3426_v33, 9  ;;  %v5901_v30 = vld [vmem:[%s8832_s6 + $0x28] sm:$0xff]   ;;  %v3064_v36 = vrot.slane %v3062_v42, 4 }
 0x242   : > { %v1479_v52 = vsel %vm6863_vm15, %v1471_v13, %v1478_v3  ;;  %v1715_v62 = vsel %vm6869_vm5, %v1480_v57, %v1714_v35  ;;  %v3522_v37 = vrot.slane %v7232_v26, 5  ;;  %v3067_v15 = vrot.slane %v3065_v38, 5  ;;  %5591 = vmatpush3.bf16.msra.mxu1 %v5901_v30  ;;  %v3427_v7 = vld [vmem:[#allocation2 + $0x60] sm:$0xe]  ;;  %v7270_v57 = vld [vmem:[#allocation2 + $0x68] sm:$0x1] }
 0x243   : > { %1713 = vst.msk [vmem:[#allocation2 + $0x70] sm:$0xf] %vm1173_vm3, %v1479_v52  ;;  %1716 = vst [vmem:[#allocation2 + $0x74] sm:$0x1] %v1715_v62  ;;  %v5440_v56 = vcombine.low %v7254_v17, %v7111_v61  ;;  %v3525_v21 = vrot.slane %v3026_v43, 5  ;;  %v1914_v42 = vshrl.u32 %v1774_v46, 16 }
 0x244   : > { %v3523_v41 = vsel %vm6830_vm10, %v5330_v0, %v3522_v37  ;;  %v3524_v13 = vrot.slane %v3522_v37, 4  ;;  %v1917_v9 = vshll.u32 %v1774_v46, 16  ;;  %v1923_v19 = vshll.u32 %v7141_v4, 16  ;;  %v5903_v43 = vld [vmem:[%s8832_s6 + $0x60] sm:$0xff]  }
 0x245   : > { %v2514_v38 = vshrl.u32 %v7009_v28, 16  ;;  %4115 = vrot.lane.b32.xlu0 %v5440_v56, %s6169_s15  ;;  %v1916_v33 = vrot.slane %v1914_v42, 4  ;;  %v1927_v39 = vshrl.u32 %v7141_v4, 16  ;;  %v3071_v3 = vshll.u32 %v7029_v50, 16  ;;  %v7278_v56 = vld [vmem:[#allocation2 + $0x64] sm:$0xf]  ;;  %5592 = vmatprep.subr.bf16.mxu1 %v5903_v43 }
 0x246   : > { %v3526_v35 = vsel %vm6830_vm10, %v3524_v13, %v3525_v21  ;;  %v1919_v20 = vrot.slane %v1917_v9, 5  ;;  %v1925_v27 = vrot.slane %v1923_v19, 5  ;;  %v2507_v46 = vor.u32 %v2506_v24, %v7243_v10 }
 0x247   : > { %v5474_v60 = vcombine.low %v3523_v41, %v3526_v35  ;;  %v1929_v0 = vrot.slane %v1927_v39, 4  ;;  %v1933_v4 = vshll.u32 %v7148_v23, 16  ;;  %v3068_v52 = vor.u32 %v3067_v15, %v3064_v36  ;;  %v7338_v39 = vld [vmem:[#allocation2 + $0x44] sm:$0x1] }
 0x248   : > { %v1920_v30 = vor.u32 %v1919_v20, %v1916_v33  ;;  %v3073_v62 = vrot.slane %v3071_v3, 5  ;;  %v3075_v37 = vshrl.u32 %v7029_v50, 16  ;;  %v5331_v42 = vrot.slane %v3427_v7, 9  ;;  %v5904_v33 = vld [vmem:[%s8832_s6 + $0x20] sm:$0xff]   ;;  %8905 = vst [vmem:[#allocation30_spill] sm:$0xff] %v7338_v39 }
 0x249   : > { %5777 = vmatmul.mubr.msk.bf16.gmra.mxu0 %vm778_vm0, %v5474_v60  ;;  %v1930_v21 = vor.u32 %v1929_v0, %v1925_v27  ;;  %v3529_v13 = vrot.slane %v7278_v56, 5  ;;  %v3532_v10 = vrot.slane %v7270_v57, 5  ;;  %v2477_v24 = vshrl.u32 %v7097_v31, 16  ;;  %v7301_v0 = vld [vmem:[#allocation2 + $0x3c] sm:$0xf]  ;;  %5593 = vmatpush3.bf16.msra.mxu1 %v5904_v33 }
 0x24a   : > { %v1921_v41 = vrot.slane %v1920_v30, 4  ;;  %v3077_v23 = vrot.slane %v3075_v37, 4  ;;  %v3081_v36 = vshll.u32 %v7036_v63, 16  ;;  %v1935_v9 = vrot.slane %v1933_v4, 5  ;;  %v7303_v4 = vld [vmem:[#allocation2 + $0x40] sm:$0xf] }
 0x24b   : > { %v1931_v15 = vrot.slane %v1930_v21, 4  ;;  %v3530_v50 = vsel %vm6830_vm10, %v5331_v42, %v3529_v13  ;;  %v3531_v19 = vrot.slane %v3529_v13, 4  ;;  %v7291_v7 = vrot.slane %v2514_v38, 4  ;;  %8903 = vst [vmem:[#allocation28_spill] sm:$0xff] %v7303_v4  ;;  %v1772_v21 = vld [vmem:[#allocation2 + $0x24] sm:$0xf] }
 0x24c   : > { %v3069_v35 = vrot.slane %v3068_v52, 4  ;;  %v3078_v20 = vor.u32 %v3077_v23, %v3073_v62  ;;  %v7293_v3 = vrot.slane %v2507_v46, 4  ;;  %v1926_v63 = vsel %vm6822_vm7, %v1921_v41, %v1925_v27  ;;  %v7305_v46 = vld [vmem:[#allocation2 + $0x50] sm:$0x1]  ;;  %v2817_v41 = vld [vmem:[#allocation2 + $0x48] sm:$0xe] }
 0x24d   : > { %8901 = vst [vmem:[#allocation26_spill] sm:$0xff] %v7291_v7  ;;  %v1936_v43 = vsel %vm6822_vm7, %v1931_v15, %v1935_v9  ;;  %v3533_v60 = vsel %vm6830_vm10, %v3531_v19, %v3532_v10  ;;  %v3083_v52 = vrot.slane %v3081_v36, 5  ;;  %8904 = vst [vmem:[#allocation29_spill] sm:$0xff] %v7305_v46  ;;  %v7307_v42 = vrot.slane %v2477_v24, 4  ;;  %v5754_v9 = vpop.f32.mrf.mxu0 }
 0x24e   : > { %8902 = vst [vmem:[#allocation27_spill] sm:$0xff] %v7293_v3  ;;  %v5361_v38 = vcombine.low %v1926_v63, %v1936_v43  ;;  %v3079_v30 = vrot.slane %v3078_v20, 4  ;;  %v5475_v37 = vcombine.low %v3530_v50, %v3533_v60  ;;  %v2480_v27 = vshll.u32 %v7097_v31, 16 }
 0x24f   : > { %v3074_v23 = vsel %vm6822_vm7, %v3069_v35, %v3073_v62  ;;  %v5393_v24 = vcombine.low %v7301_v0, %v7303_v4  ;;  %v2913_v15 = vrot.slane %v7215_v6, 5  ;;  %v1890_v19 = vshrl.u32 %v1772_v21, 16  ;;  %v5905_v62 = vld [vmem:[%s8832_s6 + $0x58] sm:$0xff]  }
 0x250   : > { %3717 = vrot.lane.b32.xlu1 %v5361_v38, %s6170_s26  ;;  %v3084_v36 = vsel %vm6822_vm7, %v3079_v30, %v3083_v52  ;;  %5780 = vmatprep.mubr.msk.bf16.mxu0 %vm778_vm0, %v5475_v37  ;;  %v1893_v33 = vshll.u32 %v1772_v21, 16  ;;  %v1899_v20 = vshll.u32 %v7164_v51, 16  ;;  %v5314_v35 = vrot.slane %v2817_v41, 9  ;;  %v5906_v38 = vld [vmem:[%s8832_s6 + $0x18] sm:$0xff]  }
 0x251   : > { %v5454_v50 = vcombine.low %v3074_v23, %v3084_v36  ;;  %v2915_v63 = vrot.slane %v2913_v15, 4  ;;  %v2916_v43 = vrot.slane %v7305_v46, 5  ;;  %v1903_v60 = vshrl.u32 %v7164_v51, 16  ;;  %v2816_v23 = vld [vmem:[#allocation2 + $0x3c] sm:$0xe]  ;;  %5594 = vmatprep.subr.bf16.mxu1 %v5905_v62 }
 0x252   : > { %v1892_v30 = vrot.slane %v1890_v19, 4  ;;  %v1895_v52 = vrot.slane %v1893_v33, 5  ;;  %v1901_v37 = vrot.slane %v1899_v20, 5  ;;  %v1909_v21 = vshll.u32 %v7180_v59, 16  ;;  %v1094_v19 = vpop.f32.mrf.mxu0  ;;  %5595 = vmatpush3.bf16.msra.mxu1 %v5906_v38 }
 0x253   : > { %4191 = vrot.lane.b32.xlu0 %v5454_v50, %s6171_s24  ;;  %v3134_v41 = vshrl.u32 %v7162_v48, 16  ;;  %v2914_v51 = vsel %vm6830_vm10, %v5314_v35, %v2913_v15  ;;  %v2917_v36 = vsel %vm6830_vm10, %v2915_v63, %v2916_v43  ;;  %v1905_v13 = vrot.slane %v1903_v60, 4  ;;  %v7340_v50 = vld [vmem:[#allocation2 + $0x4c] sm:$0xf]  ;;  %v7347_v15 = vld [vmem:[%s8831_s5] ss:$0 sm:$0xff] }
 0x254   : > { %3893 = vrot.lane.b32.xlu1 %v5393_v24, %s6171_s24  ;;  %v3137_v59 = vshll.u32 %v7162_v48, 16  ;;  %v5426_v33 = vcombine.low %v2914_v51, %v2917_v36  ;;  %v1896_v20 = vor.u32 %v1895_v52, %v1892_v30  ;;  %v2906_v62 = vrot.slane %v7303_v4, 5  ;;  %v7350_v63 = vld [vmem:[#allocation2 + $0x50] sm:$0x1]  ;;  %v5755_v36 = vpop.f32.mrf.mxu0 }
 0x255   : > { %v1906_v24 = vor.u32 %v1905_v13, %v1901_v37  ;;  %v1911_v2 = vrot.slane %v1909_v21, 5  ;;  %v5313_v54 = vrot.slane %v2816_v23, 9  ;;  %v1103_v35 = vadd.f32 %v7347_v15, %v5754_v9  ;;  %v5908_v48 = vld [vmem:[%s8832_s6 + $0x50] sm:$0xff]   ;;  %v2207_v23 = vld [vmem:[#allocation2 + $0x48] sm:$0xe] }
 0x256   : > { %v5909_v43 = vld [vmem:[%s8832_s6 + $0x10] sm:$0xff]   ;;  %v1897_v13 = vrot.slane %v1896_v20, 4  ;;  %v2908_v60 = vrot.slane %v2906_v62, 4  ;;  %v2909_v38 = vrot.slane %v7338_v39, 5  ;;  %v2312_v30 = vrot.slane %v7340_v50, 5  ;;  %5596 = vmatprep.subr.bf16.mxu1 %v5908_v48 }
 0x257   : > { %4023 = vrot.lane.b32.xlu0 %v5426_v33, %s6170_s26  ;;  %v1907_v52 = vrot.slane %v1906_v24, 4  ;;  %v2907_v9 = vsel %vm6830_vm10, %v5313_v54, %v2906_v62  ;;  %v1163_v21 = vmax.f32 %v1103_v35, 0.0  ;;  %v1095_v51 = vadd.f32 %v7347_v15, %v1094_v19  ;;  %5597 = vmatpush3.bf16.msra.mxu1 %v5909_v43  ;;  %v1724_v48 = vld [vmem:[#allocation2 + $0x84] sm:$0xf] }
 0x258   : > { %v1902_v5 = vsel %vm6822_vm7, %v1897_v13, %v1901_v37  ;;  %v2910_v33 = vsel %vm6830_vm10, %v2908_v60, %v2909_v38  ;;  %v2314_v20 = vrot.slane %v2312_v30, 4  ;;  %v2315_v10 = vrot.slane %v7350_v63, 5 }
 0x259   : > { %v1912_v24 = vsel %vm6822_vm7, %v1907_v52, %v1911_v2  ;;  %v5425_v54 = vcombine.low %v2907_v9, %v2910_v33  ;;  %v5551_v62 = vpack.c.bf16 %v1163_v21, %v1163_v21  ;;  %v1161_v35 = vmax.f32 %v1095_v51, 0.0  ;;  %v7379_v2 = vld [vmem:[#allocation2 + $0x40] sm:$0xf]  ;;  %v7381_v52 = vld [vmem:[#allocation2 + $0x44] sm:$0x1]  ;;  %v1097_v9 = vpop.f32.mrf.mxu0 }
 0x25a   : > { %v7373_v19 = vrot.slane %v2480_v27, 5  ;;  %v5360_v37 = vcombine.low %v1902_v5, %v1912_v24  ;;  %v5299_v13 = vrot.slane %v2207_v23, 9  ;;  %v2316_v43 = vsel %vm6830_vm10, %v2314_v20, %v2315_v10  ;;  %v7390_v21 = vld [vmem:[#allocation2 + $0x60] sm:$0xf]  ;;  %v2206_v10 = vld [vmem:[#allocation2 + $0x3c] sm:$0xe] }
 0x25b   : > { %4021 = vrot.lane.b32.xlu0 %v5425_v54, %s6170_s26  ;;  %v1516_v60 = vshrl.u32 %v5551_v62, 16  ;;  %v1519_v38 = vshll.u32 %v5551_v62, 16  ;;  %v5549_v7 = vpack.c.bf16 %v1161_v35, %v1161_v35  ;;  %v7383_v31 = vrot.slane %v3134_v41, 4  ;;  %v1731_v24 = vld [vmem:[#allocation2 + $0x90] sm:$0xf] }
 0x25c   : > { %v7385_v27 = vrot.slane %v3137_v59, 5  ;;  %3715 = vrot.lane.b32.xlu1 %v5360_v37, %s6170_s26  ;;  %v2313_v5 = vsel %vm6830_vm10, %v5299_v13, %v2312_v30  ;;  %v1106_v23 = vadd.f32 %v7347_v15, %v5755_v36  ;;  %v5443_v41 = vcombine.low %v7390_v21, %v7278_v56  ;;  %v5910_v59 = vld [vmem:[%s8832_s6 + $0x48] sm:$0xff]  }
 0x25d   : > { %v7393_v51 = vrot.slane %v1516_v60, 7  ;;  %v1499_v33 = vshrl.u32 %v5549_v7, 16  ;;  %v1502_v20 = vshll.u32 %v5549_v7, 16  ;;  %v5911_v30 = vld [vmem:[%s8832_s6 + $0x8] sm:$0xff]   ;;  %v5379_v54 = vcombine.low %v2313_v5, %v2316_v43  ;;  %5598 = vmatprep.subr.bf16.mxu1 %v5910_v59  ;;  %v5914_v59 = vld [vmem:[%s8832_s6] sm:$0xff]  }
 0x25e   : > { %v1164_v62 = vmax.f32 %v1106_v23, 0.0  ;;  %v2305_v36 = vrot.slane %v7379_v2, 5  ;;  %v1098_v35 = vadd.f32 %v7347_v15, %v1097_v9  ;;  %v2549_v7 = vshrl.u32 %v7224_v14, 16  ;;  %5599 = vmatpush3.bf16.msra.mxu1 %v5911_v30 }
 0x25f   : > { %v1521_v37 = vor.u32 %v1519_v38, %v7393_v51  ;;  %v7407_v13 = vrot.slane %v1499_v33, 7  ;;  %4121 = vrot.lane.b32.xlu0 %v5443_v41, %s6169_s15  ;;  %v5298_v60 = vrot.slane %v2206_v10, 9  ;;  %v2308_v5 = vrot.slane %v7381_v52, 5  ;;  %v5913_v41 = vld [vmem:[%s8832_s6 + $0x40] sm:$0xff]  }
 0x260   : > { %3801 = vrot.lane.b32.xlu1 %v5379_v54, %s6169_s15  ;;  %v5552_v18 = vpack.c.bf16 %v1164_v62, %v1164_v62  ;;  %v2307_v43 = vrot.slane %v2305_v36, 4  ;;  %v1162_v23 = vmax.f32 %v1098_v35, 0.0  ;;  %v3140_v10 = vor.u32 %v7385_v27, %v7383_v31  ;;  %5600 = vmatprep.subr.bf16.mxu1 %v5913_v41 }
 0x261   : > { %v1732_v9 = vsel %vm6856_vm12, %v1521_v37, %v1731_v24  ;;  %v1504_v38 = vor.u32 %v1502_v20, %v7407_v13  ;;  %v2306_v33 = vsel %vm6830_vm10, %v5298_v60, %v2305_v36  ;;  %v3143_v31 = vshll.u32 %v7124_v22, 16 }
 0x262   : > { %1733 = vst [vmem:[#allocation2 + $0x90] sm:$0xf] %v1732_v9  ;;  %v1524_v30 = vshrl.u32 %v5552_v18, 16  ;;  %v1527_v54 = vshll.u32 %v5552_v18, 16  ;;  %v2309_v20 = vsel %vm6830_vm10, %v2307_v43, %v2308_v5  ;;  %v5550_v24 = vpack.c.bf16 %v1162_v23, %v1162_v23  ;;  %5601 = vmatpush3.bf16.msra.mxu1 %v5914_v59  ;;  %v1735_v43 = vld [vmem:[#allocation2 + $0x98] sm:$0x1] }
 0x263   : > { %v1725_v62 = vsel %vm6856_vm12, %v1504_v38, %v1724_v48  ;;  %v5378_v36 = vcombine.low %v2306_v33, %v2309_v20  ;;  %v3147_v27 = vshrl.u32 %v7124_v22, 16  ;;  %v1522_v35 = vrot.slane %v7393_v51, 4  ;;  %v1728_v59 = vld [vmem:[#allocation2 + $0x8c] sm:$0x1] }
 0x264   : > { %1726 = vst [vmem:[#allocation2 + $0x84] sm:$0xf] %v1725_v62  ;;  %v1526_v37 = vrot.slane %v1524_v30, 7  ;;  %v1507_v60 = vshrl.u32 %v5550_v24, 16  ;;  %v1510_v9 = vshll.u32 %v5550_v24, 16  ;;  %v2552_v18 = vshll.u32 %v7224_v14, 16 }
 0x265   : > { %3799 = vrot.lane.b32.xlu1 %v5378_v36, %s6169_s15  ;;  %v3145_v5 = vrot.slane %v3143_v31, 5  ;;  %v3149_v48 = vrot.slane %v3147_v27, 4  ;;  %v3153_v23 = vshll.u32 %v7132_v45, 16  ;;  %v1505_v38 = vrot.slane %v7407_v13, 4  ;;  %v7439_v24 = vld [vmem:[#allocation2 + $0x60] sm:$0xf] }
 0x266   : > { %v1529_v22 = vor.u32 %v1527_v54, %v1526_v37  ;;  %v1531_v33 = vrot.slane %v1526_v37, 4  ;;  %v1509_v41 = vrot.slane %v1507_v60, 7  ;;  %v2483_v51 = vor.u32 %v7373_v19, %v7307_v42  ;;  %v7445_v36 = vld [vmem:[#allocation2 + $0x64] sm:$0xf]  ;;  %v1778_v31 = vld [vmem:[#allocation2 + $0x48] sm:$0xf] }
 0x267   : > { %v3110_v30 = vshrl.u32 %v7254_v17, 16  ;;  %v3141_v20 = vrot.slane %v3140_v10, 4  ;;  %v3150_v14 = vor.u32 %v3149_v48, %v3145_v5  ;;  %8906 = vst [vmem:[#allocation31_spill] sm:$0xff] %v7445_v36  ;;  %v7447_v27 = vrot.slane %v2549_v7, 4  ;;  %v3428_v37 = vld [vmem:[#allocation2 + $0x6c] sm:$0xe] }
 0x268   : > { %v1530_v62 = vsel %vm6863_vm15, %v1522_v35, %v1529_v22  ;;  %v1736_v45 = vsel %vm6869_vm5, %v1531_v33, %v1735_v43  ;;  %v1512_v13 = vor.u32 %v1510_v9, %v1509_v41  ;;  %v1514_v54 = vrot.slane %v1509_v41, 4  ;;  %v7459_v43 = vld [vmem:[#allocation2 + $0x70] sm:$0xf] }
 0x269   : > { %v3113_v42 = vshll.u32 %v7254_v17, 16  ;;  %1734 = vst.msk [vmem:[#allocation2 + $0x94] sm:$0xf] %vm1173_vm3, %v1530_v62  ;;  %1737 = vst [vmem:[#allocation2 + $0x98] sm:$0x1] %v1736_v45  ;;  %v3151_v19 = vrot.slane %v3150_v14, 4  ;;  %v5396_v7 = vcombine.low %v7439_v24, %v7445_v36 }
 0x26a   : > { %v3155_v10 = vrot.slane %v3153_v23, 5  ;;  %v7451_v60 = vrot.slane %v2552_v18, 5  ;;  %v1513_v35 = vsel %vm6863_vm15, %v1505_v38, %v1512_v13  ;;  %v1729_v9 = vsel %vm6869_vm5, %v1514_v54, %v1728_v59  ;;  %v7461_v17 = vld [vmem:[#allocation2 + $0x74] sm:$0x1] }
 0x26b   : > { %v7463_v48 = vrot.slane %v2483_v51, 4  ;;  %v8908_v23 = vshrl.u32 %v7099_v34, 16  ;;  %1727 = vst.msk [vmem:[#allocation2 + $0x88] sm:$0xf] %vm1173_vm3, %v1513_v35  ;;  %1730 = vst [vmem:[#allocation2 + $0x8c] sm:$0x1] %v1729_v9  ;;  %v3146_v18 = vsel %vm6822_vm7, %v3141_v20, %v3145_v5  ;;  %3899 = vrot.lane.b32.xlu1 %v5396_v7, %s6171_s24 }
 0x26c   : > { %v3156_v38 = vsel %vm6822_vm7, %v3151_v19, %v3155_v10  ;;  %v2562_v33 = vshrl.u32 %v7215_v6, 16  ;;  %v3112_v41 = vrot.slane %v3110_v30, 4  ;;  %v5332_v51 = vrot.slane %v3428_v37, 9  ;;  %v7481_v5 = vld [vmem:[#allocation2 + $0x54] sm:$0xf] }
 0x26d   : > { %8907 = vst [vmem:[#allocation32_spill] sm:$0xff] %v7463_v48  ;;  %v7467_v22 = vrot.slane %v8908_v23, 4  ;;  %v5457_v59 = vcombine.low %v3146_v18, %v3156_v38  ;;  %v3115_v14 = vrot.slane %v3113_v42, 5  ;;  %v3536_v62 = vrot.slane %v7459_v43, 5  ;;  %v3429_v23 = vld [vmem:[#allocation2 + $0x78] sm:$0xe] }
 0x26e   : > { %v3539_v45 = vrot.slane %v7461_v17, 5  ;;  %v1962_v13 = vshrl.u32 %v1778_v31, 16  ;;  %v2555_v54 = vor.u32 %v7451_v60, %v7447_v27  ;;  %v1965_v20 = vshll.u32 %v1778_v31, 16 }
 0x26f   : > { %8909 = vst [vmem:[#allocation33_spill] sm:$0xff] %v7467_v22  ;;  %4197 = vrot.lane.b32.xlu0 %v5457_v59, %s6171_s24  ;;  %v1971_v30 = vshll.u32 %v7340_v50, 16  ;;  %v1975_v19 = vshrl.u32 %v7340_v50, 16  ;;  %v5442_v42 = vcombine.low %v7481_v5, %v7232_v26  ;;  %v3537_v10 = vsel %vm6830_vm10, %v5332_v51, %v3536_v62  ;;  %v7494_v26 = vld [vmem:[#allocation2 + $0x80] sm:$0x1] }
 0x270   : > { %v3538_v37 = vrot.slane %v3536_v62, 4  ;;  %v1964_v35 = vrot.slane %v1962_v13, 4  ;;  %v1967_v9 = vrot.slane %v1965_v20, 5  ;;  %v1981_v60 = vshll.u32 %v7350_v63, 16  ;;  %v7498_v20 = vld [vmem:[#allocation2 + $0x7c] sm:$0xf] }
 0x271   : > { %v1973_v7 = vrot.slane %v1971_v30, 5  ;;  %v1977_v27 = vrot.slane %v1975_v19, 4  ;;  %v3116_v18 = vor.u32 %v3115_v14, %v3112_v41  ;;  %v3119_v50 = vshll.u32 %v7111_v61, 16 }
 0x272   : > { %v3540_v31 = vsel %vm6830_vm10, %v3538_v37, %v3539_v45  ;;  %v3123_v38 = vshrl.u32 %v7111_v61, 16  ;;  %v1968_v51 = vor.u32 %v1967_v9, %v1964_v35  ;;  %v3129_v13 = vshll.u32 %v7118_v32, 16 }
 0x273   : > { %4119 = vrot.lane.b32.xlu0 %v5442_v42, %s6169_s15  ;;  %v5476_v59 = vcombine.low %v3537_v10, %v3540_v31  ;;  %v1978_v62 = vor.u32 %v1977_v27, %v1973_v7  ;;  %v3121_v63 = vrot.slane %v3119_v50, 5  ;;  %v5333_v19 = vrot.slane %v3429_v23, 9  ;;  %v2819_v50 = vld [vmem:[#allocation2 + $0x60] sm:$0xe]  ;;  %v7518_v27 = vld [vmem:[#allocation2 + $0x68] sm:$0x1] }
 0x274   : > { %v3125_v30 = vrot.slane %v3123_v38, 4  ;;  %v3543_v41 = vrot.slane %v7498_v20, 5  ;;  %v1969_v14 = vrot.slane %v1968_v51, 4  ;;  %v1983_v45 = vrot.slane %v1981_v60, 5  ;;  %v1776_v51 = vld [vmem:[#allocation2 + $0x3c] sm:$0xf] }
 0x275   : > { %5781 = vmatmul.mubr.msk.bf16.gmra.mxu0 %vm778_vm0, %v5476_v59  ;;  %v1979_v61 = vrot.slane %v1978_v62, 4  ;;  %v3546_v37 = vrot.slane %v7494_v26, 5  ;;  %v3117_v42 = vrot.slane %v3116_v18, 4  ;;  %v3131_v59 = vrot.slane %v3129_v13, 5  ;;  %8912 = vst [vmem:[#allocation36_spill] sm:$0xff] %v7518_v27 }
 0x276   : > { %v3126_v10 = vor.u32 %v3125_v30, %v3121_v63  ;;  %v3544_v35 = vsel %vm6830_vm10, %v5333_v19, %v3543_v41  ;;  %v3545_v32 = vrot.slane %v3543_v41, 4  ;;  %v1974_v23 = vsel %vm6822_vm7, %v1969_v14, %v1973_v7 }
 0x277   : > { %v1984_v31 = vsel %vm6822_vm7, %v1979_v61, %v1983_v45  ;;  %v7513_v62 = vrot.slane %v2555_v54, 4  ;;  %v7515_v30 = vrot.slane %v2562_v33, 4  ;;  %v2525_v19 = vshrl.u32 %v7301_v0, 16  ;;  %v7526_v61 = vld [vmem:[#allocation2 + $0x54] sm:$0xf] }
 0x278   : > { %v5363_v60 = vcombine.low %v1974_v23, %v1984_v31  ;;  %v3127_v38 = vrot.slane %v3126_v10, 4  ;;  %v3547_v18 = vsel %vm6830_vm10, %v3545_v32, %v3546_v37  ;;  %v2528_v7 = vshll.u32 %v7301_v0, 16  ;;  %v7528_v54 = vld [vmem:[#allocation2 + $0x58] sm:$0xf]  ;;  %v2818_v23 = vld [vmem:[#allocation2 + $0x54] sm:$0xe] }
 0x279   : > { %8910 = vst [vmem:[#allocation34_spill] sm:$0xff] %v7513_v62  ;;  %8911 = vst [vmem:[#allocation35_spill] sm:$0xff] %v7515_v30  ;;  %v5477_v41 = vcombine.low %v3544_v35, %v3547_v18  ;;  %v3122_v13 = vsel %vm6822_vm7, %v3117_v42, %v3121_v63  ;;  %v5316_v33 = vrot.slane %v2819_v50, 9  ;;  %v5395_v0 = vcombine.low %v7526_v61, %v7528_v54 }
 0x27a   : > { %3721 = vrot.lane.b32.xlu1 %v5363_v60, %s6170_s26  ;;  %v3132_v14 = vsel %vm6822_vm7, %v3127_v38, %v3131_v59  ;;  %v2927_v10 = vrot.slane %v7445_v36, 5  ;;  %v2930_v63 = vrot.slane %v7518_v27, 5  ;;  %v1938_v42 = vshrl.u32 %v1776_v51, 16 }
 0x27b   : > { %v5456_v37 = vcombine.low %v3122_v13, %v3132_v14  ;;  %5784 = vmatprep.mubr.msk.bf16.mxu0 %vm778_vm0, %v5477_v41  ;;  %v1941_v35 = vshll.u32 %v1776_v51, 16  ;;  %v1947_v32 = vshll.u32 %v7379_v2, 16  ;;  %v2538_v31 = vshrl.u32 %v7303_v4, 16  ;;  %v2418_v13 = vld [vmem:[#allocation2 + $0x5c] sm:$0x1]  ;;  %v5758_v14 = vpop.f32.mrf.mxu0 }
 0x27c   : > { %v2928_v50 = vsel %vm6830_vm10, %v5316_v33, %v2927_v10  ;;  %v2929_v60 = vrot.slane %v2927_v10, 4  ;;  %v1951_v38 = vshrl.u32 %v7379_v2, 16  ;;  %v1940_v59 = vrot.slane %v1938_v42, 4  ;;  %v2209_v42 = vld [vmem:[#allocation2 + $0x60] sm:$0xe] }
 0x27d   : > { %4195 = vrot.lane.b32.xlu0 %v5456_v37, %s6171_s24  ;;  %v1943_v18 = vrot.slane %v1941_v35, 5  ;;  %v1949_v41 = vrot.slane %v1947_v32, 5  ;;  %v1957_v51 = vshll.u32 %v7381_v52, 16  ;;  %v7544_v45 = vrot.slane %v2525_v19, 4  ;;  %v7554_v19 = vld [vmem:[#allocation2 + $0x68] sm:$0x1] }
 0x27e   : > { %3897 = vrot.lane.b32.xlu1 %v5395_v0, %s6171_s24  ;;  %v2931_v37 = vsel %vm6830_vm10, %v2929_v60, %v2930_v63  ;;  %v1953_v9 = vrot.slane %v1951_v38, 4  ;;  %v5315_v4 = vrot.slane %v2818_v23, 9  ;;  %v7548_v33 = vrot.slane %v2528_v7, 5  ;;  %v1110_v38 = vpop.f32.mrf.mxu0 }
 0x27f   : > { %v5428_v10 = vcombine.low %v2928_v50, %v2931_v37  ;;  %v1944_v2 = vor.u32 %v1943_v18, %v1940_v59  ;;  %v2920_v0 = vrot.slane %v7528_v54, 5  ;;  %v7551_v35 = vrot.slane %v2538_v31, 4  ;;  %v7559_v50 = vld [vmem:[#allocation2 + $0x64] sm:$0xf] }
 0x280   : > { %v1954_v32 = vor.u32 %v1953_v9, %v1949_v41  ;;  %v2923_v52 = vrot.slane %v2418_v13, 5  ;;  %v1119_v30 = vadd.f32 %v7347_v15, %v5758_v14  ;;  %v1959_v60 = vrot.slane %v1957_v51, 5 }
 0x281   : > { %8913 = vst [vmem:[#allocation37_spill] sm:$0xff] %v7551_v35  ;;  %4027 = vrot.lane.b32.xlu0 %v5428_v10, %s6170_s26  ;;  %v1945_v63 = vrot.slane %v1944_v2, 4  ;;  %v2921_v7 = vsel %vm6830_vm10, %v5315_v4, %v2920_v0  ;;  %v2922_v23 = vrot.slane %v2920_v0, 4  ;;  %v5301_v18 = vrot.slane %v2209_v42, 9  ;;  %v5759_v35 = vpop.f32.mrf.mxu0 }
 0x282   : > { %v1955_v59 = vrot.slane %v1954_v32, 4  ;;  %v1167_v31 = vmax.f32 %v1119_v30, 0.0  ;;  %v2326_v9 = vrot.slane %v7559_v50, 5  ;;  %v2329_v37 = vrot.slane %v7554_v19, 5 }
 0x283   : > { %v2924_v14 = vsel %vm6830_vm10, %v2922_v23, %v2923_v52  ;;  %v1111_v51 = vadd.f32 %v7347_v15, %v1110_v38  ;;  %v1950_v4 = vsel %vm6822_vm7, %v1945_v63, %v1949_v41  ;;  %v3182_v0 = vshrl.u32 %v7390_v21, 16 }
 0x284   : > { %v1960_v10 = vsel %vm6822_vm7, %v1955_v59, %v1959_v60  ;;  %v5427_v2 = vcombine.low %v2921_v7, %v2924_v14  ;;  %v5555_v30 = vpack.c.bf16 %v1167_v31, %v1167_v31  ;;  %v2328_v32 = vrot.slane %v2326_v9, 4  ;;  %v7580_v59 = vld [vmem:[#allocation2 + $0x78] sm:$0xf] }
 0x285   : > { %v5362_v42 = vcombine.low %v1950_v4, %v1960_v10  ;;  %v1165_v13 = vmax.f32 %v1111_v51, 0.0  ;;  %v3185_v52 = vshll.u32 %v7390_v21, 16  ;;  %v2327_v41 = vsel %vm6830_vm10, %v5301_v18, %v2326_v9  ;;  %v2208_v21 = vld [vmem:[#allocation2 + $0x54] sm:$0xe]  ;;  %v1745_v18 = vld [vmem:[#allocation2 + $0xa8] sm:$0xf] }
 0x286   : > { %4025 = vrot.lane.b32.xlu0 %v5427_v2, %s6170_s26  ;;  %v1550_v23 = vshrl.u32 %v5555_v30, 16  ;;  %v1553_v38 = vshll.u32 %v5555_v30, 16  ;;  %v2597_v63 = vshrl.u32 %v7439_v24, 16  ;;  %v2330_v60 = vsel %vm6830_vm10, %v2328_v32, %v2329_v37  ;;  %v7591_v14 = vld [vmem:[#allocation2 + $0x58] sm:$0xf] }
 0x287   : > { %3719 = vrot.lane.b32.xlu1 %v5362_v42, %s6170_s26  ;;  %v5553_v7 = vpack.c.bf16 %v1165_v13, %v1165_v13  ;;  %v1122_v31 = vadd.f32 %v7347_v15, %v5759_v35  ;;  %v2600_v51 = vshll.u32 %v7439_v24, 16  ;;  %v5445_v9 = vcombine.low %v7580_v59, %v7498_v20  ;;  %v7588_v13 = vld [vmem:[#allocation2 + $0x5c] sm:$0x1]  ;;  %v1113_v42 = vpop.f32.mrf.mxu0 }
 0x288   : > { %v1552_v4 = vrot.slane %v1550_v23, 7  ;;  %v5381_v10 = vcombine.low %v2327_v41, %v2330_v60  ;;  %v3184_v32 = vrot.slane %v3182_v0, 4  ;;  %v3187_v35 = vrot.slane %v3185_v52, 5  ;;  %v1738_v52 = vld [vmem:[#allocation2 + $0x9c] sm:$0xf] }
 0x289   : > { %v1533_v2 = vshrl.u32 %v5553_v7, 16  ;;  %v1536_v30 = vshll.u32 %v5553_v7, 16  ;;  %v1168_v37 = vmax.f32 %v1122_v31, 0.0  ;;  %v5300_v24 = vrot.slane %v2208_v21, 9 }
 0x28a   : > { %v1555_v46 = vor.u32 %v1553_v38, %v1552_v4  ;;  %4125 = vrot.lane.b32.xlu0 %v5445_v9, %s6169_s15  ;;  %v7593_v23 = vrot.slane %v2597_v63, 4  ;;  %v2319_v60 = vrot.slane %v7591_v14, 5  ;;  %v2602_v7 = vrot.slane %v2600_v51, 5 }
 0x28b   : > { %3805 = vrot.lane.b32.xlu1 %v5381_v10, %s6169_s15  ;;  %v7596_v62 = vrot.slane %v1533_v2, 7  ;;  %v5556_v41 = vpack.c.bf16 %v1168_v37, %v1168_v37  ;;  %v2322_v38 = vrot.slane %v7588_v13, 5  ;;  %v1114_v31 = vadd.f32 %v7347_v15, %v1113_v42 }
 0x28c   : > { %v1746_v0 = vsel %vm6856_vm12, %v1555_v46, %v1745_v18  ;;  %v1556_v9 = vrot.slane %v1552_v4, 4  ;;  %v2320_v2 = vsel %vm6830_vm10, %v5300_v24, %v2319_v60  ;;  %v2321_v37 = vrot.slane %v2319_v60, 4 }
 0x28d   : > { %1747 = vst [vmem:[#allocation2 + $0xa8] sm:$0xf] %v1746_v0  ;;  %v1538_v63 = vor.u32 %v1536_v30, %v7596_v62  ;;  %v1558_v21 = vshrl.u32 %v5556_v41, 16  ;;  %v1561_v10 = vshll.u32 %v5556_v41, 16  ;;  %v1166_v6 = vmax.f32 %v1114_v31, 0.0 }
 0x28e   : > { %v3188_v51 = vor.u32 %v3187_v35, %v3184_v32  ;;  %v3191_v22 = vshll.u32 %v7278_v56, 16  ;;  %v3195_v42 = vshrl.u32 %v7278_v56, 16  ;;  %v2603_v4 = vor.u32 %v2602_v7, %v7593_v23  ;;  %v1749_v30 = vld [vmem:[#allocation2 + $0xb0] sm:$0x1] }
 0x28f   : > { %v1739_v46 = vsel %vm6856_vm12, %v1538_v63, %v1738_v52  ;;  %v1560_v18 = vrot.slane %v1558_v21, 7  ;;  %v2323_v41 = vsel %vm6830_vm10, %v2321_v37, %v2322_v38  ;;  %v5554_v0 = vpack.c.bf16 %v1166_v6, %v1166_v6 }
 0x290   : > { %1740 = vst [vmem:[#allocation2 + $0x9c] sm:$0xf] %v1739_v46  ;;  %v3201_v24 = vshll.u32 %v7270_v57, 16  ;;  %v5380_v35 = vcombine.low %v2320_v2, %v2323_v41  ;;  %v3193_v31 = vrot.slane %v3191_v22, 5  ;;  %v3189_v21 = vrot.slane %v3188_v51, 4 }
 0x291   : > { %v1563_v60 = vor.u32 %v1561_v10, %v1560_v18  ;;  %v1565_v32 = vrot.slane %v1560_v18, 4  ;;  %v1541_v52 = vshrl.u32 %v5554_v0, 16  ;;  %v1544_v63 = vshll.u32 %v5554_v0, 16  ;;  %v1742_v57 = vld [vmem:[#allocation2 + $0xa4] sm:$0x1] }
 0x292   : > { %v3197_v48 = vrot.slane %v3195_v42, 4  ;;  %v3158_v56 = vshrl.u32 %v7481_v5, 16  ;;  %v3161_v23 = vshll.u32 %v7481_v5, 16  ;;  %3803 = vrot.lane.b32.xlu1 %v5380_v35, %s6169_s15  ;;  %v7623_v22 = vld [vmem:[#allocation2 + $0x78] sm:$0xf]  ;;  %v1539_v38 = vrot.slane %v7596_v62, 4 }
 0x293   : > { %v1564_v7 = vsel %vm6863_vm15, %v1556_v9, %v1563_v60  ;;  %v1750_v6 = vsel %vm6869_vm5, %v1565_v32, %v1749_v30  ;;  %v1543_v10 = vrot.slane %v1541_v52, 7  ;;  %v3203_v37 = vrot.slane %v3201_v24, 5  ;;  %v7627_v5 = vld [vmem:[#allocation2 + $0x7c] sm:$0xf]  ;;  %v1782_v42 = vld [vmem:[#allocation2 + $0x60] sm:$0xf]  ;;  %v7638_v30 = vpop.permute.xlu0 %4109 }
 0x294   : > { %1748 = vst.msk [vmem:[#allocation2 + $0xac] sm:$0xf] %vm1173_vm3, %v1564_v7  ;;  %1751 = vst [vmem:[#allocation2 + $0xb0] sm:$0x1] %v1750_v6  ;;  %v3198_v2 = vor.u32 %v3197_v48, %v3193_v31  ;;  %v8914_v9 = vor.u32 %v7548_v33, %v7544_v45  ;;  %v2029_v18 = vshll.u32 %v7554_v19, 16  ;;  %v5398_v62 = vcombine.low %v7623_v22, %v7627_v5 }
 0x295   : > { %v1546_v41 = vor.u32 %v1544_v63, %v1543_v10  ;;  %v1548_v48 = vrot.slane %v1543_v10, 4  ;;  %v3194_v0 = vsel %vm6822_vm7, %v3189_v21, %v3193_v31  ;;  %v7642_v60 = vld [vmem:[#allocation2 + $0x88] sm:$0xf]  ;;  %v3430_v45 = vld [vmem:[#allocation2 + $0x84] sm:$0xe]  ;;  %v7644_v33 = vrot.slane %v2603_v4, 4  ;;  %v7657_v21 = vpop.permute.xlu1 %3789 }
 0x296   : > { %v7632_v51 = vrot.slane %v8914_v9, 4  ;;  %v3199_v24 = vrot.slane %v3198_v2, 4  ;;  %8916 = vst [vmem:[#allocation39_spill] sm:$0xff] %v7642_v60  ;;  %v3160_v35 = vrot.slane %v3158_v56, 4  ;;  %3903 = vrot.lane.b32.xlu1 %v5398_v62, %s6171_s24  ;;  %v7649_v52 = vld [vmem:[#allocation2 + $0x8c] sm:$0x1] }
 0x297   : > { %8917 = vst [vmem:[#allocation40_spill] sm:$0xff] %v7644_v33  ;;  %8918 = vst [vmem:[#allocation41_spill] sm:$0xff] %v7649_v52  ;;  %v3163_v63 = vrot.slane %v3161_v23, 5  ;;  %v1547_v7 = vsel %vm6863_vm15, %v1539_v38, %v1546_v41  ;;  %v1743_v31 = vsel %vm6869_vm5, %v1548_v48, %v1742_v57  ;;  %v7659_v6 = vrot.slane %v2029_v18, 5  ;;  %v7664_v38 = vld [vmem:[#allocation2 + $0x6c] sm:$0xf] }
 0x298   : > { %8915 = vst [vmem:[#allocation38_spill] sm:$0xff] %v7632_v51  ;;  %v3204_v4 = vsel %vm6822_vm7, %v3199_v24, %v3203_v37  ;;  %1741 = vst.msk [vmem:[#allocation2 + $0xa0] sm:$0xf] %vm1173_vm3, %v1547_v7  ;;  %v5334_v10 = vrot.slane %v3430_v45, 9  ;;  %v3550_v23 = vrot.slane %v7642_v60, 5  ;;  %v3230_v2 = vshrl.u32 %v7580_v59, 16 }
 0x299   : > { %1744 = vst [vmem:[#allocation2 + $0xa4] sm:$0x1] %v1743_v31  ;;  %v5459_v56 = vcombine.low %v3194_v0, %v3204_v4  ;;  %v3553_v57 = vrot.slane %v7649_v52, 5  ;;  %v2010_v9 = vshrl.u32 %v1782_v42, 16  ;;  %v2013_v62 = vshll.u32 %v1782_v42, 16  ;;  %v7673_v0 = vpop.permute.xlu0 %4015 }
 0x29a   : > { %v5444_v37 = vcombine.low %v7664_v38, %v7459_v43  ;;  %v3551_v18 = vsel %vm6830_vm10, %v5334_v10, %v3550_v23  ;;  %v3552_v41 = vrot.slane %v3550_v23, 4  ;;  %v2019_v48 = vshll.u32 %v7559_v50, 16  ;;  %8919 = vst [vmem:[#allocation42_spill] sm:$0xff] %v7673_v0  ;;  %v3431_v4 = vld [vmem:[#allocation2 + $0x90] sm:$0xe]  ;;  %v7680_v0 = vpop.permute.xlu1 %3887 }
 0x29b   : > { %4201 = vrot.lane.b32.xlu0 %v5459_v56, %s6171_s24  ;;  %v2012_v24 = vrot.slane %v2010_v9, 4  ;;  %v2015_v45 = vrot.slane %v2013_v62, 5  ;;  %v2023_v7 = vshrl.u32 %v7559_v50, 16  ;;  %v3164_v31 = vor.u32 %v3163_v63, %v3160_v35  ;;  %v5928_v32 = vld [vmem:[#allocation2 + $0x58] sm:$0xf]  ;;  %8920 = vst [vmem:[#allocation43_spill] sm:$0xff] %v7680_v0 }
 0x29c   : > { %v3554_v42 = vsel %vm6830_vm10, %v3552_v41, %v3553_v57  ;;  %v2021_v56 = vrot.slane %v2019_v48, 5  ;;  %v3167_v46 = vshll.u32 %v5928_v32, 16  ;;  %v3171_v19 = vshrl.u32 %v5928_v32, 16  ;;  %v7678_v33 = vld [vmem:[#allocation2 + $0x98] sm:$0x1] }
 0x29d   : > { %v5478_v10 = vcombine.low %v3551_v18, %v3554_v42  ;;  %v2016_v23 = vor.u32 %v2015_v45, %v2012_v24  ;;  %v2025_v39 = vrot.slane %v2023_v7, 4  ;;  %v3165_v51 = vrot.slane %v3164_v31, 4  ;;  %v5929_v63 = vld [vmem:[#allocation2 + $0x5c] sm:$0x1]  ;;  %v7683_v62 = vld [vmem:[#allocation2 + $0x94] sm:$0xf]  ;;  %v7690_v7 = vpop.permute.xlu0 %4013 }
 0x29e   : > { %v3169_v50 = vrot.slane %v3167_v46, 5  ;;  %v3173_v35 = vrot.slane %v3171_v19, 4  ;;  %v3177_v9 = vshll.u32 %v5929_v63, 16  ;;  %v5335_v57 = vrot.slane %v3431_v4, 9  ;;  %v2821_v19 = vld [vmem:[#allocation2 + $0x78] sm:$0xe] }
 0x29f   : > { %4123 = vrot.lane.b32.xlu0 %v5444_v37, %s6169_s15  ;;  %5785 = vmatmul.mubr.msk.bf16.gmra.mxu0 %vm778_vm0, %v5478_v10  ;;  %v2017_v32 = vrot.slane %v2016_v23, 4  ;;  %v2026_v41 = vor.u32 %v2025_v39, %v2021_v56  ;;  %v3557_v18 = vrot.slane %v7683_v62, 5  ;;  %v3560_v48 = vrot.slane %v7678_v33, 5  ;;  %v2396_v10 = vld [vmem:[#allocation2 + $0x6c] sm:$0xf] }
 0x2a0   : > { %v3174_v37 = vor.u32 %v3173_v35, %v3169_v50  ;;  %v3179_v46 = vrot.slane %v3177_v9, 5  ;;  %v1780_v23 = vld [vmem:[#allocation2 + $0x54] sm:$0xf]  ;;  %v7696_v63 = vrot.slane %v3230_v2, 4  ;;  %v3233_v24 = vshll.u32 %v7580_v59, 16 }
 0x2a1   : > { %v2022_v31 = vsel %vm6822_vm7, %v2017_v32, %v2021_v56  ;;  %v2027_v4 = vrot.slane %v2026_v41, 4  ;;  %v3558_v39 = vsel %vm6830_vm10, %v5335_v57, %v3557_v18  ;;  %v3559_v42 = vrot.slane %v3557_v18, 4  ;;  %v2421_v45 = vld [vmem:[#allocation2 + $0x80] sm:$0x1]  ;;  %v2397_v32 = vld [vmem:[#allocation2 + $0x70] sm:$0xf]  ;;  %v7707_v18 = vpop.permute.xlu1 %3885 }
 0x2a2   : > { %v3170_v35 = vsel %vm6822_vm7, %v3165_v51, %v3169_v50  ;;  %v3175_v9 = vrot.slane %v3174_v37, 4  ;;  %v2005_v0 = vshll.u32 %v7588_v13, 16  ;;  %v5318_v41 = vrot.slane %v2821_v19, 9  ;;  %v2820_v2 = vld [vmem:[#allocation2 + $0x6c] sm:$0xe] }
 0x2a3   : > { %v2032_v56 = vsel %vm6822_vm7, %v2027_v4, %v7659_v6  ;;  %v3561_v57 = vsel %vm6830_vm10, %v3559_v42, %v3560_v48  ;;  %v5397_v37 = vcombine.low %v2396_v10, %v2397_v32  ;;  %v2941_v13 = vrot.slane %v7627_v5, 5  ;;  %v2420_v6 = vld [vmem:[#allocation2 + $0x74] sm:$0x1]  ;;  %v7716_v42 = vpop.permute.xlu0 %4113  ;;  %v2211_v10 = vld [vmem:[#allocation2 + $0x78] sm:$0xe] }
 0x2a4   : > { %v5365_v59 = vcombine.low %v2022_v31, %v2032_v56  ;;  %v3180_v51 = vsel %vm6822_vm7, %v3175_v9, %v3179_v46  ;;  %v5479_v50 = vcombine.low %v3558_v39, %v3561_v57  ;;  %v2944_v52 = vrot.slane %v2421_v45, 5  ;;  %8921 = vst [vmem:[#allocation44_spill] sm:$0xff] %v7716_v42  ;;  %v7721_v57 = vld [vmem:[#allocation2 + $0x7c] sm:$0xf] }
 0x2a5   : > { %v5458_v34 = vcombine.low %v3170_v35, %v3180_v51  ;;  %v1986_v3 = vshrl.u32 %v1780_v23, 16  ;;  %v1989_v48 = vshll.u32 %v1780_v23, 16  ;;  %v1995_v19 = vshll.u32 %v7591_v14, 16 }
 0x2a6   : > { %3725 = vrot.lane.b32.xlu1 %v5365_v59, %s6170_s26  ;;  %5788 = vmatprep.mubr.msk.bf16.mxu0 %vm778_vm0, %v5479_v50  ;;  %v1999_v31 = vshrl.u32 %v7591_v14, 16  ;;  %v5317_v4 = vrot.slane %v2820_v2, 9  ;;  %v2942_v5 = vsel %vm6830_vm10, %v5318_v41, %v2941_v13  ;;  %v2943_v45 = vrot.slane %v2941_v13, 4  ;;  %v7727_v50 = vpop.permute.xlu1 %3793 }
 0x2a7   : > { %4199 = vrot.lane.b32.xlu0 %v5458_v34, %s6171_s24  ;;  %v1988_v46 = vrot.slane %v1986_v3, 4  ;;  %v2934_v39 = vrot.slane %v2397_v32, 5  ;;  %v1991_v35 = vrot.slane %v1989_v48, 5  ;;  %v1997_v9 = vrot.slane %v1995_v19, 5  ;;  %v7725_v34 = vld [vmem:[#allocation2 + $0x80] sm:$0x1] }
 0x2a8   : > { %v2001_v56 = vrot.slane %v1999_v31, 4  ;;  %v2937_v23 = vrot.slane %v2420_v6, 5  ;;  %v3235_v59 = vrot.slane %v3233_v24, 5  ;;  %v2007_v14 = vrot.slane %v2005_v0, 5  ;;  %8922 = vst [vmem:[#allocation45_spill] sm:$0xff] %v7727_v50 }
 0x2a9   : > { %v2945_v2 = vsel %vm6830_vm10, %v2943_v45, %v2944_v52  ;;  %v2936_v51 = vrot.slane %v2934_v39, 4  ;;  %v1992_v32 = vor.u32 %v1991_v35, %v1988_v46  ;;  %v2340_v13 = vrot.slane %v7721_v57, 5  ;;  %v2210_v45 = vld [vmem:[#allocation2 + $0x6c] sm:$0xe]  ;;  %v7742_v46 = vpop.permute.xlu0 %4189 }
 0x2aa   : > { %3901 = vrot.lane.b32.xlu1 %v5397_v37, %s6171_s24  ;;  %v5430_v3 = vcombine.low %v2942_v5, %v2945_v2  ;;  %v2002_v41 = vor.u32 %v2001_v56, %v1997_v9  ;;  %v8923_v6 = vshrl.u32 %v7445_v36, 16  ;;  %v2935_v0 = vsel %vm6830_vm10, %v5317_v4, %v2934_v39  ;;  %v7753_v2 = vld [vmem:[#allocation2 + $0x74] sm:$0x1]  ;;  %v7765_v19 = vpop.permute.xlu1 %3791 }
 0x2ab   : > { %v2938_v52 = vsel %vm6830_vm10, %v2936_v51, %v2937_v23  ;;  %v5303_v24 = vrot.slane %v2211_v10, 9  ;;  %v1993_v37 = vrot.slane %v1992_v32, 4  ;;  %v2343_v5 = vrot.slane %v7725_v34, 5  ;;  %v5762_v51 = vpop.f32.mrf.mxu0  ;;  %8927 = vst [vmem:[#allocation47_spill] sm:$0xff] %v7765_v19  ;;  %v7810_v19 = vld [vmem:[#allocation2 + $0xa4] sm:$0x1] }
 0x2ac   : > { %v7733_v48 = vrot.slane %v8923_v6, 4  ;;  %4031 = vrot.lane.b32.xlu0 %v5430_v3, %s6170_s26  ;;  %v2003_v31 = vrot.slane %v2002_v41, 4  ;;  %v8925_v35 = vshrl.u32 %v7526_v61, 16  ;;  %v8926_v4 = vshll.u32 %v7526_v61, 16  ;;  %8930 = vst [vmem:[#allocation50_spill] sm:$0xff] %v7810_v19 }
 0x2ad   : > { %v3236_v10 = vor.u32 %v3235_v59, %v7696_v63  ;;  %v2342_v23 = vrot.slane %v2340_v13, 4  ;;  %v3206_v3 = vshrl.u32 %v7664_v38, 16  ;;  %v1998_v32 = vsel %vm6822_vm7, %v1993_v37, %v1997_v9 }
 0x2ae   : > { %8924 = vst [vmem:[#allocation46_spill] sm:$0xff] %v7733_v48  ;;  %v7746_v56 = vrot.slane %v8925_v35, 4  ;;  %v7750_v39 = vrot.slane %v8926_v4, 5  ;;  %v2008_v41 = vsel %vm6822_vm7, %v2003_v31, %v2007_v14  ;;  %v5429_v6 = vcombine.low %v2935_v0, %v2938_v52  ;;  %v7760_v35 = vld [vmem:[#allocation2 + $0x70] sm:$0xf] }
 0x2af   : > { %v5364_v61 = vcombine.low %v1998_v32, %v2008_v41  ;;  %v2341_v4 = vsel %vm6830_vm10, %v5303_v24, %v2340_v13  ;;  %v5302_v63 = vrot.slane %v2210_v45, 9  ;;  %v2333_v59 = vrot.slane %v7760_v35, 5  ;;  %v7775_v13 = vld [vmem:[#allocation2 + $0x90] sm:$0xf]  ;;  %v1126_v32 = vpop.f32.mrf.mxu0 }
 0x2b0   : > { %4029 = vrot.lane.b32.xlu0 %v5429_v6, %s6170_s26  ;;  %v2344_v9 = vsel %vm6830_vm10, %v2342_v23, %v2343_v5  ;;  %v2336_v37 = vrot.slane %v7753_v2, 5  ;;  %v1135_v14 = vadd.f32 %v7347_v15, %v5762_v51  ;;  %v3239_v0 = vshll.u32 %v7498_v20, 16  ;;  %v5930_v15 = vld [vmem:[%s8831_s5] ss:$0 sm:$0xff]  ;;  %v7784_v51 = vpop.permute.xlu0 %4111 }
 0x2b1   : > { %v3209_v52 = vshll.u32 %v7664_v38, 16  ;;  %3723 = vrot.lane.b32.xlu1 %v5364_v61, %s6170_s26  ;;  %v2335_v24 = vrot.slane %v2333_v59, 4  ;;  %v3243_v31 = vshrl.u32 %v7498_v20, 16  ;;  %v3249_v45 = vshll.u32 %v7494_v26, 16  ;;  %8928 = vst [vmem:[#allocation48_spill] sm:$0xff] %v7784_v51 }
 0x2b2   : > { %v5447_v5 = vcombine.low %v7775_v13, %v7683_v62  ;;  %v1171_v23 = vmax.f32 %v1135_v14, 0.0  ;;  %v3241_v41 = vrot.slane %v3239_v0, 5  ;;  %v1127_v38 = vadd.f32 %v5930_v15, %v1126_v32 }
 0x2b3   : > { %v3237_v61 = vrot.slane %v3236_v10, 4  ;;  %v5383_v48 = vcombine.low %v2341_v4, %v2344_v9  ;;  %v3245_v20 = vrot.slane %v3243_v31, 4  ;;  %v2334_v26 = vsel %vm6830_vm10, %v5302_v63, %v2333_v59  ;;  %v5763_v4 = vpop.f32.mrf.mxu0  ;;  %v7797_v9 = vpop.permute.xlu1 %3891  ;;  %v2402_v63 = vld [vmem:[#allocation2 + $0x90] sm:$0xf]  ;;  %v7799_v59 = vld [vmem:[#allocation2 + $0x94] sm:$0xf] }
 0x2b4   : > { %4129 = vrot.lane.b32.xlu0 %v5447_v5, %s6169_s15  ;;  %v2337_v14 = vsel %vm6830_vm10, %v2335_v24, %v2336_v37  ;;  %v5559_v0 = vpack.c.bf16 %v1171_v23, %v1171_v23  ;;  %v1169_v36 = vmax.f32 %v1127_v38, 0.0  ;;  %v7792_v50 = vrot.slane %v3206_v3, 4  ;;  %8929 = vst [vmem:[#allocation49_spill] sm:$0xff] %v7797_v9  ;;  %v7801_v24 = vld [vmem:[#allocation2 + $0x84] sm:$0xf] }
 0x2b5   : > { %v7794_v32 = vrot.slane %v3209_v52, 5  ;;  %3809 = vrot.lane.b32.xlu1 %v5383_v48, %s6169_s15  ;;  %v3246_v6 = vor.u32 %v3245_v20, %v3241_v41  ;;  %v3251_v10 = vrot.slane %v3249_v45, 5  ;;  %v1138_v37 = vadd.f32 %v5930_v15, %v5763_v4  ;;  %v7806_v45 = vld [vmem:[#allocation2 + $0xa0] sm:$0xf]  ;;  %v3432_v38 = vld [vmem:[#allocation2 + $0x9c] sm:$0xe]  ;;  %v7812_v4 = vpop.permute.xlu0 %4019 }
 0x2b6   : > { %v1584_v31 = vshrl.u32 %v5559_v0, 16  ;;  %v1587_v5 = vshll.u32 %v5559_v0, 16  ;;  %v5557_v42 = vpack.c.bf16 %v1169_v36, %v1169_v36  ;;  %v5382_v52 = vcombine.low %v2334_v26, %v2337_v14  ;;  %8931 = vst [vmem:[#allocation51_spill] sm:$0xff] %v7812_v4  ;;  %v1759_v26 = vld [vmem:[#allocation2 + $0xc0] sm:$0xf] }
 0x2b7   : > { %v3242_v48 = vsel %vm6822_vm7, %v3237_v61, %v3241_v41  ;;  %v3247_v23 = vrot.slane %v3246_v6, 4  ;;  %v1172_v9 = vmax.f32 %v1138_v37, 0.0  ;;  %v5400_v6 = vcombine.low %v2402_v63, %v7799_v59  ;;  %v1752_v3 = vld [vmem:[#allocation2 + $0xb4] sm:$0xf]  ;;  %v7828_v63 = vpop.permute.xlu1 %3713 }
 0x2b8   : > { %v7808_v20 = vrot.slane %v1584_v31, 7  ;;  %v1567_v0 = vshrl.u32 %v5557_v42, 16  ;;  %v1570_v36 = vshll.u32 %v5557_v42, 16  ;;  %v5446_v61 = vcombine.low %v7801_v24, %v7642_v60  ;;  %v1129_v42 = vpop.f32.mrf.mxu0  ;;  %8932 = vst [vmem:[#allocation52_spill] sm:$0xff] %v7828_v63 }
 0x2b9   : > { %3807 = vrot.lane.b32.xlu1 %v5382_v52, %s6169_s15  ;;  %v3252_v41 = vsel %vm6822_vm7, %v3247_v23, %v3251_v10  ;;  %v5560_v51 = vpack.c.bf16 %v1172_v9, %v1172_v9  ;;  %v5336_v52 = vrot.slane %v3432_v38, 9  ;;  %v3564_v4 = vrot.slane %v7806_v45, 5  ;;  %v1786_v23 = vld [vmem:[#allocation2 + $0x78] sm:$0xf] }
 0x2ba   : > { %v1589_v14 = vor.u32 %v1587_v5, %v7808_v20  ;;  %v1590_v31 = vrot.slane %v7808_v20, 4  ;;  %v5461_v37 = vcombine.low %v3242_v48, %v3252_v41  ;;  %v7824_v27 = vrot.slane %v1567_v0, 7 }
 0x2bb   : > { %v3567_v10 = vrot.slane %v7810_v19, 5  ;;  %v1130_v20 = vadd.f32 %v5930_v15, %v1129_v42  ;;  %v1592_v9 = vshrl.u32 %v5560_v51, 16  ;;  %v1595_v38 = vshll.u32 %v5560_v51, 16  ;;  %v7840_v19 = vpop.permute.xlu0 %4017 }
 0x2bc   : > { %v1760_v60 = vsel %vm6856_vm12, %v1589_v14, %v1759_v26  ;;  %4205 = vrot.lane.b32.xlu0 %v5461_v37, %s6171_s24  ;;  %v1572_v5 = vor.u32 %v1570_v36, %v7824_v27  ;;  %v1573_v48 = vrot.slane %v7824_v27, 4  ;;  %v3565_v0 = vsel %vm6830_vm10, %v5336_v52, %v3564_v4  ;;  %v1763_v36 = vld [vmem:[#allocation2 + $0xc8] sm:$0x1] }
 0x2bd   : > { %1761 = vst [vmem:[#allocation2 + $0xc0] sm:$0xf] %v1760_v60  ;;  %3907 = vrot.lane.b32.xlu1 %v5400_v6, %s6171_s24  ;;  %v3566_v41 = vrot.slane %v3564_v4, 4  ;;  %v1170_v26 = vmax.f32 %v1130_v20, 0.0  ;;  %v2058_v14 = vshrl.u32 %v1786_v23, 16  ;;  %v2061_v37 = vshll.u32 %v1786_v23, 16 }
 0x2be   : > { %v1753_v63 = vsel %vm6856_vm12, %v1572_v5, %v1752_v3  ;;  %v1594_v27 = vrot.slane %v1592_v9, 7  ;;  %v2067_v15 = vshll.u32 %v7721_v57, 16  ;;  %v2071_v51 = vshrl.u32 %v7721_v57, 16 }
 0x2bf   : > { %1754 = vst [vmem:[#allocation2 + $0xb4] sm:$0xf] %v1753_v63  ;;  %v3568_v60 = vsel %vm6830_vm10, %v3566_v41, %v3567_v10  ;;  %v5558_v29 = vpack.c.bf16 %v1170_v26, %v1170_v26  ;;  %v2060_v3 = vrot.slane %v2058_v14, 4  ;;  %v2063_v6 = vrot.slane %v2061_v37, 5  ;;  %v7847_v63 = vpop.permute.xlu1 %3889 }
 0x2c0   : > { %4127 = vrot.lane.b32.xlu0 %v5446_v61, %s6169_s15  ;;  %v5480_v4 = vcombine.low %v3565_v0, %v3568_v60  ;;  %v1597_v42 = vor.u32 %v1595_v38, %v1594_v27  ;;  %v1599_v52 = vrot.slane %v1594_v27, 4  ;;  %v2069_v23 = vrot.slane %v2067_v15, 5  ;;  %v7858_v60 = vpop.permute.xlu0 %4117  ;;  %v1756_v15 = vld [vmem:[#allocation2 + $0xbc] sm:$0x1] }
 0x2c1   : > { %v2073_v5 = vrot.slane %v2071_v51, 4  ;;  %v1575_v10 = vshrl.u32 %v5558_v29, 16  ;;  %v1578_v20 = vshll.u32 %v5558_v29, 16  ;;  %v2064_v9 = vor.u32 %v2063_v6, %v2060_v3 }
 0x2c2   : > { %5789 = vmatmul.mubr.msk.bf16.gmra.mxu0 %vm778_vm0, %v5480_v4  ;;  %v2077_v57 = vshll.u32 %v7725_v34, 16  ;;  %v1598_v61 = vsel %vm6863_vm15, %v1590_v31, %v1597_v42  ;;  %v1764_v0 = vsel %vm6869_vm5, %v1599_v52, %v1763_v36  ;;  %v3215_v38 = vshll.u32 %v7459_v43, 16  ;;  %v3433_v52 = vld [vmem:[#allocation2 + $0xa8] sm:$0xe] }
 0x2c3   : > { %v2074_v41 = vor.u32 %v2073_v5, %v2069_v23  ;;  %1762 = vst.msk [vmem:[#allocation2 + $0xc4] sm:$0xf] %vm1173_vm3, %v1598_v61  ;;  %1765 = vst [vmem:[#allocation2 + $0xc8] sm:$0x1] %v1764_v0  ;;  %v1577_v26 = vrot.slane %v1575_v10, 7  ;;  %v2065_v14 = vrot.slane %v2064_v9, 4  ;;  %v8933_v34 = vor.u32 %v7794_v32, %v7792_v50 }
 0x2c4   : > { %v2079_v37 = vrot.slane %v2077_v57, 5  ;;  %v3219_v27 = vshrl.u32 %v7459_v43, 16  ;;  %v3217_v36 = vrot.slane %v3215_v38, 5  ;;  %v3225_v4 = vshll.u32 %v7461_v17, 16  ;;  %v7872_v9 = vld [vmem:[#allocation2 + $0xb0] sm:$0x1]  ;;  %v7874_v17 = vpop.permute.xlu1 %3711 }
 0x2c5   : > { %v3213_v31 = vrot.slane %v8933_v34, 4  ;;  %v2075_v51 = vrot.slane %v2074_v41, 4  ;;  %v1580_v29 = vor.u32 %v1578_v20, %v1577_v26  ;;  %v1582_v3 = vrot.slane %v1577_v26, 4  ;;  %v7880_v0 = vld [vmem:[#allocation2 + $0xac] sm:$0xf] }
 0x2c6   : > { %v2070_v6 = vsel %vm6822_vm7, %v2065_v14, %v2069_v23  ;;  %v3221_v42 = vrot.slane %v3219_v27, 4  ;;  %v2579_v43 = vor.u32 %v7750_v39, %v7746_v56  ;;  %v3227_v50 = vrot.slane %v3225_v4, 5  ;;  %v2823_v26 = vld [vmem:[#allocation2 + $0x90] sm:$0xe]  ;;  %v2401_v34 = vld [vmem:[#allocation2 + $0x88] sm:$0xf] }
 0x2c7   : > { %v2080_v5 = vsel %vm6822_vm7, %v2075_v51, %v2079_v37  ;;  %v8934_v32 = vshll.u32 %v6902_v49, 16  ;;  %v1581_v20 = vsel %vm6863_vm15, %v1573_v48, %v1580_v29  ;;  %v1757_v23 = vsel %vm6869_vm5, %v1582_v3, %v1756_v15  ;;  %v2400_v48 = vld [vmem:[#allocation2 + $0x84] sm:$0xf]  ;;  %v7893_v15 = vpop.permute.xlu0 %4193  ;;  %v2423_v3 = vld [vmem:[#allocation2 + $0x98] sm:$0x1] }
 0x2c8   : > { %v5367_v57 = vcombine.low %v2070_v6, %v2080_v5  ;;  %v3222_v61 = vor.u32 %v3221_v42, %v3217_v36  ;;  %1755 = vst.msk [vmem:[#allocation2 + $0xb8] sm:$0xf] %vm1173_vm3, %v1581_v20  ;;  %1758 = vst [vmem:[#allocation2 + $0xbc] sm:$0x1] %v1757_v23  ;;  %v5337_v38 = vrot.slane %v3433_v52, 9  ;;  %v3571_v40 = vrot.slane %v7880_v0, 5  ;;  %v7907_v20 = vpop.permute.xlu1 %3797 }
 0x2c9   : > { %v2464_v10 = vrot.slane %v8934_v32, 5  ;;  %v3278_v44 = vshrl.u32 %v7775_v13, 16  ;;  %v3218_v14 = vsel %vm6822_vm7, %v3213_v31, %v3217_v36  ;;  %v3574_v27 = vrot.slane %v7872_v9, 5  ;;  %v1784_v52 = vld [vmem:[#allocation2 + $0x6c] sm:$0xf] }
 0x2ca   : > { %3729 = vrot.lane.b32.xlu1 %v5367_v57, %s6170_s26  ;;  %v3223_v37 = vrot.slane %v3222_v61, 4  ;;  %v3572_v4 = vsel %vm6830_vm10, %v5337_v38, %v3571_v40  ;;  %v3573_v29 = vrot.slane %v3571_v40, 4  ;;  %v3281_v6 = vshll.u32 %v7775_v13, 16  ;;  %v5931_v38 = vld [vmem:[#allocation2] sm:$0xf] }
 0x2cb   : > { %v2465_v49 = vsel %vm6822_vm7, %v7080_v16, %v2464_v10  ;;  %v2469_v41 = vor.u32 %v7075_v55, %v2464_v10  ;;  %v8935_v55 = vshll.u32 %v6940_v53, 16  ;;  %v5399_v36 = vcombine.low %v2400_v48, %v2401_v34  ;;  %v5932_v40 = vld [vmem:[#allocation2 + $0x4] sm:$0xf] }
 0x2cc   : > { %v3228_v31 = vsel %vm6822_vm7, %v3223_v37, %v3227_v50  ;;  %v5320_v42 = vrot.slane %v2823_v26, 9  ;;  %v3575_v53 = vsel %vm6830_vm10, %v3573_v29, %v3574_v27  ;;  %v2955_v10 = vrot.slane %v7799_v59, 5 }
 0x2cd   : > { %v2474_v16 = vrot.slane %v8935_v55, 5  ;;  %v2470_v51 = vrot.slane %v2469_v41, 4  ;;  %v5460_v5 = vcombine.low %v3218_v14, %v3228_v31  ;;  %v5481_v57 = vcombine.low %v3572_v4, %v3575_v53 }
 0x2ce   : > { %3905 = vrot.lane.b32.xlu1 %v5399_v36, %s6171_s24  ;;  %v2958_v50 = vrot.slane %v2423_v3, 5  ;;  %v8936_v61 = vshll.u32 %v6921_v8, 16  ;;  %v5341_v48 = vcombine.low %v5931_v38, %v5932_v40  ;;  %v2956_v26 = vsel %vm6830_vm10, %v5320_v42, %v2955_v10 }
 0x2cf   : > { %v2475_v32 = vsel %vm6822_vm7, %v2470_v51, %v2474_v16  ;;  %4203 = vrot.lane.b32.xlu0 %v5460_v5, %s6171_s24  ;;  %v2957_v59 = vrot.slane %v2955_v10, 4  ;;  %v2034_v14 = vshrl.u32 %v1784_v52, 16  ;;  %5792 = vmatprep.mubr.msk.bf16.mxu0 %vm778_vm0, %v5481_v57  ;;  %v8937_v37 = vshll.u32 %v6960_v11, 16  ;;  %v2822_v16 = vld [vmem:[#allocation2 + $0x84] sm:$0xe]  ;;  %v7924_v51 = vpop.permute.xlu0 %4115 }
 0x2d0   : > { %v7909_v23 = vcombine.low %v2465_v49, %v2475_v32  ;;  %v2440_v41 = vrot.slane %v8936_v61, 5  ;;  %v2037_v55 = vshll.u32 %v1784_v52, 16  ;;  %v2043_v3 = vshll.u32 %v7760_v35, 16  ;;  %v2213_v32 = vld [vmem:[#allocation2 + $0x90] sm:$0xe]  ;;  %v7933_v61 = vpop.permute.xlu1 %3795 }
 0x2d1   : > { %v2450_v27 = vrot.slane %v8937_v37, 5  ;;  %v2959_v4 = vsel %vm6830_vm10, %v2957_v59, %v2958_v50  ;;  %v2036_v29 = vrot.slane %v2034_v14, 4  ;;  %v2047_v31 = vshrl.u32 %v7760_v35, 16  ;;  %v7931_v57 = vld [vmem:[#allocation2 + $0x98] sm:$0x1] }
 0x2d2   : > { %v2445_v49 = vor.u32 %v7082_v25, %v2440_v41  ;;  %v2441_v8 = vsel %vm6822_vm7, %v7241_v12, %v2440_v41  ;;  %v2422_v25 = vld [vmem:[#allocation2 + $0x8c] sm:$0x1]  ;;  %v5432_v36 = vcombine.low %v2956_v26, %v2959_v4  ;;  %v2039_v42 = vrot.slane %v2037_v55, 5  ;;  %v7940_v14 = vld [vmem:[#allocation2 + $0x94] sm:$0xf] }
 0x2d3   : > { %v2053_v5 = vshll.u32 %v7753_v2, 16  ;;  %v2045_v12 = vrot.slane %v2043_v3, 5  ;;  %v2049_v52 = vrot.slane %v2047_v31, 4  ;;  %v5319_v53 = vrot.slane %v2822_v16, 9  ;;  %v7944_v16 = vpop.permute.xlu0 %4191  ;;  %v2212_v3 = vld [vmem:[#allocation2 + $0x84] sm:$0xe] }
 0x2d4   : > { %v2446_v11 = vrot.slane %v2445_v49, 4  ;;  %v2948_v10 = vrot.slane %v2401_v34, 5  ;;  %4035 = vrot.lane.b32.xlu0 %v5432_v36, %s6170_s26  ;;  %v2040_v50 = vor.u32 %v2039_v42, %v2036_v29  ;;  %v2951_v38 = vrot.slane %v2422_v25, 5  ;;  %v7954_v42 = vld [vmem:[#allocation2 + $0x8c] sm:$0x1] }
 0x2d5   : > { %v2055_v41 = vrot.slane %v2053_v5, 5  ;;  %v2050_v26 = vor.u32 %v2049_v52, %v2045_v12  ;;  %v5305_v49 = vrot.slane %v2213_v32, 9  ;;  %v2354_v37 = vrot.slane %v7940_v14, 5  ;;  %v7968_v32 = vpop.permute.xlu1 %3895 }
 0x2d6   : > { %v2451_v35 = vsel %vm6822_vm7, %v2446_v11, %v2450_v27  ;;  %v2949_v2 = vsel %vm6830_vm10, %v5319_v53, %v2948_v10  ;;  %v2950_v59 = vrot.slane %v2948_v10, 4  ;;  %v2041_v34 = vrot.slane %v2040_v50, 4  ;;  %8939 = vst [vmem:[#allocation53_spill] sm:$0xff] %v7968_v32  ;;  %v7973_v53 = vld [vmem:[#allocation2 + $0xa8] sm:$0xf] }
 0x2d7   : > { %v5405_v40 = vcombine.low %v2441_v8, %v2451_v35  ;;  %v2357_v55 = vrot.slane %v7931_v57, 5  ;;  %v3280_v27 = vrot.slane %v3278_v44, 4  ;;  %v3283_v4 = vrot.slane %v3281_v6, 5 }
 0x2d8   : > { %v2051_v8 = vrot.slane %v2050_v26, 4  ;;  %v2952_v29 = vsel %vm6830_vm10, %v2950_v59, %v2951_v38  ;;  %v4271_v31 = vsel %vm778_vm0, %v5341_v48, %v7614_v47  ;;  %v2046_v25 = vsel %vm6822_vm7, %v2041_v34, %v2045_v12  ;;  %v7966_v48 = vld [vmem:[#allocation2 + $0x88] sm:$0xf]  ;;  %v7984_v34 = vpop.permute.xlu0 %4023 }
 0x2d9   : > { %v5431_v36 = vcombine.low %v2949_v2, %v2952_v29  ;;  %v2356_v11 = vrot.slane %v2354_v37, 4  ;;  %v8938_v5 = vshrl.u32 %v7528_v54, 16  ;;  %v4399_v44 = vsel %vm778_vm0, %v5405_v40, %v7690_v7 }
 0x2da   : > { %v2056_v6 = vsel %vm6822_vm7, %v2051_v8, %v2055_v41  ;;  %v2355_v47 = vsel %vm6830_vm10, %v5305_v49, %v2354_v37  ;;  %v5304_v10 = vrot.slane %v2212_v3, 9  ;;  %v2347_v7 = vrot.slane %v7966_v48, 5 }
 0x2db   : > { %v7958_v13 = vrot.slane %v8938_v5, 4  ;;  %v5366_v12 = vcombine.low %v2046_v25, %v2056_v6  ;;  %4033 = vrot.lane.b32.xlu0 %v5431_v36, %s6170_s26  ;;  %v2358_v52 = vsel %vm6830_vm10, %v2356_v11, %v2357_v55  ;;  %v4318_v35 = vsel %vm827_vm1, %v4271_v31, %v7657_v21  ;;  %v8001_v25 = vpop.permute.xlu1 %3717 }
 0x2dc   : > { %v5449_v50 = vcombine.low %v7973_v53, %v7880_v0  ;;  %v2350_v41 = vrot.slane %v7954_v42, 5  ;;  %v3284_v38 = vor.u32 %v3283_v4, %v3280_v27  ;;  %v5385_v40 = vcombine.low %v2355_v47, %v2358_v52  ;;  %v1790_v27 = vld [vmem:[#allocation2 + $0x90] sm:$0xf] }
 0x2dd   : > { %3727 = vrot.lane.b32.xlu1 %v5366_v12, %s6170_s26  ;;  %v2349_v26 = vrot.slane %v2347_v7, 4  ;;  %v3287_v2 = vshll.u32 %v7683_v62, 16  ;;  %v3291_v59 = vshrl.u32 %v7683_v62, 16  ;;  %v2348_v49 = vsel %vm6830_vm10, %v5304_v10, %v2347_v7  ;;  %v8009_v7 = vpop.permute.xlu0 %4021 }
 0x2de   : > { %v3285_v21 = vrot.slane %v3284_v38, 4  ;;  %v3297_v37 = vshll.u32 %v7678_v33, 16  ;;  %v4446_v55 = vsel %vm827_vm1, %v4399_v44, %v7638_v30  ;;  %v2645_v3 = vshrl.u32 %v7623_v22, 16 }
 0x2df   : > { %4133 = vrot.lane.b32.xlu0 %v5449_v50, %s6169_s15  ;;  %v2351_v4 = vsel %vm6830_vm10, %v2349_v26, %v2350_v41  ;;  %v3289_v8 = vrot.slane %v3287_v2, 5  ;;  %v3293_v29 = vrot.slane %v3291_v59, 4  ;;  %v4478_v62 = vsel %vm860_vm2, %v4446_v55, %v7742_v46  ;;  %v8022_v39 = vpop.permute.xlu1 %3893 }
 0x2e0   : > { %v3254_v31 = vshrl.u32 %v7801_v24, 16  ;;  %v3257_v33 = vshll.u32 %v7801_v24, 16  ;;  %4756 = vmatprep.mubr.bf16.mxu1 %v4478_v62  ;;  %v4350_v30 = vsel %vm860_vm2, %v4318_v35, %v7707_v18  ;;  %v3299_v11 = vrot.slane %v3297_v37, 5  ;;  %v8033_v62 = vld [vmem:[#allocation2 + $0x9c] sm:$0xf] }
 0x2e1   : > { %3813 = vrot.lane.b32.xlu1 %v5385_v40, %s6169_s15  ;;  %v3294_v36 = vor.u32 %v3293_v29, %v3289_v8  ;;  %4757 = vmatmul.mubr.bf16.vlgmr.msra.gmra.mxu1 %v4350_v30  ;;  %v2106_v5 = vshrl.u32 %v1790_v27, 16  ;;  %v2109_v44 = vshll.u32 %v1790_v27, 16  ;;  %v5384_v46 = vcombine.low %v2348_v49, %v2351_v4  ;;  %v2824_v37 = vld [vmem:[#allocation2 + $0x9c] sm:$0xe] }
 0x2e2   : > { %v2115_v6 = vshll.u32 %v7940_v14, 16  ;;  %v2119_v47 = vshrl.u32 %v7940_v14, 16  ;;  %v2125_v24 = vshll.u32 %v7931_v57, 16  ;;  %v3290_v12 = vsel %vm6822_vm7, %v3285_v21, %v3289_v8 }
 0x2e3   : > { %v3295_v18 = vrot.slane %v3294_v36, 4  ;;  %v2108_v52 = vrot.slane %v2106_v5, 4  ;;  %v2111_v10 = vrot.slane %v2109_v44, 5  ;;  %v8014_v35 = vrot.slane %v2579_v43, 4  ;;  %v8024_v43 = vld [vmem:[#allocation2 + $0x5c] sm:$0x1] }
 0x2e4   : > { %v3326_v50 = vshrl.u32 %v7973_v53, 16  ;;  %v2117_v41 = vrot.slane %v2115_v6, 5  ;;  %v2121_v38 = vrot.slane %v2119_v47, 4  ;;  %v3256_v14 = vrot.slane %v3254_v31, 4  ;;  %v8045_v6 = vpop.permute.xlu0 %4121 }
 0x2e5   : > { %v3259_v40 = vrot.slane %v3257_v33, 5  ;;  %3811 = vrot.lane.b32.xlu1 %v5384_v46, %s6169_s15  ;;  %v3300_v57 = vsel %vm6822_vm7, %v3295_v18, %v3299_v11  ;;  %v2112_v26 = vor.u32 %v2111_v10, %v2108_v52  ;;  %v2127_v49 = vrot.slane %v2125_v24, 5  ;;  %v8942_v33 = vld [vmem:[#allocation26_spill] sm:$0xff]  ;;  %v8049_v18 = vld [vmem:[#allocation2 + $0xa0] sm:$0xf] }
 0x2e6   : > { %v5463_v2 = vcombine.low %v3290_v12, %v3300_v57  ;;  %v2122_v59 = vor.u32 %v2121_v38, %v2117_v41  ;;  %v8940_v21 = vshll.u32 %v7009_v28, 16  ;;  %v8027_v55 = vrot.slane %v2645_v3, 4  ;;  %v8941_v28 = vld [vmem:[#allocation27_spill] sm:$0xff]  ;;  %v8943_v11 = vld [vmem:[#allocation22_spill] sm:$0xff] }
 0x2e7   : > { %v2113_v4 = vrot.slane %v2112_v26, 4  ;;  %v8030_v8 = vrot.slane %v3326_v50, 4  ;;  %v5448_v36 = vcombine.low %v8033_v62, %v7806_v45  ;;  %v8944_v5 = vshll.u32 %v8943_v11, 16  ;;  %8945 = vst [vmem:[#allocation27_spill] sm:$0xff] %v8045_v6  ;;  %v2404_v12 = vld [vmem:[#allocation2 + $0x9c] sm:$0xf] }
 0x2e8   : > { %v2512_v56 = vrot.slane %v8940_v21, 5  ;;  %4209 = vrot.lane.b32.xlu0 %v5463_v2, %s6171_s24  ;;  %v2123_v29 = vrot.slane %v2122_v59, 4  ;;  %v3260_v46 = vor.u32 %v3259_v40, %v3256_v14  ;;  %v8946_v52 = vld [vmem:[#allocation39_spill] sm:$0xff]  ;;  %v3329_v38 = vshll.u32 %v7973_v53, 16  ;;  %v8947_v2 = vld [vmem:[#allocation41_spill] sm:$0xff]  ;;  %v8950_v11 = vld [vmem:[#allocation24_spill] sm:$0xff] }
 0x2e9   : > { %v2118_v3 = vsel %vm6822_vm7, %v2113_v4, %v2117_v41  ;;  %v2522_v44 = vrot.slane %v8944_v5, 5  ;;  %v3263_v10 = vshll.u32 %v8946_v52, 16  ;;  %v3267_v50 = vshrl.u32 %v8946_v52, 16  ;;  %v3434_v41 = vld [vmem:[#allocation2 + $0xb4] sm:$0xe] }
 0x2ea   : > { %v2513_v31 = vsel %vm6822_vm7, %v8941_v28, %v2512_v56  ;;  %v2517_v30 = vor.u32 %v8942_v33, %v2512_v56  ;;  %v2128_v47 = vsel %vm6822_vm7, %v2123_v29, %v2127_v49  ;;  %v3261_v26 = vrot.slane %v3260_v46, 4  ;;  %v8055_v40 = vld [vmem:[#allocation2 + $0xb8] sm:$0xf]  ;;  %v8948_v56 = vld [vmem:[#allocation23_spill] sm:$0xff]  ;;  %v8062_v28 = vld [vmem:[#allocation2 + $0xbc] sm:$0x1]  ;;  %v8064_v33 = vpop.permute.xlu1 %3715 }
 0x2eb   : > { %v5369_v57 = vcombine.low %v2118_v3, %v2128_v47  ;;  %v3273_v14 = vshll.u32 %v8947_v2, 16  ;;  %v3265_v49 = vrot.slane %v3263_v10, 5  ;;  %v3269_v21 = vrot.slane %v3267_v50, 4  ;;  %v1788_v46 = vld [vmem:[#allocation2 + $0x84] sm:$0xf]  ;;  %v8953_v10 = vld [vmem:[#allocation33_spill] sm:$0xff] }
 0x2ec   : > { %v2518_v24 = vrot.slane %v2517_v30, 4  ;;  %4131 = vrot.lane.b32.xlu0 %v5448_v36, %s6169_s15  ;;  %v8949_v4 = vshll.u32 %v8948_v56, 16  ;;  %v5401_v30 = vcombine.low %v2404_v12, %v8049_v18  ;;  %v8951_v36 = vshll.u32 %v8950_v11, 16  ;;  %v8954_v2 = vld [vmem:[#allocation51_spill] sm:$0xff] }
 0x2ed   : > { %3733 = vrot.lane.b32.xlu1 %v5369_v57, %s6170_s26  ;;  %v3275_v3 = vrot.slane %v3273_v14, 5  ;;  %v3270_v47 = vor.u32 %v3269_v21, %v3265_v49  ;;  %v5338_v12 = vrot.slane %v3434_v41, 9  ;;  %v3578_v57 = vrot.slane %v8055_v40, 5 }
 0x2ee   : > { %v2523_v59 = vsel %vm6822_vm7, %v2518_v24, %v2522_v44  ;;  %v2488_v29 = vrot.slane %v8949_v4, 5  ;;  %v2498_v5 = vrot.slane %v8951_v36, 5  ;;  %v3266_v44 = vsel %vm6822_vm7, %v3261_v26, %v3265_v49  ;;  %v8952_v24 = vld [vmem:[#allocation32_spill] sm:$0xff] }
 0x2ef   : > { %v5408_v53 = vcombine.low %v2513_v31, %v2523_v59  ;;  %v3581_v14 = vrot.slane %v8062_v28, 5  ;;  %v8082_v59 = vpop.permute.xlu0 %4197  ;;  %v3271_v56 = vrot.slane %v3270_v47, 4  ;;  %v2082_v49 = vshrl.u32 %v1788_v46, 16 }
 0x2f0   : > { %v2489_v52 = vsel %vm6822_vm7, %v8952_v24, %v2488_v29  ;;  %v2493_v50 = vor.u32 %v8953_v10, %v2488_v29  ;;  %v2085_v21 = vshll.u32 %v1788_v46, 16  ;;  %v3579_v4 = vsel %vm6830_vm10, %v5338_v12, %v3578_v57  ;;  %v2425_v10 = vld [vmem:[#allocation2 + $0xb0] sm:$0x1]  ;;  %v2825_v46 = vld [vmem:[#allocation2 + $0xa8] sm:$0xe] }
 0x2f1   : > { %v8078_v31 = vsel %vm778_vm0, %v5408_v53, %v8954_v2  ;;  %3909 = vrot.lane.b32.xlu1 %v5401_v30, %s6171_s24  ;;  %v3580_v29 = vrot.slane %v3578_v57, 4  ;;  %v2091_v53 = vshll.u32 %v7966_v48, 16  ;;  %v2095_v41 = vshrl.u32 %v7966_v48, 16  ;;  %v2214_v48 = vld [vmem:[#allocation2 + $0x9c] sm:$0xe] }
 0x2f2   : > { %v2494_v26 = vrot.slane %v2493_v50, 4  ;;  %v3276_v11 = vsel %vm6822_vm7, %v3271_v56, %v3275_v3  ;;  %v2084_v47 = vrot.slane %v2082_v49, 4  ;;  %v2087_v24 = vrot.slane %v2085_v21, 5  ;;  %v8093_v50 = vpop.permute.xlu1 %3801  ;;  %v8102_v49 = vld [vmem:[#allocation2 + $0xa4] sm:$0x1] }
 0x2f3   : > { %8955 = vst [vmem:[#allocation26_spill] sm:$0xff] %v8093_v50  ;;  %v5462_v30 = vcombine.low %v3266_v44, %v3276_v11  ;;  %v3582_v12 = vsel %vm6830_vm10, %v3580_v29, %v3581_v14  ;;  %v2093_v57 = vrot.slane %v2091_v53, 5  ;;  %v2097_v56 = vrot.slane %v2095_v41, 4  ;;  %v8108_v29 = vld [vmem:[#allocation2 + $0xa0] sm:$0xf]  ;;  %v8110_v53 = vpop.permute.xlu0 %4119 }
 0x2f4   : > { %v2499_v36 = vsel %vm6822_vm7, %v2494_v26, %v2498_v5  ;;  %v5482_v27 = vcombine.low %v3579_v4, %v3582_v12  ;;  %v2088_v3 = vor.u32 %v2087_v24, %v2084_v47  ;;  %v2101_v5 = vshll.u32 %v7954_v42, 16  ;;  %v8100_v26 = vld [vmem:[#allocation2 + $0xac] sm:$0xf]  ;;  %v8125_v50 = vld [vmem:[#allocation2 + $0xc8] sm:$0x1] }
 0x2f5   : > { %v8095_v2 = vcombine.low %v2489_v52, %v2499_v36  ;;  %v8104_v21 = vrot.slane %v3329_v38, 5  ;;  %4207 = vrot.lane.b32.xlu0 %v5462_v30, %s6171_s24  ;;  %v5322_v44 = vrot.slane %v2825_v46, 9  ;;  %v2969_v52 = vrot.slane %v8100_v26, 5  ;;  %v2424_v36 = vld [vmem:[#allocation2 + $0xa4] sm:$0x1] }
 0x2f6   : > { %v2972_v14 = vrot.slane %v2425_v10, 5  ;;  %5793 = vmatmul.mubr.msk.bf16.gmra.mxu0 %vm778_vm0, %v5482_v27  ;;  %v2089_v4 = vrot.slane %v2088_v3, 4  ;;  %v2098_v42 = vor.u32 %v2097_v56, %v2093_v57  ;;  %v2103_v41 = vrot.slane %v2101_v5, 5  ;;  %v3435_v3 = vld [vmem:[#allocation2 + $0xc0] sm:$0xe]  ;;  %v8120_v56 = vpop.permute.xlu1 %3799 }
 0x2f7   : > { %v5306_v11 = vrot.slane %v2214_v48, 9  ;;  %v2970_v38 = vsel %vm6830_vm10, %v5322_v44, %v2969_v52  ;;  %v2971_v47 = vrot.slane %v2969_v52, 4  ;;  %v2361_v24 = vrot.slane %v8108_v29, 5  ;;  %8956 = vst [vmem:[#allocation22_spill] sm:$0xff] %v8120_v56 }
 0x2f8   : > { %v2364_v46 = vrot.slane %v8102_v49, 5  ;;  %v2094_v10 = vsel %vm6822_vm7, %v2089_v4, %v2093_v57  ;;  %v2099_v30 = vrot.slane %v2098_v42, 4  ;;  %v5321_v12 = vrot.slane %v2824_v37, 9 }
 0x2f9   : > { %v2962_v27 = vrot.slane %v8049_v18, 5  ;;  %v3302_v48 = vshrl.u32 %v8033_v62, 16  ;;  %v2973_v5 = vsel %vm6830_vm10, %v2971_v47, %v2972_v14  ;;  %v2363_v44 = vrot.slane %v2361_v24, 4  ;;  %v8130_v18 = vld [vmem:[#allocation2 + $0xc4] sm:$0xf]  ;;  %v8135_v47 = vpop.permute.xlu0 %4195 }
 0x2fa   : > { %v2965_v52 = vrot.slane %v2424_v36, 5  ;;  %v3305_v6 = vshll.u32 %v8033_v62, 16  ;;  %v2104_v57 = vsel %vm6822_vm7, %v2099_v30, %v2103_v41  ;;  %v5434_v37 = vcombine.low %v2970_v38, %v2973_v5 }
 0x2fb   : > { %v2964_v4 = vrot.slane %v2962_v27, 4  ;;  %v5368_v42 = vcombine.low %v2094_v10, %v2104_v57  ;;  %v2963_v32 = vsel %vm6830_vm10, %v5321_v12, %v2962_v27  ;;  %v5339_v56 = vrot.slane %v3435_v3, 9  ;;  %v8145_v10 = vld [vmem:[#allocation2 + $0x7c] sm:$0xf] }
 0x2fc   : > { %v3585_v14 = vrot.slane %v8130_v18, 5  ;;  %4039 = vrot.lane.b32.xlu0 %v5434_v37, %s6170_s26  ;;  %v2362_v62 = vsel %vm6830_vm10, %v5306_v11, %v2361_v24  ;;  %v2365_v41 = vsel %vm6830_vm10, %v2363_v44, %v2364_v46  ;;  %v3588_v38 = vrot.slane %v8125_v50, 5  ;;  %v1794_v44 = vld [vmem:[#allocation2 + $0xa8] sm:$0xf] }
 0x2fd   : > { %v2966_v36 = vsel %vm6830_vm10, %v2964_v4, %v2965_v52  ;;  %v3304_v12 = vrot.slane %v3302_v48, 4  ;;  %3731 = vrot.lane.b32.xlu1 %v5368_v42, %s6170_s26  ;;  %v3307_v11 = vrot.slane %v3305_v6, 5  ;;  %v3332_v46 = vor.u32 %v8104_v21, %v8030_v8  ;;  %v8154_v52 = vpop.permute.xlu1 %3899  ;;  %v8162_v6 = vld [vmem:[#allocation2 + $0xb0] sm:$0x1]  ;;  %v8166_v21 = vld [vmem:[#allocation2 + $0xa8] sm:$0xf] }
 0x2fe   : > { %v3586_v27 = vsel %vm6830_vm10, %v5339_v56, %v3585_v14  ;;  %v3587_v3 = vrot.slane %v3585_v14, 4  ;;  %v5433_v24 = vcombine.low %v2963_v32, %v2966_v36  ;;  %v3335_v5 = vshll.u32 %v7880_v0, 16  ;;  %8957 = vst [vmem:[#allocation39_spill] sm:$0xff] %v8154_v52  ;;  %v8160_v56 = vld [vmem:[#allocation2 + $0xac] sm:$0xf]  ;;  %8958 = vst [vmem:[#allocation41_spill] sm:$0xff] %v8166_v21  ;;  %v8171_v36 = vpop.permute.xlu0 %4027 }
 0x2ff   : > { %v5386_v57 = vcombine.low %v2362_v62, %v2365_v41  ;;  %v3339_v37 = vshrl.u32 %v7880_v0, 16  ;;  %v3345_v4 = vshll.u32 %v7872_v9, 16  ;;  %v3333_v42 = vrot.slane %v3332_v46, 4  ;;  %8959 = vst [vmem:[#allocation23_spill] sm:$0xff] %v8171_v36  ;;  %v8180_v32 = vld [vmem:[#allocation2 + $0x9c] sm:$0xf] }
 0x300   : > { %v3589_v48 = vsel %vm6830_vm10, %v3587_v3, %v3588_v38  ;;  %4037 = vrot.lane.b32.xlu0 %v5433_v24, %s6170_s26  ;;  %v3337_v14 = vrot.slane %v3335_v5, 5  ;;  %v5402_v0 = vcombine.low %v8166_v21, %v8100_v26  ;;  %v2154_v9 = vshrl.u32 %v1794_v44, 16  ;;  %8960 = vst [vmem:[#allocation24_spill] sm:$0xff] %v8180_v32 }
 0x301   : > { %v5483_v8 = vcombine.low %v3586_v27, %v3589_v48  ;;  %3815 = vrot.lane.b32.xlu1 %v5386_v57, %s6169_s15  ;;  %v3341_v62 = vrot.slane %v3339_v37, 4  ;;  %v2157_v41 = vshll.u32 %v1794_v44, 16  ;;  %v3347_v38 = vrot.slane %v3345_v4, 5  ;;  %v8182_v4 = vpop.permute.xlu1 %3721 }
 0x302   : > { %v2163_v3 = vshll.u32 %v8160_v56, 16  ;;  %v2167_v27 = vshrl.u32 %v8160_v56, 16  ;;  %v2173_v24 = vshll.u32 %v8162_v6, 16  ;;  %v2156_v5 = vrot.slane %v2154_v9, 4  ;;  %8961 = vst [vmem:[#allocation32_spill] sm:$0xff] %v8182_v4  ;;  %v8190_v4 = vpop.permute.xlu0 %4025 }
 0x303   : > { %5796 = vmatprep.mubr.msk.bf16.mxu0 %vm778_vm0, %v5483_v8  ;;  %v3342_v46 = vor.u32 %v3341_v62, %v3337_v14  ;;  %v2159_v57 = vrot.slane %v2157_v41, 5  ;;  %v3308_v48 = vor.u32 %v3307_v11, %v3304_v12  ;;  %v3338_v26 = vsel %vm6822_vm7, %v3333_v42, %v3337_v14  ;;  %v8962_v41 = vld [vmem:[#allocation50_spill] sm:$0xff] }
 0x304   : > { %v2165_v37 = vrot.slane %v2163_v3, 5  ;;  %v2169_v44 = vrot.slane %v2167_v27, 4  ;;  %v3311_v30 = vshll.u32 %v7806_v45, 16  ;;  %v2175_v52 = vrot.slane %v2173_v24, 5 }
 0x305   : > { %3911 = vrot.lane.b32.xlu1 %v5402_v0, %s6171_s24  ;;  %v3343_v8 = vrot.slane %v3342_v46, 4  ;;  %v2160_v21 = vor.u32 %v2159_v57, %v2156_v5  ;;  %v3315_v62 = vshrl.u32 %v7806_v45, 16  ;;  %v3309_v12 = vrot.slane %v3308_v48, 4  ;;  %v8963_v0 = vld [vmem:[#allocation42_spill] sm:$0xff]  ;;  %v5935_v46 = vld [vmem:[#allocation2 + $0x10] sm:$0xf] }
 0x306   : > { %v2170_v9 = vor.u32 %v2169_v44, %v2165_v37  ;;  %v3313_v11 = vrot.slane %v3311_v30, 5  ;;  %v3321_v42 = vshll.u32 %v8962_v41, 16  ;;  %v2130_v36 = vshrl.u32 %v8180_v32, 16  ;;  %v5936_v45 = vld [vmem:[#allocation2 + $0xc] sm:$0xf] }
 0x307   : > { %v3348_v14 = vsel %vm6822_vm7, %v3343_v8, %v3347_v38  ;;  %v2161_v3 = vrot.slane %v2160_v21, 4  ;;  %v3317_v27 = vrot.slane %v3315_v62, 4  ;;  %v4402_v24 = vsel %vm778_vm0, %v7909_v23, %v8963_v0  ;;  %v8203_v0 = vpop.permute.xlu1 %3897 }
 0x308   : > { %v5342_v5 = vcombine.low %v5936_v45, %v5935_v46  ;;  %v5465_v57 = vcombine.low %v3338_v26, %v3348_v14  ;;  %v2171_v30 = vrot.slane %v2170_v9, 4  ;;  %v3323_v38 = vrot.slane %v3321_v42, 5  ;;  %v5938_v46 = vld [vmem:[#allocation2 + $0x18] sm:$0xf] }
 0x309   : > { %v2166_v48 = vsel %vm6822_vm7, %v2161_v3, %v2165_v37  ;;  %v3318_v44 = vor.u32 %v3317_v27, %v3313_v11  ;;  %v2132_v21 = vrot.slane %v2130_v36, 4  ;;  %v2133_v62 = vshll.u32 %v8180_v32, 16  ;;  %v5937_v27 = vld [vmem:[#allocation2 + $0x1c] sm:$0xf] }
 0x30a   : > { %4213 = vrot.lane.b32.xlu0 %v5465_v57, %s6171_s24  ;;  %v2176_v8 = vsel %vm6822_vm7, %v2171_v30, %v2175_v52  ;;  %v2139_v23 = vshll.u32 %v8108_v29, 16  ;;  %v2143_v41 = vshrl.u32 %v8108_v29, 16  ;;  %v3314_v37 = vsel %vm6822_vm7, %v3309_v12, %v3313_v11  ;;  %v8964_v57 = vld [vmem:[#allocation48_spill] sm:$0xff]  ;;  %v8218_v12 = vpop.permute.xlu0 %4125 }
 0x30b   : > { %v5371_v26 = vcombine.low %v2166_v48, %v2176_v8  ;;  %v3319_v9 = vrot.slane %v3318_v44, 4  ;;  %v2149_v36 = vshll.u32 %v8102_v49, 16  ;;  %v4274_v42 = vsel %vm778_vm0, %v5342_v5, %v7874_v17  ;;  %v3015_v44 = vld [vmem:[#allocation2 + $0xb4] sm:$0xf]  ;;  %v2215_v8 = vld [vmem:[#allocation2 + $0xa8] sm:$0xe] }
 0x30c   : > { %v2135_v14 = vrot.slane %v2133_v62, 5  ;;  %v2141_v52 = vrot.slane %v2139_v23, 5  ;;  %v2145_v3 = vrot.slane %v2143_v41, 4  ;;  %v5343_v45 = vcombine.low %v5938_v46, %v5937_v27  ;;  %v8965_v23 = vld [vmem:[#allocation47_spill] sm:$0xff] }
 0x30d   : > { %v4448_v29 = vsel %vm827_vm1, %v4402_v24, %v8964_v57  ;;  %v4405_v30 = vsel %vm778_vm0, %v8095_v2, %v7840_v19  ;;  %3737 = vrot.lane.b32.xlu1 %v5371_v26, %s6170_s26  ;;  %v3324_v49 = vsel %vm6822_vm7, %v3319_v9, %v3323_v38  ;;  %v2151_v48 = vrot.slane %v2149_v36, 5  ;;  %v8966_v2 = vld [vmem:[#allocation25_spill] sm:$0xff]  ;;  %v8969_v36 = vld [vmem:[#allocation44_spill] sm:$0xff]  ;;  %v8971_v27 = vld [vmem:[#allocation35_spill] sm:$0xff] }
 0x30e   : > { %v5464_v17 = vcombine.low %v3314_v37, %v3324_v49  ;;  %v2136_v11 = vor.u32 %v2135_v14, %v2132_v21  ;;  %v2146_v5 = vor.u32 %v2145_v3, %v2141_v52  ;;  %v5450_v62 = vcombine.low %v3015_v44, %v8055_v40  ;;  %v8968_v21 = vld [vmem:[#allocation43_spill] sm:$0xff]  ;;  %v8232_v3 = vpop.permute.xlu1 %3719 }
 0x30f   : > { %v4481_v24 = vsel %vm860_vm2, %v4448_v29, %v7944_v16  ;;  %v4320_v19 = vsel %vm827_vm1, %v4274_v42, %v8965_v23  ;;  %v8967_v41 = vshll.u32 %v8966_v2, 16  ;;  %v4450_v14 = vsel %vm827_vm1, %v4405_v30, %v8969_v36  ;;  %v8970_v16 = vld [vmem:[#allocation34_spill] sm:$0xff]  ;;  %v8240_v49 = vld [vmem:[#allocation2 + $0xc0] sm:$0xf]  ;;  %v8972_v2 = vld [vmem:[#allocation29_spill] sm:$0xff] }
 0x310   : > { %4211 = vrot.lane.b32.xlu0 %v5464_v17, %s6171_s24  ;;  %v2137_v38 = vrot.slane %v2136_v11, 4  ;;  %v2147_v37 = vrot.slane %v2146_v5, 4  ;;  %4764 = vmatprep.mubr.bf16.mxu1 %v4481_v24  ;;  %v4353_v9 = vsel %vm860_vm2, %v4320_v19, %v8968_v21  ;;  %v4484_v57 = vsel %vm860_vm2, %v4450_v14, %v7893_v15  ;;  %v2826_v14 = vld [vmem:[#allocation2 + $0xb4] sm:$0xe] }
 0x311   : > { %v2560_v26 = vrot.slane %v8967_v41, 5  ;;  %4765 = vmatmul.mubr.bf16.gmra.mxu1 %v4353_v9  ;;  %v5307_v29 = vrot.slane %v2215_v8, 9  ;;  %v2368_v11 = vrot.slane %v8160_v56, 5  ;;  %v2371_v5 = vrot.slane %v8162_v6, 5  ;;  %v8250_v8 = vpop.permute.xlu0 %4201 }
 0x312   : > { %v2142_v17 = vsel %vm6822_vm7, %v2137_v38, %v2141_v52  ;;  %v2152_v30 = vsel %vm6822_vm7, %v2147_v37, %v2151_v48  ;;  %4772 = vmatprep.mubr.bf16.mxu1 %v4484_v57  ;;  %v3350_v23 = vshrl.u32 %v3015_v44, 16  ;;  %v8973_v41 = vshll.u32 %v8972_v2, 16  ;;  %v8982_v2 = vld [vmem:[#allocation37_spill] sm:$0xff] }
 0x313   : > { %v2561_v42 = vsel %vm6822_vm7, %v8970_v16, %v2560_v26  ;;  %v2565_v46 = vor.u32 %v8971_v27, %v2560_v26  ;;  %v5370_v24 = vcombine.low %v2142_v17, %v2152_v30  ;;  %v3353_v26 = vshll.u32 %v3015_v44, 16  ;;  %v8978_v16 = vld [vmem:[#allocation52_spill] sm:$0xff]  ;;  %v8279_v17 = vpop.permute.xlu1 %3805 }
 0x314   : > { %v2570_v15 = vrot.slane %v8973_v41, 5  ;;  %4135 = vrot.lane.b32.xlu0 %v5450_v62, %s6169_s15  ;;  %v2369_v52 = vsel %vm6830_vm10, %v5307_v29, %v2368_v11  ;;  %v2370_v48 = vrot.slane %v2368_v11, 4  ;;  %v3374_v38 = vshrl.u32 %v8240_v49, 16  ;;  %v8976_v62 = vld [vmem:[#allocation28_spill] sm:$0xff]  ;;  %v8277_v29 = vld [vmem:[#allocation2 + $0xbc] sm:$0x1] }
 0x315   : > { %v2566_v19 = vrot.slane %v2565_v46, 4  ;;  %v8974_v56 = vshll.u32 %v7623_v22, 16  ;;  %v8975_v37 = vshrl.u32 %v8145_v10, 16  ;;  %3735 = vrot.lane.b32.xlu1 %v5370_v24, %s6170_s26  ;;  %v8977_v9 = vshll.u32 %v8976_v62, 16  ;;  %8979 = vst [vmem:[#allocation33_spill] sm:$0xff] %v8277_v29  ;;  %8980 = vst [vmem:[#allocation51_spill] sm:$0xff] %v8279_v17 }
 0x316   : > { %v4277_v27 = vsel %vm778_vm0, %v5343_v45, %v8978_v16  ;;  %v2372_v22 = vsel %vm6830_vm10, %v2370_v48, %v2371_v5  ;;  %v5451_v57 = vcombine.low %v8240_v49, %v8130_v18  ;;  %v3352_v30 = vrot.slane %v3350_v23, 4  ;;  %v8981_v24 = vld [vmem:[#allocation38_spill] sm:$0xff]  ;;  %v2216_v5 = vld [vmem:[#allocation2 + $0xb4] sm:$0xe] }
 0x317   : > { %v8258_v6 = vrot.slane %v8974_v56, 5  ;;  %v8262_v21 = vrot.slane %v8975_v37, 4  ;;  %v2571_v44 = vsel %vm6822_vm7, %v2566_v19, %v2570_v15  ;;  %v2536_v36 = vrot.slane %v8977_v9, 5  ;;  %v8287_v41 = vld [vmem:[#allocation2 + $0xb8] sm:$0xf] }
 0x318   : > { %v8271_v46 = vcombine.low %v2561_v42, %v2571_v44  ;;  %v5387_v11 = vcombine.low %v2369_v52, %v2372_v22  ;;  %v8285_v42 = vld [vmem:[#allocation2 + $0xb4] sm:$0xf]  ;;  %v3355_v15 = vrot.slane %v3353_v26, 5  ;;  %v8289_v48 = vrot.slane %v3374_v38, 4  ;;  %4137 = vrot.lane.b32.xlu0 %v5451_v57, %s6169_s15  ;;  %v8293_v52 = vld [vmem:[#allocation2 + $0xb8] sm:$0xf]  ;;  %v8300_v38 = vpop.permute.xlu0 %4123 }
 0x319   : > { %v2537_v19 = vsel %vm6822_vm7, %v8981_v24, %v2536_v36  ;;  %v2541_v45 = vor.u32 %v8982_v2, %v2536_v36  ;;  %v3377_v56 = vshll.u32 %v8240_v49, 16  ;;  %v5323_v23 = vrot.slane %v2826_v14, 9  ;;  %v8983_v44 = vld [vmem:[#allocation30_spill] sm:$0xff]  ;;  %v8985_v22 = vld [vmem:[#allocation45_spill] sm:$0xff] }
 0x31a   : > { %3817 = vrot.lane.b32.xlu1 %v5387_v11, %s6169_s15  ;;  %v8984_v62 = vshll.u32 %v8983_v44, 16  ;;  %v2976_v36 = vrot.slane %v8287_v41, 5  ;;  %v2979_v16 = vrot.slane %v8277_v29, 5  ;;  %v1813_v26 = vld [vmem:[#allocation2 + $0xbc] sm:$0x1]  ;;  %v5403_v49 = vcombine.low %v8285_v42, %v8287_v41 }
 0x31b   : > { %v2542_v37 = vrot.slane %v2541_v45, 4  ;;  %v4322_v14 = vsel %vm827_vm1, %v4277_v27, %v8985_v22  ;;  %v5308_v57 = vrot.slane %v2216_v5, 9  ;;  %v2375_v11 = vrot.slane %v8293_v52, 5  ;;  %v8317_v22 = vpop.permute.xlu1 %3803 }
 0x31c   : > { %v2546_v9 = vrot.slane %v8984_v62, 5  ;;  %v2977_v2 = vsel %vm6830_vm10, %v5323_v23, %v2976_v36  ;;  %v2978_v45 = vrot.slane %v2976_v36, 4  ;;  %v4356_v44 = vsel %vm860_vm2, %v4322_v14, %v7847_v63  ;;  %v8329_v17 = vpop.permute.xlu0 %4199 }
 0x31d   : > { %4773 = vmatmul.mubr.bf16.gmra.mxu1 %v4356_v44  ;;  %v2376_v32 = vsel %vm6830_vm10, %v5308_v57, %v2375_v11  ;;  %v2377_v27 = vrot.slane %v2375_v11, 4  ;;  %v2378_v5 = vrot.slane %v1813_v26, 5  ;;  %v3356_v23 = vor.u32 %v3355_v15, %v3352_v30 }
 0x31e   : > { %v2547_v24 = vsel %vm6822_vm7, %v2542_v37, %v2546_v9  ;;  %3913 = vrot.lane.b32.xlu1 %v5403_v49, %s6171_s24  ;;  %v2980_v37 = vsel %vm6830_vm10, %v2978_v45, %v2979_v16  ;;  %v3359_v9 = vshll.u32 %v8055_v40, 16  ;;  %v3363_v63 = vshrl.u32 %v8055_v40, 16 }
 0x31f   : > { %v8313_v62 = vcombine.low %v2537_v19, %v2547_v24  ;;  %v8324_v19 = vld [vmem:[#allocation2 + $0xb4] sm:$0xf]  ;;  %v3379_v36 = vrot.slane %v3377_v56, 5  ;;  %v5435_v14 = vcombine.low %v2977_v2, %v2980_v37  ;;  %v2379_v57 = vsel %vm6830_vm10, %v2377_v27, %v2378_v5 }
 0x320   : > { %v3369_v11 = vshll.u32 %v8062_v28, 16  ;;  %v5388_v24 = vcombine.low %v2376_v32, %v2379_v57  ;;  %v3357_v44 = vrot.slane %v3356_v23, 4  ;;  %v3361_v49 = vrot.slane %v3359_v9, 5 }
 0x321   : > { %v3365_v29 = vrot.slane %v3363_v63, 4  ;;  %v2651_v30 = vor.u32 %v8258_v6, %v8027_v55  ;;  %4041 = vrot.lane.b32.xlu0 %v5435_v14, %s6170_s26  ;;  %v2178_v40 = vshrl.u32 %v8324_v19, 16  ;;  %v2181_v15 = vshll.u32 %v8324_v19, 16  ;;  %v8340_v6 = vpop.permute.xlu1 %3903 }
 0x322   : > { %v2187_v56 = vshll.u32 %v8293_v52, 16  ;;  %3819 = vrot.lane.b32.xlu1 %v5388_v24, %s6169_s15  ;;  %v3371_v32 = vrot.slane %v3369_v11, 5  ;;  %v2191_v16 = vshrl.u32 %v8293_v52, 16  ;;  %v2197_v2 = vshll.u32 %v1813_v26, 16  ;;  %8986 = vst [vmem:[#allocation50_spill] sm:$0xff] %v8340_v6 }
 0x323   : > { %v3366_v28 = vor.u32 %v3365_v29, %v3361_v49  ;;  %v2180_v45 = vrot.slane %v2178_v40, 4  ;;  %v2183_v27 = vrot.slane %v2181_v15, 5  ;;  %v3380_v55 = vor.u32 %v3379_v36, %v8289_v48  ;;  %v2827_v40 = vld [vmem:[#allocation2 + $0xc0] sm:$0xe]  ;;  %v8351_v15 = vpop.permute.xlu0 %4031  ;;  %v8409_v6 = vld [vmem:[#allocation2 + $0xd4] sm:$0x1] }
 0x324   : > { %v2189_v5 = vrot.slane %v2187_v56, 5  ;;  %v3362_v37 = vsel %vm6822_vm7, %v3357_v44, %v3361_v49  ;;  %v2193_v9 = vrot.slane %v2191_v16, 4  ;;  %v3383_v63 = vshll.u32 %v8130_v18, 16 }
 0x325   : > { %v3367_v23 = vrot.slane %v3366_v28, 4  ;;  %v8345_v14 = vrot.slane %v2651_v30, 4  ;;  %v2184_v29 = vor.u32 %v2183_v27, %v2180_v45  ;;  %v3387_v57 = vshrl.u32 %v8130_v18, 16  ;;  %v8353_v30 = vld [vmem:[#allocation2 + $0x6c] sm:$0xf] }
 0x326   : > { %v3393_v26 = vshll.u32 %v8125_v50, 16  ;;  %v2194_v48 = vor.u32 %v2193_v9, %v2189_v5  ;;  %v2199_v36 = vrot.slane %v2197_v2, 5  ;;  %v3385_v24 = vrot.slane %v3383_v63, 5  ;;  %v5940_v18 = vld [vmem:[#allocation2 + $0x34] sm:$0xf] }
 0x327   : > { %v3372_v11 = vsel %vm6822_vm7, %v3367_v23, %v3371_v32  ;;  %v2185_v49 = vrot.slane %v2184_v29, 4  ;;  %v3381_v56 = vrot.slane %v3380_v55, 4  ;;  %v3389_v28 = vrot.slane %v3387_v57, 4  ;;  %v5941_v32 = vld [vmem:[#allocation2 + $0x30] sm:$0xf]  ;;  %v8368_v57 = vpop.permute.xlu1 %3725 }
 0x328   : > { %v5466_v44 = vcombine.low %v3362_v37, %v3372_v11  ;;  %v4452_v50 = vsel %vm827_vm1, %v8078_v31, %v7924_v51  ;;  %v5345_v45 = vcombine.low %v5941_v32, %v5940_v18  ;;  %v2195_v2 = vrot.slane %v2194_v48, 4  ;;  %v8359_v27 = vld [vmem:[#allocation2 + $0xc8] sm:$0x1]  ;;  %v8364_v9 = vld [vmem:[#allocation2 + $0xc4] sm:$0xf] }
 0x329   : > { %v2190_v55 = vsel %vm6822_vm7, %v2185_v49, %v2189_v5  ;;  %v3390_v37 = vor.u32 %v3389_v28, %v3385_v24  ;;  %v3395_v23 = vrot.slane %v3393_v26, 5  ;;  %v5324_v63 = vrot.slane %v2827_v40, 9  ;;  %v8366_v29 = vld [vmem:[#allocation2 + $0xcc] sm:$0xf]  ;;  %v5942_v31 = vld [vmem:[#allocation2 + $0x28] sm:$0xf] }
 0x32a   : > { %4215 = vrot.lane.b32.xlu0 %v5466_v44, %s6171_s24  ;;  %v8372_v51 = vsel %vm778_vm0, %v5345_v45, %v8001_v25  ;;  %v5943_v11 = vld [vmem:[#allocation2 + $0x24] sm:$0xf]  ;;  %v2200_v44 = vsel %vm6822_vm7, %v2195_v2, %v2199_v36  ;;  %v2983_v5 = vrot.slane %v8364_v9, 5  ;;  %v3386_v40 = vsel %vm6822_vm7, %v3381_v56, %v3385_v24  ;;  %v8380_v18 = vld [vmem:[#allocation2 + $0xd0] sm:$0xf]  ;;  %v8388_v2 = vpop.permute.xlu0 %4029 }
 0x32b   : > { %v5344_v48 = vcombine.low %v5943_v11, %v5942_v31  ;;  %v5372_v26 = vcombine.low %v2190_v55, %v2200_v44  ;;  %v3391_v49 = vrot.slane %v3390_v37, 4  ;;  %v2986_v28 = vrot.slane %v8359_v27, 5  ;;  %v8384_v32 = vld [vmem:[#allocation2 + $0xc0] sm:$0xf] }
 0x32c   : > { %v2985_v45 = vrot.slane %v2983_v5, 4  ;;  %v3398_v31 = vshrl.u32 %v8366_v29, 16  ;;  %v3401_v36 = vshll.u32 %v8366_v29, 16  ;;  %v4411_v24 = vsel %vm778_vm0, %v8313_v62, %v8009_v7 }
 0x32d   : > { %v4280_v25 = vsel %vm778_vm0, %v5344_v48, %v8064_v33  ;;  %3739 = vrot.lane.b32.xlu1 %v5372_v26, %s6170_s26  ;;  %v3396_v56 = vsel %vm6822_vm7, %v3391_v49, %v3395_v23  ;;  %v5404_v33 = vcombine.low %v8384_v32, %v8364_v9  ;;  %v2984_v55 = vsel %vm6830_vm10, %v5324_v63, %v2983_v5  ;;  %v8987_v23 = vld [vmem:[#allocation31_spill] sm:$0xff]  ;;  %v8411_v63 = vpop.permute.xlu1 %3901  ;;  %v8989_v5 = vld [vmem:[#allocation49_spill] sm:$0xff] }
 0x32e   : > { %v5467_v37 = vcombine.low %v3386_v40, %v3396_v56  ;;  %v3400_v11 = vrot.slane %v3398_v31, 4  ;;  %v3403_v48 = vrot.slane %v3401_v36, 5  ;;  %v3411_v44 = vshrl.u32 %v8380_v18, 16  ;;  %v8993_v36 = vld [vmem:[#allocation46_spill] sm:$0xff] }
 0x32f   : > { %v2987_v16 = vsel %vm6830_vm10, %v2985_v45, %v2986_v28  ;;  %v4487_v7 = vsel %vm860_vm2, %v4452_v50, %v8135_v47  ;;  %v4324_v62 = vsel %vm827_vm1, %v4280_v25, %v7933_v61  ;;  %v8988_v26 = vshll.u32 %v8987_v23, 16  ;;  %v8990_v28 = vld [vmem:[#allocation36_spill] sm:$0xff] }
 0x330   : > { %4217 = vrot.lane.b32.xlu0 %v5467_v37, %s6171_s24  ;;  %4780 = vmatprep.mubr.bf16.mxu1 %v4487_v7  ;;  %v4359_v40 = vsel %vm860_vm2, %v4324_v62, %v8989_v5  ;;  %v8991_v45 = vshll.u32 %v8990_v28, 16  ;;  %v4454_v47 = vsel %vm827_vm1, %v4411_v24, %v7858_v60  ;;  %v3404_v61 = vor.u32 %v3403_v48, %v3400_v11  ;;  %v8992_v50 = vld [vmem:[#allocation40_spill] sm:$0xff]  ;;  %v8432_v11 = vpop.permute.xlu0 %4129 }
 0x331   : > { %v2608_v49 = vrot.slane %v8988_v26, 5  ;;  %3915 = vrot.lane.b32.xlu1 %v5404_v33, %s6171_s24  ;;  %4781 = vmatmul.mubr.bf16.gmra.mxu1 %v4359_v40  ;;  %v4490_v37 = vsel %vm860_vm2, %v4454_v47, %v8082_v59  ;;  %v3407_v7 = vshll.u32 %v8380_v18, 16  ;;  %v4414_v62 = vsel %vm778_vm0, %v8271_v46, %v7984_v34  ;;  %v5944_v59 = vld [vmem:[#allocation2 + $0x80] sm:$0x1] }
 0x332   : > { %v2618_v31 = vrot.slane %v8991_v45, 5  ;;  %v5436_v60 = vcombine.low %v2984_v55, %v2987_v16  ;;  %4788 = vmatprep.mubr.bf16.mxu1 %v4490_v37  ;;  %v3413_v24 = vrot.slane %v3411_v44, 4  ;;  %v3417_v33 = vshll.u32 %v8409_v6, 16  ;;  %v5945_v46 = vld [vmem:[#allocation2 + $0x40] sm:$0xf] }
 0x333   : > { %v2609_v25 = vsel %vm6822_vm7, %v8992_v50, %v2608_v49  ;;  %v2613_v56 = vor.u32 %v8993_v36, %v2608_v49  ;;  %v3405_v23 = vrot.slane %v3404_v61, 4  ;;  %v3409_v26 = vrot.slane %v3407_v7, 5  ;;  %v5946_v16 = vld [vmem:[#allocation2 + $0x3c] sm:$0xf]  ;;  %v8446_v61 = vpop.permute.xlu1 %3723 }
 0x334   : > { %v8994_v49 = vshll.u32 %v7528_v54, 16  ;;  %v2664_v40 = vshll.u32 %v5944_v59, 16  ;;  %v4456_v28 = vsel %vm827_vm1, %v4414_v62, %v8110_v53  ;;  %4043 = vrot.lane.b32.xlu0 %v5436_v60, %s6170_s26  ;;  %v5452_v34 = vcombine.low %v8366_v29, %v8380_v18 }
 0x335   : > { %v2614_v48 = vrot.slane %v2613_v56, 4  ;;  %v5346_v55 = vcombine.low %v5946_v16, %v5945_v46  ;;  %v3414_v45 = vor.u32 %v3413_v24, %v3409_v26  ;;  %v3419_v47 = vrot.slane %v3417_v33, 5 }
 0x336   : > { %v2584_v5 = vrot.slane %v8994_v49, 5  ;;  %v8995_v36 = vshll.u32 %v8024_v43, 16  ;;  %v4326_v56 = vsel %vm827_vm1, %v8372_v51, %v7907_v20  ;;  %v4493_v7 = vsel %vm860_vm2, %v4456_v28, %v8329_v17  ;;  %v8466_v51 = vpop.permute.xlu0 %4205 }
 0x337   : > { %v2619_v44 = vsel %vm6822_vm7, %v2614_v48, %v2618_v31  ;;  %v3410_v31 = vsel %vm6822_vm7, %v3405_v23, %v3409_v26  ;;  %v3415_v37 = vrot.slane %v3414_v45, 4  ;;  %v4362_v20 = vsel %vm860_vm2, %v4326_v56, %v8022_v39  ;;  %v5947_v23 = vld [vmem:[#allocation2 + $0x70] sm:$0xf]  ;;  %v5948_v56 = vld [vmem:[#allocation2 + $0x74] sm:$0x1] }
 0x338   : > { %v2585_v54 = vsel %vm6822_vm7, %v8014_v35, %v2584_v5  ;;  %v5412_v53 = vcombine.low %v2609_v25, %v2619_v44  ;;  %v2589_v50 = vor.u32 %v7958_v13, %v2584_v5  ;;  %v2594_v29 = vrot.slane %v8995_v36, 5  ;;  %4139 = vrot.lane.b32.xlu0 %v5452_v34, %s6169_s15  ;;  %v8476_v5 = vpop.permute.xlu1 %3809 }
 0x339   : > { %v8996_v35 = vshll.u32 %v8145_v10, 16  ;;  %v2624_v25 = vshll.u32 %v8353_v30, 16  ;;  %v4286_v13 = vsel %vm778_vm0, %v5346_v55, %v8232_v3  ;;  %v3420_v60 = vsel %vm6822_vm7, %v3415_v37, %v3419_v47  ;;  %4789 = vmatmul.mubr.bf16.gmra.mxu1 %v4362_v20 }
 0x33a   : > { %v2590_v43 = vrot.slane %v2589_v50, 4  ;;  %v2666_v24 = vrot.slane %v2664_v40, 5  ;;  %v5468_v33 = vcombine.low %v3410_v31, %v3420_v60  ;;  %4796 = vmatprep.mubr.bf16.mxu1 %v4493_v7  ;;  %v2630_v26 = vshll.u32 %v5947_v23, 16  ;;  %v8489_v45 = vpop.permute.xlu0 %4127  ;;  %v5949_v7 = vld [vmem:[#allocation2 + $0x4c] sm:$0xf] }
 0x33b   : > { %v2656_v62 = vrot.slane %v8996_v35, 5  ;;  %v2634_v49 = vshrl.u32 %v5947_v23, 16  ;;  %v8997_v59 = vshrl.u32 %v8353_v30, 16  ;;  %v2626_v34 = vrot.slane %v2624_v25, 5  ;;  %v8999_v30 = vld [vmem:[#allocation53_spill] sm:$0xff]  ;;  %v9001_v25 = vld [vmem:[#allocation32_spill] sm:$0xff] }
 0x33c   : > { %v2595_v3 = vsel %vm6822_vm7, %v2590_v43, %v2594_v29  ;;  %4219 = vrot.lane.b32.xlu0 %v5468_v33, %s6171_s24  ;;  %v2632_v16 = vrot.slane %v2630_v26, 5  ;;  %v2640_v31 = vshll.u32 %v5948_v56, 16  ;;  %v8497_v37 = vpop.permute.xlu1 %3807  ;;  %v5950_v35 = vld [vmem:[#allocation2 + $0x48] sm:$0xf]  ;;  %v5951_v23 = vld [vmem:[#allocation2 + $0x58] sm:$0xf] }
 0x33d   : > { %v2657_v10 = vsel %vm6822_vm7, %v8345_v14, %v2656_v62  ;;  %v2661_v17 = vor.u32 %v8262_v21, %v2656_v62  ;;  %v5411_v48 = vcombine.low %v2585_v54, %v2595_v3  ;;  %v2623_v28 = vrot.slane %v8997_v59, 4  ;;  %v8998_v21 = vld [vmem:[#allocation22_spill] sm:$0xff]  ;;  %v9000_v54 = vld [vmem:[#allocation27_spill] sm:$0xff]  ;;  %v5952_v26 = vld [vmem:[#allocation2 + $0x54] sm:$0xf]  ;;  %s8669_s24 = scalar_lea.vmem [#allocation11], %s6437_s0 }
 0x33e   : > { %v4328_v14 = vsel %vm827_vm1, %v4286_v13, %v8998_v21  ;;  %v2636_v55 = vrot.slane %v2634_v49, 4  ;;  %v5347_v62 = vcombine.low %v5950_v35, %v5949_v7  ;;  %v2642_v60 = vrot.slane %v2640_v31, 5  ;;  %v5956_v7 = vld [vmem:[#allocation2 + $0x88] sm:$0xf]  ;;  %s5561_s0 = sshll.u32 %s6242_s9, 12  ;;  %s5092_s30 = sshll.u32 %s8669_s24, 4  ;;  %s8781_s30 = int_to_ptr.vmem [resolvable:$true] %s5092_s30 }
 0x33f   : > { %v2662_v39 = vrot.slane %v2661_v17, 4  ;;  %v4417_v40 = vsel %vm778_vm0, %v5411_v48, %v8190_v4  ;;  %v4365_v47 = vsel %vm860_vm2, %v4328_v14, %v8999_v30  ;;  %v2627_v36 = vor.u32 %v2626_v34, %v2623_v28  ;;  %v9002_v17 = vld [vmem:[#allocation23_spill] sm:$0xff]  ;;  %s8779_s29 = scalar_lea.hbm %s9010_s22, %s5561_s0  ;;  %s6089_s9 = scalar_lea.vmem %s8781_s30, 4096 }
 0x340   : > { %v4458_v50 = vsel %vm827_vm1, %v4417_v40, %v9000_v54  ;;  %v2637_v29 = vor.u32 %v2636_v55, %v2632_v16  ;;  %v4289_v13 = vsel %vm778_vm0, %v5347_v62, %v9001_v25  ;;  %v8507_v48 = vpop.permute.xlu1 %3907  ;;  %v5348_v49 = vcombine.low %v5952_v26, %v5951_v23  ;;  %v5953_v40 = vld [vmem:[#allocation2 + $0x84] sm:$0xf]  ;;  %v9006_v26 = vld [vmem:[#allocation33_spill] sm:$0xff]  ;;  %p6090_p13 = scmp.ne.s32.totalorder %s8781_s30, %s6089_s9  ;;  %p6096_p9 = scmp.lt.s32.totalorder %s8781_s30, %s6094_s12 }
 0x341   : > { %v2667_v46 = vsel %vm6822_vm7, %v2662_v39, %v2666_v24  ;;  %4797 = vmatmul.mubr.bf16.gmra.mxu1 %v4365_v47  ;;  %v4496_v4 = vsel %vm860_vm2, %v4458_v50, %v8250_v8  ;;  %v2628_v43 = vrot.slane %v2627_v36, 4  ;;  %v4420_v24 = vsel %vm778_vm0, %v5412_v53, %v9002_v17  ;;  %v9003_v8 = vld [vmem:[#allocation26_spill] sm:$0xff]  ;;  %v5954_v36 = vld [vmem:[#allocation2 + $0x64] sm:$0xf]  ;;  %p6097_p6 = scmp.lt.s32.totalorder %s6095_s13, %s6089_s9 }
 0x342   : > { %v8487_v44 = vcombine.low %v2657_v10, %v2667_v46  ;;  %4804 = vmatprep.mubr.bf16.mxu1 %v4496_v4  ;;  %v2638_v20 = vrot.slane %v2637_v29, 4  ;;  %v4204_v10 = vpop.permute.xlu0 %4203  ;;  %v4460_v33 = vsel %vm827_vm1, %v4420_v24, %v8300_v38  ;;  %v4330_v3 = vsel %vm827_vm1, %v4289_v13, %v9003_v8  ;;  %v5955_v29 = vld [vmem:[#allocation2 + $0x60] sm:$0xf]  ;;  %p6091_p1 = pnand %p6090_p13, %p9011_p10 }
 0x343   : > { %v4499_v39 = vsel %vm860_vm2, %v4460_v33, %v4204_v10  ;;  %v2633_v59 = vsel %vm6822_vm7, %v2628_v43, %v2632_v16  ;;  %v4368_v53 = vsel %vm860_vm2, %v4330_v3, %v8203_v0  ;;  %v2765_v38 = vshrl.u32 %v8285_v42, 16  ;;  %v9004_v62 = vld [vmem:[#allocation39_spill] sm:$0xff]  ;;  %p6098_p12 = por %p6097_p6, %p6096_p9 }
 0x344   : > { %v2643_v28 = vsel %vm6822_vm7, %v2638_v20, %v2642_v60  ;;  %v2768_v34 = vshll.u32 %v8285_v42, 16  ;;  %v4292_v21 = vsel %vm778_vm0, %v5348_v49, %v8446_v61  ;;  %v2669_v46 = vshrl.u32 %v5953_v40, 16  ;;  %v8526_v54 = vpop.permute.xlu1 %3729  ;;  %v9005_v8 = vld [vmem:[#allocation51_spill] sm:$0xff]  ;;  %p6092_p3 = pneg %p6091_p1 }
 0x345   : > { %v2672_v16 = vshll.u32 %v5953_v40, 16  ;;  %v5413_v55 = vcombine.low %v2633_v59, %v2643_v28  ;;  %v2789_v30 = vshrl.u32 %v8384_v32, 16  ;;  %v2792_v47 = vshll.u32 %v8384_v32, 16 }
 0x346   : > { %v8520_v14 = vpop.permute.xlu0 %4035  ;;  %v4332_v42 = vsel %vm827_vm1, %v4292_v21, %v8317_v22  ;;  %v2767_v61 = vrot.slane %v2765_v38, 4  ;;  %v2770_v50 = vrot.slane %v2768_v34, 5  ;;  %v5349_v56 = vcombine.low %v5955_v29, %v5954_v36  ;;  %v3436_v34 = vld [vmem:[#allocation2 + $0xcc] sm:$0xe]  ;;  %p6099_p0 = pnand %p6098_p12, %p6092_p3 }
 0x347   : > { %v4423_v0 = vsel %vm778_vm0, %v5413_v55, %v8388_v2  ;;  %v2671_v31 = vrot.slane %v2669_v46, 4  ;;  %v2674_v4 = vrot.slane %v2672_v16, 5  ;;  %v2678_v35 = vshll.u32 %v5956_v7, 16 }
 0x348   : > { %v4295_v32 = vsel %vm778_vm0, %v5349_v56, %v8368_v57  ;;  %v4371_v2 = vsel %vm860_vm2, %v4332_v42, %v9004_v62  ;;  %v4462_v25 = vsel %vm827_vm1, %v4423_v0, %v8218_v12  ;;  %v2791_v22 = vrot.slane %v2789_v30, 4  ;;  %v8541_v57 = vpop.permute.xlu1 %3905  ;;  %v5957_v56 = vld [vmem:[#allocation2 + $0x8c] sm:$0x1] }
 0x349   : > { %4805 = vmatmul.mubr.bf16.gmra.mxu1 %v4368_v53  ;;  %v2794_v43 = vrot.slane %v2792_v47, 5  ;;  %v4502_v20 = vsel %vm860_vm2, %v4462_v25, %v8466_v51  ;;  %v2682_v60 = vshrl.u32 %v5956_v7, 16  ;;  %v2771_v10 = vor.u32 %v2770_v50, %v2767_v61 }
 0x34a   : > { %4812 = vmatprep.mubr.bf16.mxu1 %v4499_v39  ;;  %v2774_v17 = vshll.u32 %v8287_v41, 16  ;;  %v2675_v24 = vor.u32 %v2674_v4, %v2671_v31  ;;  %v2680_v33 = vrot.slane %v2678_v35, 5  ;;  %v4334_v12 = vsel %vm827_vm1, %v4295_v32, %v9005_v8 }
 0x34b   : > { %v2778_v3 = vshrl.u32 %v8287_v41, 16  ;;  %v2772_v39 = vrot.slane %v2771_v10, 4  ;;  %v2784_v49 = vshll.u32 %v9006_v26, 16  ;;  %v5356_v51 = vcombine.low %v8324_v19, %v8293_v52 }
 0x34c   : > { %v2776_v23 = vrot.slane %v2774_v17, 5  ;;  %v2684_v59 = vrot.slane %v2682_v60, 4  ;;  %v2795_v53 = vor.u32 %v2794_v43, %v2791_v22  ;;  %v2798_v38 = vshll.u32 %v8364_v9, 16 }
 0x34d   : > { %v8536_v13 = vpop.permute.xlu0 %4033  ;;  %v2780_v28 = vrot.slane %v2778_v3, 4  ;;  %v4374_v21 = vsel %vm860_vm2, %v4334_v12, %v8411_v63  ;;  %v2786_v46 = vrot.slane %v2784_v49, 5  ;;  %v2802_v16 = vshrl.u32 %v8364_v9, 16  ;;  %v5958_v12 = vld [vmem:[#allocation2 + $0x70] sm:$0xf] }
 0x34e   : > { %v2777_v41 = vsel %vm6822_vm7, %v2772_v39, %v2776_v23  ;;  %v2796_v30 = vrot.slane %v2795_v53, 4  ;;  %v2800_v47 = vrot.slane %v2798_v38, 5  ;;  %v2808_v0 = vshll.u32 %v8359_v27, 16  ;;  %v5959_v3 = vld [vmem:[#allocation2 + $0x6c] sm:$0xf] }
 0x34f   : > { %v2781_v55 = vor.u32 %v2780_v28, %v2776_v23  ;;  %v2804_v42 = vrot.slane %v2802_v16, 4  ;;  %v5340_v61 = vrot.slane %v3436_v34, 9  ;;  %v3592_v50 = vrot.slane %v8380_v18, 5  ;;  %v3728_v63 = vpop.permute.xlu1 %3727 }
 0x350   : > { %v3595_v36 = vrot.slane %v8409_v6, 5  ;;  %v2685_v29 = vor.u32 %v2684_v59, %v2680_v33  ;;  %v2688_v31 = vshll.u32 %v5957_v56, 16  ;;  %v2801_v9 = vsel %vm6822_vm7, %v2796_v30, %v2800_v47  ;;  %v5961_v30 = vld [vmem:[#allocation2 + $0x9c] sm:$0xf] }
 0x351   : > { %4813 = vmatmul.mubr.bf16.gmra.mxu1 %v4371_v2  ;;  %v8552_v40 = vpop.permute.xlu0 %4133  ;;  %v2782_v4 = vrot.slane %v2781_v55, 4  ;;  %v2805_v7 = vor.u32 %v2804_v42, %v2800_v47  ;;  %v2810_v35 = vrot.slane %v2808_v0, 5  ;;  %v3593_v27 = vsel %vm6830_vm10, %v5340_v61, %v3592_v50  ;;  %v5962_v0 = vld [vmem:[#allocation2 + $0x7c] sm:$0xf]  ;;  %v5963_v42 = vld [vmem:[#allocation2 + $0x78] sm:$0xf] }
 0x352   : > { %4820 = vmatprep.mubr.bf16.mxu1 %v4502_v20  ;;  %v3594_v32 = vrot.slane %v3592_v50, 4  ;;  %v2676_v43 = vrot.slane %v2675_v24, 4  ;;  %v2686_v20 = vrot.slane %v2685_v29, 4  ;;  %v2690_v60 = vrot.slane %v2688_v31, 5  ;;  %v5964_v50 = vld [vmem:[#allocation2 + $0x94] sm:$0xf] }
 0x353   : > { %v2787_v18 = vsel %vm6822_vm7, %v2782_v4, %v2786_v46  ;;  %v2806_v2 = vrot.slane %v2805_v7, 4  ;;  %v8572_v17 = vpop.permute.xlu1 %3813  ;;  %v5350_v39 = vcombine.low %v5959_v3, %v5958_v12  ;;  %v4426_v28 = vsel %vm778_vm0, %v8487_v44, %v8351_v15  ;;  %v5960_v15 = vld [vmem:[#allocation2 + $0x90] sm:$0xf]  ;;  %v5965_v29 = vld [vmem:[#allocation2 + $0xa0] sm:$0xf] }
 0x354   : > { %v8566_v6 = vcombine.low %v2777_v41, %v2787_v18  ;;  %v3596_v25 = vsel %vm6830_vm10, %v3594_v32, %v3595_v36  ;;  %v2681_v1 = vsel %vm6822_vm7, %v2676_v43, %v2680_v33  ;;  %v2691_v24 = vsel %vm6822_vm7, %v2686_v20, %v2690_v60  ;;  %v9007_v41 = vld [vmem:[#allocation50_spill] sm:$0xff] }
 0x355   : > { %v5484_v22 = vcombine.low %v3593_v27, %v3596_v25  ;;  %v2811_v10 = vsel %vm6822_vm7, %v2806_v2, %v2810_v35  ;;  %v4298_v26 = vsel %vm778_vm0, %v5350_v39, %v3728_v63  ;;  %v5415_v49 = vcombine.low %v2681_v1, %v2691_v24  ;;  %v5966_v20 = vld [vmem:[#allocation2 + $0x98] sm:$0x1]  ;;  %v5967_v39 = vld [vmem:[#allocation2 + $0xa4] sm:$0x1] }
 0x356   : > { %v8574_v8 = vcombine.low %v2801_v9, %v2811_v10  ;;  %v4336_v33 = vsel %vm827_vm1, %v4298_v26, %v8497_v37  ;;  %v4464_v38 = vsel %vm827_vm1, %v4426_v28, %v8489_v45  ;;  %v2693_v44 = vshrl.u32 %v5960_v15, 16 }
 0x357   : > { %5797 = vmatmul.mubr.msk.bf16.gmra.mxu0 %vm778_vm0, %v5484_v22  ;;  %v8584_v59 = vpop.permute.xlu1 %3811  ;;  %v4429_v53 = vsel %vm778_vm0, %v5415_v49, %v8536_v13  ;;  %v4377_v46 = vsel %vm860_vm2, %v4336_v33, %v9007_v41  ;;  %v2696_v55 = vshll.u32 %v5960_v15, 16  ;;  %v2717_v45 = vshrl.u32 %v5961_v30, 16  ;;  %v5969_v41 = vld [vmem:[#allocation2 + $0x84] sm:$0xf] }
 0x358   : > { %v4466_v16 = vsel %vm827_vm1, %v4429_v53, %v8432_v11  ;;  %v2720_v47 = vshll.u32 %v5961_v30, 16  ;;  %v5351_v61 = vcombine.low %v5963_v42, %v5962_v0  ;;  %v2702_v36 = vshll.u32 %v5964_v50, 16 }
 0x359   : > { %4821 = vmatmul.mubr.bf16.gmra.mxu1 %v4374_v21  ;;  %v2706_v63 = vshrl.u32 %v5964_v50, 16  ;;  %v2726_v11 = vshll.u32 %v5965_v29, 16  ;;  %v2730_v56 = vshrl.u32 %v5965_v29, 16  ;;  %v2695_v4 = vrot.slane %v2693_v44, 4 }
 0x35a   : > { %v4210_v62 = vpop.permute.xlu0 %4209  ;;  %v4301_v31 = vsel %vm778_vm0, %v5351_v61, %v8526_v54  ;;  %v2698_v9 = vrot.slane %v2696_v55, 5  ;;  %v2719_v7 = vrot.slane %v2717_v45, 4  ;;  %v2722_v35 = vrot.slane %v2720_v47, 5 }
 0x35b   : > { %v4508_v37 = vsel %vm860_vm2, %v4466_v16, %v4210_v62  ;;  %v2704_v27 = vrot.slane %v2702_v36, 5  ;;  %v2708_v32 = vrot.slane %v2706_v63, 4  ;;  %v2728_v2 = vrot.slane %v2726_v11, 5  ;;  %v9008_v63 = vld [vmem:[#allocation41_spill] sm:$0xff] }
 0x35c   : > { %v2732_v25 = vrot.slane %v2730_v56, 4  ;;  %v4338_v22 = vsel %vm827_vm1, %v4301_v31, %v8476_v5  ;;  %v2699_v54 = vor.u32 %v2698_v9, %v2695_v4  ;;  %v2712_v60 = vshll.u32 %v5966_v20, 16  ;;  %v5970_v31 = vld [vmem:[#allocation2 + $0xac] sm:$0xf] }
 0x35d   : > { %v4380_v43 = vsel %vm860_vm2, %v4338_v22, %v8541_v57  ;;  %v2709_v10 = vor.u32 %v2708_v32, %v2704_v27  ;;  %v2723_v12 = vor.u32 %v2722_v35, %v2719_v7  ;;  %v2736_v1 = vshll.u32 %v5967_v39, 16  ;;  %v5971_v7 = vld [vmem:[#allocation2 + $0x94] sm:$0xf]  ;;  %v5972_v35 = vld [vmem:[#allocation2 + $0x90] sm:$0xf] }
 0x35e   : > { %v8581_v23 = vpop.permute.xlu0 %4131  ;;  %v2733_v3 = vor.u32 %v2732_v25, %v2728_v2  ;;  %v2700_v49 = vrot.slane %v2699_v54, 4  ;;  %v2714_v28 = vrot.slane %v2712_v60, 5  ;;  %v2741_v29 = vshrl.u32 %v9008_v63, 16 }
 0x35f   : > { %v8600_v13 = vpop.permute.xlu1 %3733  ;;  %v2710_v53 = vrot.slane %v2709_v10, 4  ;;  %v2724_v33 = vrot.slane %v2723_v12, 4  ;;  %v2738_v5 = vrot.slane %v2736_v1, 5  ;;  %v2744_v11 = vshll.u32 %v9008_v63, 16  ;;  %v5973_v10 = vld [vmem:[#allocation2 + $0xb0] sm:$0x1] }
 0x360   : > { %v2705_v57 = vsel %vm6822_vm7, %v2700_v49, %v2704_v27  ;;  %v2750_v4 = vshll.u32 %v5970_v31, 16  ;;  %v2754_v9 = vshrl.u32 %v5970_v31, 16  ;;  %v5353_v27 = vcombine.low %v5972_v35, %v5971_v7 }
 0x361   : > { %v2729_v15 = vsel %vm6822_vm7, %v2724_v33, %v2728_v2  ;;  %v2743_v32 = vrot.slane %v2741_v29, 4  ;;  %v2746_v2 = vrot.slane %v2744_v11, 5  ;;  %v2760_v12 = vshll.u32 %v5973_v10, 16 }
 0x362   : > { %v4307_v25 = vsel %vm778_vm0, %v5353_v27, %v8600_v13  ;;  %v2752_v22 = vrot.slane %v2750_v4, 5 }
 0x363   : > { %v8605_v18 = vpop.permute.xlu1 %3909  ;;  %v2762_v13 = vrot.slane %v2760_v12, 5 }
 0x367   : > { %v4208_v34 = vpop.permute.xlu0 %4207 }
 0x368   : > { %v4505_v21 = vsel %vm860_vm2, %v4464_v38, %v4208_v34  ;;  %v2734_v38 = vrot.slane %v2733_v3, 4  ;;  %v2715_v34 = vsel %vm6822_vm7, %v2710_v53, %v2714_v28  ;;  %v9009_v53 = vld [vmem:[#allocation24_spill] sm:$0xff] }
 0x369   : > { %4828 = vmatprep.mubr.bf16.mxu1 %v4505_v21  ;;  %v5968_v21 = vld [vmem:[#allocation2 + $0x88] sm:$0xf]  ;;  %v5416_v30 = vcombine.low %v2705_v57, %v2715_v34 }
 0x36a   : > { %4829 = vmatmul.mubr.bf16.gmra.mxu1 %v4377_v46  ;;  %v5352_v46 = vcombine.low %v5969_v41, %v5968_v21  ;;  %v2739_v44 = vsel %vm6822_vm7, %v2734_v38, %v2738_v5 }
 0x36b   : > { %4836 = vmatprep.mubr.bf16.mxu1 %v4508_v37  ;;  %v5417_v45 = vcombine.low %v2729_v15, %v2739_v44  ;;  %v4432_v47 = vsel %vm778_vm0, %v5416_v30, %v8520_v14  ;;  %v5975_v30 = vld [vmem:[#allocation2 + $0xa8] sm:$0xf] }
 0x36c   : > { %v4468_v61 = vsel %vm827_vm1, %v4432_v47, %v8581_v23 }
 0x36e   : > { %v8607_v62 = vpop.permute.xlu0 %4039 }
 0x36f   : > { %v3732_v24 = vpop.permute.xlu1 %3731 }
 0x370   : > { %v4304_v37 = vsel %vm778_vm0, %v5352_v46, %v3732_v24 }
 0x371   : > { %v4340_v42 = vsel %vm827_vm1, %v4304_v37, %v8584_v59  ;;  %v5770_v37 = vpop.f32.mrf.mxu0 }
 0x372   : > { %4837 = vmatmul.mubr.bf16.gmra.mxu1 %v4380_v43  ;;  %v4038_v26 = vpop.permute.xlu0 %4037  ;;  %v4383_v14 = vsel %vm860_vm2, %v4340_v42, %v8507_v48  ;;  %v2756_v43 = vrot.slane %v2754_v9, 4  ;;  %v4342_v48 = vsel %vm827_vm1, %v4307_v25, %v8572_v17  ;;  %v5974_v17 = vld [vmem:[#allocation2 + $0xa0] sm:$0xf] }
 0x373   : > { %v3816_v16 = vpop.permute.xlu1 %3815  ;;  %v4435_v0 = vsel %vm778_vm0, %v5417_v45, %v4038_v26  ;;  %v4386_v3 = vsel %vm860_vm2, %v4342_v48, %v8605_v18  ;;  %v5354_v33 = vcombine.low %v9009_v53, %v5974_v17  ;;  %v5976_v45 = vld [vmem:[#allocation2 + $0xac] sm:$0xf]  ;;  %v4919_v63 = vpop.f32.mrf.mxu0 }
 0x374   : > { %v4470_v59 = vsel %vm827_vm1, %v4435_v0, %v8552_v40  ;;  %v2747_v40 = vor.u32 %v2746_v2, %v2743_v32  ;;  %v2757_v60 = vor.u32 %v2756_v43, %v2752_v22  ;;  %v5355_v47 = vcombine.low %v5975_v30, %v5976_v45 }
 0x376   : > { %v2748_v24 = vrot.slane %v2747_v40, 4  ;;  %v2758_v26 = vrot.slane %v2757_v60, 4 }
 0x377   : > { %v3912_v50 = vpop.permute.xlu1 %3911 }
 0x378   : > { %v2753_v49 = vsel %vm6822_vm7, %v2748_v24, %v2752_v22  ;;  %v2763_v28 = vsel %vm6822_vm7, %v2758_v26, %v2762_v13 }
 0x379   : > { %v5418_v18 = vcombine.low %v2753_v49, %v2763_v28 }
 0x37b   : > { %v4438_v34 = vsel %vm778_vm0, %v5418_v18, %v8607_v62 }
 0x37c   : > { %v4214_v55 = vpop.permute.xlu0 %4213 }
 0x37d   : > { %v4514_v23 = vsel %vm860_vm2, %v4470_v59, %v4214_v55  ;;  %v5771_v59 = vpop.f32.mrf.mxu0 }
 0x37f   : > { %v3738_v54 = vpop.permute.xlu1 %3737  ;;  %v4922_v2 = vpop.f32.mrf.mxu0 }
 0x381   : > { %v5774_v24 = vpop.f32.mrf.mxu0 }
 0x382   : > { %v4212_v36 = vpop.permute.xlu0 %4211 }
 0x383   : > { %v4511_v56 = vsel %vm860_vm2, %v4468_v61, %v4212_v36  ;;  %v4313_v61 = vsel %vm778_vm0, %v5355_v47, %v3738_v54  ;;  %v4935_v28 = vpop.f32.mrf.mxu0 }
 0x384   : > { %4844 = vmatprep.mubr.bf16.mxu1 %v4511_v56 }
 0x385   : > { %4845 = vmatmul.mubr.bf16.gmra.mxu1 %v4383_v14 }
 0x386   : > { %4852 = vmatprep.mubr.bf16.mxu1 %v4514_v23  ;;  %v4136_v20 = vpop.permute.xlu0 %4135 }
 0x387   : > { %v3736_v39 = vpop.permute.xlu1 %3735  ;;  %v4472_v41 = vsel %vm827_vm1, %v4438_v34, %v4136_v20 }
 0x388   : > { %v4310_v57 = vsel %vm778_vm0, %v5354_v33, %v3736_v39 }
 0x389   : > { %v4344_v21 = vsel %vm827_vm1, %v4310_v57, %v3816_v16 }
 0x38a   : > { %v4138_v1 = vpop.permute.xlu0 %4137  ;;  %v4389_v44 = vsel %vm860_vm2, %v4344_v21, %v3912_v50 }
 0x38c   : > { %v3818_v38 = vpop.permute.xlu1 %3817 }
 0x38d   : > { %4853 = vmatmul.mubr.bf16.gmra.mxu1 %v4386_v3  ;;  %v4346_v50 = vsel %vm827_vm1, %v4313_v61, %v3818_v38 }
 0x390   : > { %v3914_v46 = vpop.permute.xlu1 %3913 }
 0x391   : > { %v4392_v11 = vsel %vm860_vm2, %v4346_v50, %v3914_v46 }
 0x393   : > { %v4042_v5 = vpop.permute.xlu0 %4041 }
 0x394   : > { %v4441_v55 = vsel %vm778_vm0, %v8566_v6, %v4042_v5  ;;  %v3820_v62 = vpop.permute.xlu1 %3819  ;;  %v8664_v6 = vld [vmem:[%s8833_s7] ss:$0 sm:$0xff]  ;;  %v5775_v5 = vpop.f32.mrf.mxu0 }
 0x395   : > { %v4474_v16 = vsel %vm827_vm1, %v4441_v55, %v4138_v1 }
 0x39c   : > { %v4216_v15 = vpop.permute.xlu0 %4215 }
 0x39d   : > { %v4517_v58 = vsel %vm860_vm2, %v4472_v41, %v4216_v15  ;;  %v4938_v41 = vpop.f32.mrf.mxu0 }
 0x39e   : > { %4860 = vmatprep.mubr.bf16.mxu1 %v4517_v58 }
 0x39f   : > { %4861 = vmatmul.mubr.bf16.gmra.mxu1 %v4389_v44  ;;  %v3740_v9 = vpop.permute.xlu1 %3739  ;;  %v5778_v30 = vpop.f32.mrf.mxu0 }
 0x3a0   : > { %v4316_v25 = vsel %vm778_vm0, %v5356_v51, %v3740_v9 }
 0x3a1   : > { %v5602_v42 = vpop.f32.mrf.mxu1  ;;  %v4348_v60 = vsel %vm827_vm1, %v4316_v25, %v3820_v62 }
 0x3a2   : > { %v4218_v0 = vpop.permute.xlu0 %4217 }
 0x3a3   : > { %v4520_v36 = vsel %vm860_vm2, %v4474_v16, %v4218_v0  ;;  %v5603_v29 = vpop.f32.mrf.mxu1  ;;  %v3916_v22 = vpop.permute.xlu1 %3915 }
 0x3a4   : > { %4868 = vmatprep.mubr.bf16.mxu1 %v4520_v36  ;;  %v5604_v56 = vadd.f32 %v5603_v29, %v5602_v42  ;;  %v4395_v52 = vsel %vm860_vm2, %v4348_v60, %v3916_v22  ;;  %v4951_v42 = vpop.f32.mrf.mxu0 }
 0x3a5   : > { %v5605_v4 = vpop.f32.mrf.mxu1 }
 0x3a6   : > { %v4044_v31 = vpop.permute.xlu0 %4043  ;;  %v4759_v14 = vadd.f32 %v5604_v56, %v8664_v6 }
 0x3a7   : > { %4869 = vmatmul.mubr.bf16.gmra.mxu1 %v4392_v11  ;;  %v5606_v23 = vpop.f32.mrf.mxu1  ;;  %v4444_v43 = vsel %vm778_vm0, %v8574_v8, %v4044_v31  ;;  %v5779_v11 = vpop.f32.mrf.mxu0 }
 0x3a8   : > { %v4920_v7 = vadd.f32 %v4919_v63, %v4759_v14  ;;  %v5607_v35 = vadd.f32 %v5606_v23, %v5605_v4 }
 0x3aa   : > { %v4140_v27 = vpop.permute.xlu0 %4139  ;;  %5046 = vst.msk [vmem:[%s8669_s24] sm:$0xff] %vm778_vm0, %v4920_v7  ;;  %v4762_v32 = vadd.f32 %v5607_v35, %v8664_v6 }
 0x3ab   : > { %v4476_v20 = vsel %vm827_vm1, %v4444_v43, %v4140_v27 }
 0x3ac   : > { %v4923_v54 = vadd.f32 %v4922_v2, %v4762_v32 }
 0x3ae   : > { %v4220_v48 = vpop.permute.xlu0 %4219  ;;  %5047 = vst.msk [vmem:[%s8669_s24 + $0x8] sm:$0xff] %vm778_vm0, %v4923_v54 }
 0x3af   : > { %v4523_v40 = vsel %vm860_vm2, %v4476_v20, %v4220_v48 }
 0x3b0   : > { %4876 = vmatprep.mubr.bf16.mxu1 %v4523_v40 }
 0x3b1   : > { %4877 = vmatmul.mubr.bf16.gmra.mxu1 %v4395_v52 }
 0x3d1   : > { %v5608_v19 = vpop.f32.mrf.mxu1 }
 0x3d3   : > { %v5609_v51 = vpop.f32.mrf.mxu1 }
 0x3d4   : > { %v5610_v10 = vadd.f32 %v5609_v51, %v5608_v19 }
 0x3d5   : > { %v5611_v8 = vpop.f32.mrf.mxu1 }
 0x3d6   : > { %v4767_v12 = vadd.f32 %v5610_v10, %v8664_v6 }
 0x3d7   : > { %v5612_v3 = vpop.f32.mrf.mxu1 }
 0x3d8   : > { %v4928_v39 = vadd.f32 %v5770_v37, %v4767_v12  ;;  %v5613_v1 = vadd.f32 %v5612_v3, %v5611_v8 }
 0x3da   : > { %5048 = vst.msk [vmem:[%s8669_s24 + $0x10] sm:$0xff] %vm778_vm0, %v4928_v39  ;;  %v4770_v26 = vadd.f32 %v5613_v1, %v8664_v6 }
 0x3dc   : > { %v4931_v13 = vadd.f32 %v5771_v59, %v4770_v26  ;;  %v4954_v59 = vpop.f32.mrf.mxu0 }
 0x3dd   : > { %v5614_v49 = vpop.f32.mrf.mxu1 }
 0x3de   : > { %5049 = vst.msk [vmem:[%s8669_s24 + $0x18] sm:$0xff] %vm778_vm0, %v4931_v13  ;;  %v5782_v2 = vpop.f32.mrf.mxu0 }
 0x3df   : > { %v5615_v17 = vpop.f32.mrf.mxu1 }
 0x3e0   : > { %v5616_v53 = vadd.f32 %v5615_v17, %v5614_v49  ;;  %v4967_v48 = vpop.f32.mrf.mxu0 }
 0x3e1   : > { %v5617_v33 = vpop.f32.mrf.mxu1 }
 0x3e2   : > { %v4775_v38 = vadd.f32 %v5616_v53, %v8664_v6  ;;  %v5783_v10 = vpop.f32.mrf.mxu0 }
 0x3e3   : > { %v5618_v57 = vpop.f32.mrf.mxu1 }
 0x3e4   : > { %v4936_v18 = vadd.f32 %v4935_v28, %v4775_v38  ;;  %v5619_v34 = vadd.f32 %v5618_v57, %v5617_v33 }
 0x3e6   : > { %5050 = vst.msk [vmem:[%s8669_s24 + $0x20] sm:$0xff] %vm778_vm0, %v4936_v18  ;;  %v4778_v21 = vadd.f32 %v5619_v34, %v8664_v6 }
 0x3e8   : > { %v4939_v46 = vadd.f32 %v4938_v41, %v4778_v21 }
 0x3ea   : > { %5051 = vst.msk [vmem:[%s8669_s24 + $0x28] sm:$0xff] %vm778_vm0, %v4939_v46 }
 0x3f1   : > { %v5620_v15 = vpop.f32.mrf.mxu1 }
 0x3f3   : > { %v5621_v58 = vpop.f32.mrf.mxu1 }
 0x3f4   : > { %v5622_v44 = vadd.f32 %v5621_v58, %v5620_v15 }
 0x3f5   : > { %v5623_v55 = vpop.f32.mrf.mxu1 }
 0x3f6   : > { %v4783_v37 = vadd.f32 %v5622_v44, %v8664_v6 }
 0x3f7   : > { %v5624_v45 = vpop.f32.mrf.mxu1 }
 0x3f8   : > { %v4944_v47 = vadd.f32 %v5774_v24, %v4783_v37  ;;  %v5625_v62 = vadd.f32 %v5624_v45, %v5623_v55  ;;  %v4970_v24 = vpop.f32.mrf.mxu0 }
 0x3f9   : > { %v5626_v0 = vpop.f32.mrf.mxu1 }
 0x3fa   : > { %5052 = vst.msk [vmem:[%s8669_s24 + $0x30] sm:$0xff] %vm778_vm0, %v4944_v47  ;;  %v4786_v16 = vadd.f32 %v5625_v62, %v8664_v6  ;;  %v5786_v53 = vpop.f32.mrf.mxu0 }
 0x3fb   : > { %v5627_v61 = vpop.f32.mrf.mxu1 }
 0x3fc   : > { %v4947_v36 = vadd.f32 %v5775_v5, %v4786_v16  ;;  %v5628_v63 = vadd.f32 %v5627_v61, %v5626_v0  ;;  %v4983_v34 = vpop.f32.mrf.mxu0 }
 0x3fd   : > { %v5629_v50 = vpop.f32.mrf.mxu1 }
 0x3fe   : > { %5053 = vst.msk [vmem:[%s8669_s24 + $0x38] sm:$0xff] %vm778_vm0, %v4947_v36  ;;  %v4791_v29 = vadd.f32 %v5628_v63, %v8664_v6  ;;  %v5787_v44 = vpop.f32.mrf.mxu0 }
 0x3ff   : > { %v5630_v56 = vpop.f32.mrf.mxu1 }
 0x400   : > { %v4952_v31 = vadd.f32 %v4951_v42, %v4791_v29  ;;  %v5631_v4 = vadd.f32 %v5630_v56, %v5629_v50  ;;  %v4986_v47 = vpop.f32.mrf.mxu0 }
 0x401   : > { %v5632_v9 = vpop.f32.mrf.mxu1 }
 0x402   : > { %5054 = vst.msk [vmem:[%s8669_s24 + $0x40] sm:$0xff] %vm778_vm0, %v4952_v31  ;;  %v4794_v14 = vadd.f32 %v5631_v4, %v8664_v6  ;;  %v5790_v63 = vpop.f32.mrf.mxu0 }
 0x403   : > { %v5633_v23 = vpop.f32.mrf.mxu1 }
 0x404   : > { %v4955_v7 = vadd.f32 %v4954_v59, %v4794_v14  ;;  %v5634_v35 = vadd.f32 %v5633_v23, %v5632_v9  ;;  %v4999_v4 = vpop.f32.mrf.mxu0 }
 0x405   : > { %v5635_v27 = vpop.f32.mrf.mxu1 }
 0x406   : > { %5055 = vst.msk [vmem:[%s8669_s24 + $0x48] sm:$0xff] %vm778_vm0, %v4955_v7  ;;  %v4799_v32 = vadd.f32 %v5634_v35, %v8664_v6  ;;  %v5791_v35 = vpop.f32.mrf.mxu0 }
 0x407   : > { %v5636_v25 = vpop.f32.mrf.mxu1 }
 0x408   : > { %v4960_v22 = vadd.f32 %v5778_v30, %v4799_v32  ;;  %v5637_v43 = vadd.f32 %v5636_v25, %v5635_v27 }
 0x409   : > { %v5638_v54 = vpop.f32.mrf.mxu1 }
 0x40a   : > { %5056 = vst.msk [vmem:[%s8669_s24 + $0x50] sm:$0xff] %vm778_vm0, %v4960_v22  ;;  %v4802_v20 = vadd.f32 %v5637_v43, %v8664_v6  ;;  %v5002_v22 = vpop.f32.mrf.mxu0 }
 0x40b   : > { %v5639_v40 = vpop.f32.mrf.mxu1 }
 0x40c   : > { %v4963_v60 = vadd.f32 %v5779_v11, %v4802_v20  ;;  %v5640_v52 = vadd.f32 %v5639_v40, %v5638_v54 }
 0x40d   : > { %v5641_v19 = vpop.f32.mrf.mxu1 }
 0x40e   : > { %5057 = vst.msk [vmem:[%s8669_s24 + $0x58] sm:$0xff] %vm778_vm0, %v4963_v60  ;;  %v4807_v51 = vadd.f32 %v5640_v52, %v8664_v6  ;;  %v5794_v52 = vpop.f32.mrf.mxu0 }
 0x40f   : > { %v5642_v8 = vpop.f32.mrf.mxu1 }
 0x410   : > { %v4968_v12 = vadd.f32 %v4967_v48, %v4807_v51  ;;  %v5643_v3 = vadd.f32 %v5642_v8, %v5641_v19 }
 0x411   : > { %v5644_v39 = vpop.f32.mrf.mxu1 }
 0x412   : > { %5058 = vst.msk [vmem:[%s8669_s24 + $0x60] sm:$0xff] %vm778_vm0, %v4968_v12  ;;  %v4810_v1 = vadd.f32 %v5643_v3, %v8664_v6  ;;  %v5015_v3 = vpop.f32.mrf.mxu0 }
 0x413   : > { %v5645_v26 = vpop.f32.mrf.mxu1 }
 0x414   : > { %v4971_v13 = vadd.f32 %v4970_v24, %v4810_v1  ;;  %v5646_v49 = vadd.f32 %v5645_v26, %v5644_v39 }
 0x415   : > { %v5647_v28 = vpop.f32.mrf.mxu1 }
 0x416   : > { %5059 = vst.msk [vmem:[%s8669_s24 + $0x68] sm:$0xff] %vm778_vm0, %v4971_v13  ;;  %v4815_v17 = vadd.f32 %v5646_v49, %v8664_v6  ;;  %v5795_v49 = vpop.f32.mrf.mxu0 }
 0x417   : > { %v5648_v33 = vpop.f32.mrf.mxu1 }
 0x418   : > { %v4976_v38 = vadd.f32 %v5782_v2, %v4815_v17  ;;  %v5649_v5 = vadd.f32 %v5648_v33, %v5647_v28 }
 0x419   : > { %v5650_v57 = vpop.f32.mrf.mxu1 }
 0x41a   : > { %5060 = vst.msk [vmem:[%s8669_s24 + $0x70] sm:$0xff] %vm778_vm0, %v4976_v38  ;;  %v4818_v18 = vadd.f32 %v5649_v5, %v8664_v6  ;;  %v5018_v38 = vpop.f32.mrf.mxu0 }
 0x41b   : > { %v5651_v21 = vpop.f32.mrf.mxu1 }
 0x41c   : > { %v4979_v41 = vadd.f32 %v5783_v10, %v4818_v18  ;;  %v5652_v46 = vadd.f32 %v5651_v21, %v5650_v57 }
 0x41d   : > { %v5653_v15 = vpop.f32.mrf.mxu1 }
 0x41e   : > { %5061 = vst.msk [vmem:[%s8669_s24 + $0x78] sm:$0xff] %vm778_vm0, %v4979_v41  ;;  %v4823_v58 = vadd.f32 %v5652_v46, %v8664_v6  ;;  %v5798_v41 = vpop.f32.mrf.mxu0 }
 0x41f   : > { %v5654_v55 = vpop.f32.mrf.mxu1 }
 0x420   : > { %v4984_v37 = vadd.f32 %v4983_v34, %v4823_v58  ;;  %v5655_v30 = vadd.f32 %v5654_v55, %v5653_v15 }
 0x422   : > { %5062 = vst.msk [vmem:[%s8669_s24 + $0x80] sm:$0xff] %vm778_vm0, %v4984_v37  ;;  %v4826_v45 = vadd.f32 %v5655_v30, %v8664_v6  ;;  %v5031_v37 = vpop.f32.mrf.mxu0 }
 0x424   : > { %v4987_v62 = vadd.f32 %v4986_v47, %v4826_v45 }
 0x426   : > { %5063 = vst.msk [vmem:[%s8669_s24 + $0x88] sm:$0xff] %vm778_vm0, %v4987_v62 }
 0x42a   : > { %v5656_v0 = vpop.f32.mrf.mxu1 }
 0x42c   : > { %v5657_v16 = vpop.f32.mrf.mxu1 }
 0x42d   : > { %v5658_v42 = vadd.f32 %v5657_v16, %v5656_v0  ;;  %v5799_v16 = vpop.f32.mrf.mxu0 }
 0x42e   : > { %v5659_v61 = vpop.f32.mrf.mxu1 }
 0x42f   : > { %v4831_v36 = vadd.f32 %v5658_v42, %v8664_v6 }
 0x430   : > { %v5660_v50 = vpop.f32.mrf.mxu1 }
 0x431   : > { %v4992_v29 = vadd.f32 %v5786_v53, %v4831_v36  ;;  %v5661_v11 = vadd.f32 %v5660_v50, %v5659_v61  ;;  %v5034_v50 = vpop.f32.mrf.mxu0 }
 0x432   : > { %v5662_v56 = vpop.f32.mrf.mxu1 }
 0x433   : > { %5064 = vst.msk [vmem:[%s8669_s24 + $0x90] sm:$0xff] %vm778_vm0, %v4992_v29  ;;  %v4834_v31 = vadd.f32 %v5661_v11, %v8664_v6 }
 0x434   : > { %v5663_v9 = vpop.f32.mrf.mxu1 }
 0x435   : > { %v4995_v14 = vadd.f32 %v5787_v44, %v4834_v31  ;;  %v5664_v59 = vadd.f32 %v5663_v9, %v5662_v56 }
 0x436   : > { %v5665_v23 = vpop.f32.mrf.mxu1 }
 0x437   : > { %5065 = vst.msk [vmem:[%s8669_s24 + $0x98] sm:$0xff] %vm778_vm0, %v4995_v14  ;;  %v4839_v7 = vadd.f32 %v5664_v59, %v8664_v6 }
 0x438   : > { %v5666_v27 = vpop.f32.mrf.mxu1 }
 0x439   : > { %v5000_v32 = vadd.f32 %v4999_v4, %v4839_v7  ;;  %v5667_v2 = vadd.f32 %v5666_v27, %v5665_v23 }
 0x43b   : > { %5066 = vst.msk [vmem:[%s8669_s24 + $0xa0] sm:$0xff] %vm778_vm0, %v5000_v32  ;;  %v4842_v25 = vadd.f32 %v5667_v2, %v8664_v6 }
 0x43d   : > { %v5003_v43 = vadd.f32 %v5002_v22, %v4842_v25 }
 0x43f   : > { %5067 = vst.msk [vmem:[%s8669_s24 + $0xa8] sm:$0xff] %vm778_vm0, %v5003_v43 }
 0x445   : > { %v5668_v54 = vpop.f32.mrf.mxu1 }
 0x447   : > { %v5669_v20 = vpop.f32.mrf.mxu1 }
 0x448   : > { %v5670_v48 = vadd.f32 %v5669_v20, %v5668_v54 }
 0x449   : > { %v5671_v40 = vpop.f32.mrf.mxu1 }
 0x44a   : > { %v4847_v60 = vadd.f32 %v5670_v48, %v8664_v6 }
 0x44b   : > { %v5672_v19 = vpop.f32.mrf.mxu1 }
 0x44c   : > { %v5008_v51 = vadd.f32 %v5790_v63, %v4847_v60  ;;  %v5673_v10 = vadd.f32 %v5672_v19, %v5671_v40 }
 0x44d   : > { %v5674_v8 = vpop.f32.mrf.mxu1 }
 0x44e   : > { %5068 = vst.msk [vmem:[%s8669_s24 + $0xb0] sm:$0xff] %vm778_vm0, %v5008_v51  ;;  %v4850_v12 = vadd.f32 %v5673_v10, %v8664_v6 }
 0x44f   : > { %v5675_v39 = vpop.f32.mrf.mxu1 }
 0x450   : > { %v5011_v1 = vadd.f32 %v5791_v35, %v4850_v12  ;;  %v5676_v24 = vadd.f32 %v5675_v39, %v5674_v8 }
 0x451   : > { %v5677_v26 = vpop.f32.mrf.mxu1 }
 0x452   : > { %5069 = vst.msk [vmem:[%s8669_s24 + $0xb8] sm:$0xff] %vm778_vm0, %v5011_v1  ;;  %v4855_v13 = vadd.f32 %v5676_v24, %v8664_v6 }
 0x453   : > { %v5678_v28 = vpop.f32.mrf.mxu1 }
 0x454   : > { %v5016_v17 = vadd.f32 %v5015_v3, %v4855_v13  ;;  %v5679_v53 = vadd.f32 %v5678_v28, %v5677_v26 }
 0x456   : > { %5070 = vst.msk [vmem:[%s8669_s24 + $0xc0] sm:$0xff] %vm778_vm0, %v5016_v17  ;;  %v4858_v33 = vadd.f32 %v5679_v53, %v8664_v6 }
 0x458   : > { %v5019_v5 = vadd.f32 %v5018_v38, %v4858_v33 }
 0x45a   : > { %5071 = vst.msk [vmem:[%s8669_s24 + $0xc8] sm:$0xff] %vm778_vm0, %v5019_v5 }
 0x45f   : > { %v5680_v57 = vpop.f32.mrf.mxu1 }
 0x461   : > { %v5681_v18 = vpop.f32.mrf.mxu1 }
 0x462   : > { %v5682_v34 = vadd.f32 %v5681_v18, %v5680_v57 }
 0x463   : > { %v5683_v21 = vpop.f32.mrf.mxu1 }
 0x464   : > { %v4863_v46 = vadd.f32 %v5682_v34, %v8664_v6 }
 0x465   : > { %v5684_v15 = vpop.f32.mrf.mxu1 }
 0x466   : > { %v5024_v58 = vadd.f32 %v5794_v52, %v4863_v46  ;;  %v5685_v44 = vadd.f32 %v5684_v15, %v5683_v21 }
 0x467   : > { %v5686_v55 = vpop.f32.mrf.mxu1 }
 0x468   : > { %5072 = vst.msk [vmem:[%s8669_s24 + $0xd0] sm:$0xff] %vm778_vm0, %v5024_v58  ;;  %v4866_v30 = vadd.f32 %v5685_v44, %v8664_v6 }
 0x469   : > { %v5687_v45 = vpop.f32.mrf.mxu1 }
 0x46a   : > { %v5027_v47 = vadd.f32 %v5795_v49, %v4866_v30  ;;  %v5688_v62 = vadd.f32 %v5687_v45, %v5686_v55 }
 0x46b   : > { %v5689_v0 = vpop.f32.mrf.mxu1 }
 0x46c   : > { %5073 = vst.msk [vmem:[%s8669_s24 + $0xd8] sm:$0xff] %vm778_vm0, %v5027_v47  ;;  %v4871_v42 = vadd.f32 %v5688_v62, %v8664_v6 }
 0x46d   : > { %v5690_v61 = vpop.f32.mrf.mxu1 }
 0x46e   : > { %v5691_v36 = vadd.f32 %v5690_v61, %v5689_v0  ;;  %v5032_v63 = vadd.f32 %v5031_v37, %v4871_v42 }
 0x470   : > { %5074 = vst.msk [vmem:[%s8669_s24 + $0xe0] sm:$0xff] %vm778_vm0, %v5032_v63  ;;  %v4874_v29 = vadd.f32 %v5691_v36, %v8664_v6 }
 0x471   : > { %v5692_v11 = vpop.f32.mrf.mxu1 }
 0x472   : > { %v5035_v56 = vadd.f32 %v5034_v50, %v4874_v29 }
 0x473   : > { %v5693_v31 = vpop.f32.mrf.mxu1 }
 0x474   : > { %5075 = vst.msk [vmem:[%s8669_s24 + $0xe8] sm:$0xff] %vm778_vm0, %v5035_v56  ;;  %v5694_v4 = vadd.f32 %v5693_v31, %v5692_v11 }
 0x475   : > { %v5695_v9 = vpop.f32.mrf.mxu1 }
 0x476   : > { %v4879_v14 = vadd.f32 %v5694_v4, %v8664_v6 }
 0x477   : > { %v5696_v59 = vpop.f32.mrf.mxu1 }
 0x478   : > { %v5040_v23 = vadd.f32 %v5798_v41, %v4879_v14  ;;  %v5697_v7 = vadd.f32 %v5696_v59, %v5695_v9 }
 0x47a   : > { %5076 = vst.msk [vmem:[%s8669_s24 + $0xf0] sm:$0xff] %vm778_vm0, %v5040_v23  ;;  %v4882_v35 = vadd.f32 %v5697_v7, %v8664_v6 }
 0x47c   : > { %v5043_v27 = vadd.f32 %v5799_v16, %v4882_v35 }
 0x47e   : > { %5077 = vst.msk [vmem:[%s8669_s24 + $0xf8] sm:$0xff] %vm778_vm0, %v5043_v27 }
 0x47f   : > { %6102 = shalt.err (!%p6099_p0)
}
 0x480   : > { %s6103_s21 = scalar_lea.hbm %s8779_s29, 4096  ;;  %s6107_s1 = scalar_lea.hbm %s9010_s22, 8192 }
 0x481   : > { %p6104_p11 = scmp.ne.s32.totalorder %s8779_s29, %s6103_s21  ;;  %p6108_p7 = scmp.lt.s32.totalorder %s8779_s29, %s9010_s22 }
 0x482   : > { %p6109_p2 = scmp.lt.s32.totalorder %s6107_s1, %s6103_s21 }
 0x483   : > { %p6105_p4 = pnand %p6104_p11, %p9011_p10 }
 0x484   : > { %p6110_p8 = por %p6109_p2, %p6108_p7 }
 0x485   : > { %p6106_p5 = pneg %p6105_p4 }
 0x487   : > { %p6111_p13 = pnand %p6110_p8, %p6106_p5 }
 0x489   : > { %6114 = shalt.err (!%p6111_p13)
}
 0x48a   : > { %s6174_s18 = smov 128   ;;  %s6175_s20 = smov 8  }
 0x48b   : > { %5808 = dma.vmem_to_hbm [thread:$0]  (%p9011_p10), %s8781_s30, 4096, %s8779_s29, %s5079_s8, %s6174_s18, %s6174_s18, %s6175_s20  }
 0x48c PF: > { %s9012_s15 = sld [smem:[#allocation16_spill]] }
 0x48d   : > { %s9013_s26 = sld [smem:[#allocation21_spill]] }
 0x48e   : > { %s9014_s24 = sld [smem:[#allocation18_spill]] }
 0x492   : > { %s5107_s0 = sand.u32 1, %s9012_s15  }
 0x493   : > { %p9015_p1 = scmp.ne.s32.totalorder %s9013_s26, 0  ;;  %s5108_s23 = scalar_lea.sflag [#allocation5], %s5107_s0 }
 0x494   : > { %p9016_p3 = scmp.ge.s32.totalorder %s9014_s24, 2 }
 0x496   : > { %p5824_p9 = pnand %p9016_p3, %p9015_p1 }
 0x498   : > { %p5825_p6 = pneg %p5824_p9 }
 0x49a   : > { %6144 = dma.done.wait (%p5825_p6), %s5108_s23, 4096  }
 0x49b   : > { %6146 = vsyncadd (%p5825_p6), %s5108_s23, 4294963200  ;;  %s9017_s30 = sld [smem:[#allocation19_spill]]  ;;  %s9020_s27 = smov %s6153_s28 }
 0x49c   : > { %s9018_s9 = sld [smem:[#allocation17_spill]] }
 0x49d   : > { %s9019_s29 = sld [smem:[#allocation20_spill]] }
 0x4a1   : > { %p27_p12 = scmp.ge.s32.totalorder %s9017_s30, 4  }
 0x4a2   : > { %s9021_s28 = smov %s9018_s9 }
 0x4a3   :  { %29 = sbr.rel (!%p27_p12) target bundleno = 13 (0xd), region = 136 }
 0x4a8   :  { %5113 = vsyncpa [#allocation4], 1 }
 0x4a9   :  { %5115 = vsyncpa [#allocation4 + $0x1], 1 }
 0x4aa   :  { %5116 = vsyncpa [#allocation7], 1 }
 0x4ab   :  { %5118 = vsyncpa [#allocation7 + $0x1], 1 }
 0x4ac   :  { %5119 = vsyncpa [#allocation10], 1 }
 0x4ad   :  { %5121 = vsyncpa [#allocation10 + $0x1], 1 }
 0x4ae   :  { %5122 = vsyncpa [#allocation5], 1 }
 0x4af   :  { %5124 = vsyncpa [#allocation5 + $0x1], 1 }

</bundles_post_ra>
